<compile_context>
chip_gen: v5e
topology: v5e:2x2
jax: 0.10.0
libtpu: 0.0.40
codegen_flags: <defaults>
</compile_context>

<pallas_src>
import functools
from dataclasses import dataclass

import jax
import jax.numpy as jnp
from jax.experimental import pallas as pl
from jax.experimental.pallas import tpu as pltpu


# ----------------------------- config -----------------------------
@dataclass(frozen=True)
class LlamaConfig:
    vocab_size: int = 128
    hidden_size: int = 128
    intermediate_size: int = 256
    num_hidden_layers: int = 2
    num_attention_heads: int = 8
    num_key_value_heads: int = 8    # reference rope broadcast forces nH == nKV == seqlen
    max_position_embeddings: int = 64
    rms_norm_eps: float = 1e-6
    initializer_range: float = 0.02
    attention_dropout: float = 0.0  # p = 0.0 -> dropout is the identity


_VMEM = pl.BlockSpec(memory_space=pltpu.MemorySpace.VMEM)


# ----------------------------- Pallas kernels -----------------------------
def _decoder_layer_kernel(x_ref, cos_ref, sin_ref, ln1_ref, wqkv_ref, wo_ref,
                          ln2_ref, wgu_ref, wd_ref, *rest,
                          eps, num_heads, head_dim, hidden, inter, scaling, has_mask):
    """One whole decoder layer for a single batch element (grid=(B,))."""
    if has_mask:
        mask_ref, o_ref = rest
    else:
        (o_ref,) = rest

    S = x_ref.shape[0]
    H, D, nH, half = hidden, head_dim, num_heads, head_dim // 2
    wdt = wqkv_ref.dtype                                     # bf16 MXU input dtype

    x = x_ref[...].astype(jnp.float32)                       # (S, H) residual kept in f32

    # ---- input RMSNorm + fused [Q|K|V] projection (one lane-dense matmul) ----
    var = jnp.mean(x * x, axis=-1, keepdims=True)
    xn = (x * jax.lax.rsqrt(var + eps)) * ln1_ref[...]
    qkv = jnp.dot(xn.astype(wdt), wqkv_ref[...],
                  preferred_element_type=jnp.float32)        # (S, 3H) f32

    # ---- split heads -> (nH, S, D); the per-tensor slices are 128-lane aligned.
    # At real head_dim (>=128) this becomes a plain aligned reshape; here the stack of
    # D-wide slices is a one-time relayout (no per-head matmuls / per-head rope anymore).
    def heads(t2d):
        return jnp.stack([t2d[:, h * D:(h + 1) * D] for h in range(nH)], axis=0)

    # ---- RoPE: reference unsqueeze_dim=2 broadcast -> cos/sin row selected by HEAD index
    cos = cos_ref[0]                                         # (nH, 1, D) f32
    sin = sin_ref[0]

    def rope(t3):                                            # rotate_half along last dim
        rot = jnp.concatenate([-t3[..., half:], t3[..., :half]], axis=-1)
        return t3 * cos + rot * sin

    q_h = rope(heads(qkv[:, 0 * H:1 * H])).astype(wdt)       # (nH, S, D)
    k_h = rope(heads(qkv[:, 1 * H:2 * H])).astype(wdt)
    v_h = heads(qkv[:, 2 * H:3 * H]).astype(wdt)

    # ---- all heads at once: batched QK^T -> softmax -> PV ----
    scores = jnp.einsum('hqd,hkd->hqk', q_h, k_h,
                        preferred_element_type=jnp.float32) * scaling    # (nH, S, S) f32
    if has_mask:
        scores = scores + mask_ref[...]                      # (1, S, S) additive mask
    # NOTE: the reference builds no causal mask; None -> full bidirectional attention.
    probs = jax.nn.softmax(scores, axis=-1)                  # f32; dropout p=0 -> identity
    ctx = jnp.einsum('hqk,hkd->hqd', probs.astype(wdt), v_h,
                     preferred_element_type=jnp.float32)     # (nH, S, D) f32

    ctx2 = jnp.concatenate([ctx[h] for h in range(nH)], axis=-1)         # (S, H) lane-dense
    attn = jnp.dot(ctx2.astype(wdt), wo_ref[...],
                   preferred_element_type=jnp.float32)       # o_proj, (S, H) f32
    h1 = x + attn                                            # residual add (f32)

    # ---- post-attention RMSNorm + fused [gate|up] matmul + SiLU + down proj + residual ----
    var2 = jnp.mean(h1 * h1, axis=-1, keepdims=True)
    hn = (h1 * jax.lax.rsqrt(var2 + eps)) * ln2_ref[...]
    gu = jnp.dot(hn.astype(wdt), wgu_ref[...],
                 preferred_element_type=jnp.float32)         # (S, 2I) f32
    g = gu[:, :inter]
    u = gu[:, inter:]
    mlp = (g * jax.nn.sigmoid(g)) * u                        # SiLU in f32
    out = h1 + jnp.dot(mlp.astype(wdt), wd_ref[...],
                       preferred_element_type=jnp.float32)
    o_ref[...] = out.astype(o_ref.dtype)
    # TODO(synk): at real Llama sizes this single-call layer needs (tm,tn,tk)-blocked,
    #             pipelined matmuls sized per-generation VMEM (64 MiB on v7x) plus a
    #             flash-style online-softmax attention; at this toy size everything fits
    #             whole in VMEM so blocking would only add per-step overhead.


def _ln_matmul_kernel(x_ref, g_ref, wt_ref, o_ref, *, eps):
    """Fused RMSNorm(x) @ W_t  (used for final norm + lm_head)."""
    x = x_ref[...].astype(jnp.float32)
    var = jnp.mean(x * x, axis=-1, keepdims=True)
    xn = (x * jax.lax.rsqrt(var + eps)) * g_ref[...]
    o_ref[...] = jnp.dot(xn.astype(wt_ref.dtype), wt_ref[...],
                         preferred_element_type=jnp.float32).astype(o_ref.dtype)


# ----------------------------- kernel wrappers -----------------------------
def decoder_layer(hs2d, p, cos4, sin4, mask, cfg: LlamaConfig, batch, seqlen):
    H, I = cfg.hidden_size, cfg.intermediate_size
    nH = cfg.num_attention_heads
    D = H // nH
    B, S = batch, seqlen
    scaling = D ** (-0.5)

    kern = functools.partial(
        _decoder_layer_kernel, eps=cfg.rms_norm_eps, num_heads=nH, head_dim=D,
        hidden=H, inter=I, scaling=scaling, has_mask=mask is not None)

    in_specs = [
        pl.BlockSpec((S, H), lambda b: (b, 0)),               # hidden states / residual
        pl.BlockSpec((1, nH, 1, D), lambda b: (b, 0, 0, 0)),  # cos (head-indexed rows)
        pl.BlockSpec((1, nH, 1, D), lambda b: (b, 0, 0, 0)),  # sin
        pl.BlockSpec((1, H), lambda b: (0, 0)),               # input_layernorm weight
        pl.BlockSpec((H, 3 * H), lambda b: (0, 0)),           # fused Wq|Wk|Wv (transposed)
        pl.BlockSpec((H, H), lambda b: (0, 0)),               # Wo (transposed)
        pl.BlockSpec((1, H), lambda b: (0, 0)),               # post_attention_layernorm weight
        pl.BlockSpec((H, 2 * I), lambda b: (0, 0)),           # fused Wgate|Wup (transposed)
        pl.BlockSpec((I, H), lambda b: (0, 0)),               # Wdown (transposed)
    ]
    args = [hs2d, cos4, sin4,
            p["input_ln"].reshape(1, H), p["wqkv_t"], p["wo_t"],
            p["post_ln"].reshape(1, H), p["wgu_t"], p["wd_t"]]
    if mask is not None:
        in_specs.append(pl.BlockSpec((1, S, S), lambda b: (b, 0, 0)))
        args.append(mask)

    flops = (2 * B * S * H * (3 * H + H + 2 * I) + 2 * B * S * I * H
             + 4 * B * nH * S * S * D)
    weight_bytes = 2 * (3 * H * H + H * H + 2 * H * I + I * H)
    cost = pl.CostEstimate(flops=flops,
                           transcendentals=B * (nH * S * S + S * I),
                           bytes_accessed=weight_bytes + 4 * B * S * H)

    return pl.pallas_call(
        kern,
        out_shape=jax.ShapeDtypeStruct((B * S, H), hs2d.dtype),
        grid=(B,),
        in_specs=in_specs,
        out_specs=pl.BlockSpec((S, H), lambda b: (b, 0)),
        input_output_aliases={0: 0},          # residual buffer reused in place
        compiler_params=pltpu.CompilerParams(dimension_semantics=("parallel",)),
        cost_estimate=cost,
    )(*args)


def ln_matmul(x2d, gamma, w_t, eps, out_dtype):
    M, K = x2d.shape
    N = w_t.shape[1]
    cost = pl.CostEstimate(flops=2 * M * K * N, transcendentals=M,
                           bytes_accessed=2 * K * N + 2 * M * K + 4 * M * N)
    return pl.pallas_call(
        functools.partial(_ln_matmul_kernel, eps=eps),
        out_shape=jax.ShapeDtypeStruct((M, N), out_dtype),
        in_specs=[_VMEM, _VMEM, _VMEM],
        out_specs=_VMEM,
        cost_estimate=cost,
    )(x2d, gamma.reshape(1, -1).astype(jnp.float32), w_t)


# ----------------------------- plain-JAX glue -----------------------------
def rotary_embedding(position_ids, head_dim):
    inv_freq = 1.0 / (10000.0 ** (jnp.arange(0, head_dim, 2, dtype=jnp.float32) / head_dim))
    freqs = position_ids[..., None].astype(jnp.float32) * inv_freq[None, None, :]  # (B,S,D/2)
    emb = jnp.concatenate([freqs, freqs], axis=-1)                                 # (B,S,D)
    return jnp.cos(emb), jnp.sin(emb)


def llama_forward(params, input_ids, cfg: LlamaConfig,
                  attention_mask=None, position_ids=None, labels=None):
    B, S = input_ids.shape
    H, V = cfg.hidden_size, cfg.vocab_size
    nH, nKV = cfg.num_attention_heads, cfg.num_key_value_heads
    D = H // nH
    assert nH == nKV == S, (
        "reference apply_rotary_pos_emb(unsqueeze_dim=2) broadcast requires "
        "num_heads == num_kv_heads == seqlen (then n_rep == 1)")

    hs = params["embed"][input_ids].reshape(B * S, H)        # embedding gather (plain JAX glue)

    if position_ids is None:
        position_ids = jnp.broadcast_to(jnp.arange(S, dtype=jnp.int32)[None, :], (B, S))
    cos, sin = rotary_embedding(position_ids, D)             # (B, S == nH, D) f32
    cos4 = cos.reshape(B, nH, 1, D)                          # head-indexed rows, bcast over seq
    sin4 = sin.reshape(B, nH, 1, D)

    if attention_mask is None:
        mask = None                                          # compile-time skip: no mask operand
    else:
        # Reference adds the mask directly to the scores -> it must already be ADDITIVE
        # and broadcastable against (B, nH, S, S).
        m = jnp.asarray(attention_mask, jnp.float32)
        if m.ndim == 4:
            m = m[:, 0]
        mask = jnp.broadcast_to(m, (B, S, S))

    for layer_p in params["layers"]:
        hs = decoder_layer(hs, layer_p, cos4, sin4, mask, cfg, B, S)

    # final RMSNorm fused into the lm_head matmul (f32 logits at this toy vocab size).
    # TODO(synk): at real vocab sizes emit bf16 logits or block over V and fuse the
    #             log_softmax/loss epilogue instead of a full f32 (B*S, V) HBM writeback.
    logits = ln_matmul(hs, params["norm"], params["lm_head_t"],
                       cfg.rms_norm_eps, jnp.float32).reshape(B, S, V)

    loss = None
    if labels is not None:
        shift_logits = logits[:, :-1, :].reshape(-1, V)
        shift_labels = labels[:, 1:].reshape(-1)
        valid = shift_labels != -100
        logp = jax.nn.log_softmax(shift_logits, axis=-1)
        picked = jnp.take_along_axis(
            logp, jnp.clip(shift_labels, 0, V - 1)[:, None], axis=-1)[:, 0]
        loss = -jnp.sum(jnp.where(valid, picked, 0.0)) / jnp.maximum(jnp.sum(valid), 1)
    return {"logits": logits, "loss": loss}


# ----------------------------- deterministic parameter init -----------------------------
def init_params(key, cfg: LlamaConfig):
    H, I, V = cfg.hidden_size, cfg.intermediate_size, cfg.vocab_size
    nH, nKV = cfg.num_attention_heads, cfg.num_key_value_heads
    D = H // nH
    std = cfg.initializer_range

    def nrm(k, shape):
        return (jax.random.normal(k, shape, dtype=jnp.float32) * std).astype(jnp.bfloat16)

    keys = jax.random.split(key, 2 + 4 * cfg.num_hidden_layers)
    ki = iter(keys)
    params = {
        "embed": nrm(next(ki), (V, H)),
        "norm": jnp.ones((H,), jnp.float32),
        "lm_head_t": nrm(next(ki), (H, V)),
        "layers": [],
    }
    for _ in range(cfg.num_hidden_layers):
        params["layers"].append({
            # q/k/v fused into one [H, (nH + 2*nKV)*D] weight (single lane-dense matmul)
            "wqkv_t": nrm(next(ki), (H, (nH + 2 * nKV) * D)),
            "wo_t": nrm(next(ki), (nH * D, H)),
            # gate/up fused into one [H, 2*I] weight
            "wgu_t": nrm(next(ki), (H, 2 * I)),
            "wd_t": nrm(next(ki), (I, H)),
            "input_ln": jnp.ones((H,), jnp.float32),
            "post_ln": jnp.ones((H,), jnp.float32),
        })
    # TODO(synk): on v7x at real sizes, store the matmul weights in fp8 with per-channel
    #             scales applied in the f32 epilogue (keep bf16 on v5e/v6e).
    return params


# ----------------------------- main -----------------------------
if __name__ == "__main__":
    cfg = LlamaConfig()
    key = jax.random.PRNGKey(0)
    k_param, k_ids = jax.random.split(key)
    params = init_params(k_param, cfg)

    batch, seq = 2, 8
    assert seq == cfg.num_attention_heads == cfg.num_key_value_heads, \
        "reference rope broadcast (unsqueeze_dim=2) requires seqlen == num_heads == num_kv_heads"
    input_ids = jax.random.randint(k_ids, (batch, seq), 0, cfg.vocab_size, dtype=jnp.int32)

    fwd = jax.jit(functools.partial(llama_forward, cfg=cfg))
    out = fwd(params, input_ids)
    logits = jax.block_until_ready(out["logits"])
    assert logits.shape == (batch, seq, cfg.vocab_size)
    assert bool(jnp.all(jnp.isfinite(logits)))
    print("KERNEL_OK")
</pallas_src>

<mosaic_0001>
module attributes {stable_mosaic.version = 11 : i64} {
  func.func @_decoder_layer_kernel(%arg0: i32, %arg1: memref<8x128xbf16, #tpu.memory_space<vmem>>, %arg2: memref<1x8x1x16xf32, #tpu.memory_space<vmem>>, %arg3: memref<1x8x1x16xf32, #tpu.memory_space<vmem>>, %arg4: memref<1x128xf32, #tpu.memory_space<vmem>>, %arg5: memref<128x384xbf16, #tpu.memory_space<vmem>>, %arg6: memref<128x128xbf16, #tpu.memory_space<vmem>>, %arg7: memref<1x128xf32, #tpu.memory_space<vmem>>, %arg8: memref<128x512xbf16, #tpu.memory_space<vmem>>, %arg9: memref<256x128xbf16, #tpu.memory_space<vmem>>, %arg10: memref<8x128xbf16, #tpu.memory_space<vmem>>) attributes {dimension_semantics = [#tpu.dimension_semantics<parallel>], iteration_bounds = array<i64: 2>, scalar_prefetch = 0 : i64, scratch_operands = 0 : i64, tpu.core_type = #tpu.core_type<tc>, window_params = [{transform_indices = @transform_0, window_bounds = array<i64: 8, 128>}, {transform_indices = @transform_1, window_bounds = array<i64: 1, 8, 1, 16>}, {transform_indices = @transform_2, window_bounds = array<i64: 1, 8, 1, 16>}, {pipeline_mode = #tpu.pipeline_mode<synchronous>, transform_indices = @transform_3, window_bounds = array<i64: 1, 128>}, {pipeline_mode = #tpu.pipeline_mode<synchronous>, transform_indices = @transform_4, window_bounds = array<i64: 128, 384>}, {pipeline_mode = #tpu.pipeline_mode<synchronous>, transform_indices = @transform_5, window_bounds = array<i64: 128, 128>}, {pipeline_mode = #tpu.pipeline_mode<synchronous>, transform_indices = @transform_6, window_bounds = array<i64: 1, 128>}, {pipeline_mode = #tpu.pipeline_mode<synchronous>, transform_indices = @transform_7, window_bounds = array<i64: 128, 512>}, {pipeline_mode = #tpu.pipeline_mode<synchronous>, transform_indices = @transform_8, window_bounds = array<i64: 256, 128>}, {transform_indices = @transform_9, window_bounds = array<i64: 8, 128>}]} {
    %c0 = arith.constant 0 : index
    %c0_0 = arith.constant 0 : index
    %0 = vector.load %arg1[%c0, %c0_0] : memref<8x128xbf16, #tpu.memory_space<vmem>>, vector<8x128xbf16>
    %1 = arith.extf %0 : vector<8x128xbf16> to vector<8x128xf32>
    %2 = arith.mulf %1, %1 : vector<8x128xf32>
    %cst = arith.constant dense<0.000000e+00> : vector<8xf32>
    %3 = vector.multi_reduction <add>, %2, %cst [1] : vector<8x128xf32> to vector<8xf32>
    %4 = vector.shape_cast %3 : vector<8xf32> to vector<8x1xf32>
    %cst_1 = arith.constant 1.280000e+02 : f32
    %5 = vector.broadcast %cst_1 : f32 to vector<8x1xf32>
    %6 = arith.divf %4, %5 : vector<8x1xf32>
    %cst_2 = arith.constant 9.99999997E-7 : f32
    %7 = vector.broadcast %cst_2 : f32 to vector<8x1xf32>
    %8 = arith.addf %6, %7 : vector<8x1xf32>
    %9 = math.rsqrt %8 : vector<8x1xf32>
    %10 = vector.broadcast %9 : vector<8x1xf32> to vector<8x128xf32>
    %11 = arith.mulf %1, %10 : vector<8x128xf32>
    %c0_3 = arith.constant 0 : index
    %c0_4 = arith.constant 0 : index
    %12 = vector.load %arg4[%c0_3, %c0_4] : memref<1x128xf32, #tpu.memory_space<vmem>>, vector<1x128xf32>
    %13 = vector.broadcast %12 : vector<1x128xf32> to vector<8x128xf32>
    %14 = arith.mulf %11, %13 : vector<8x128xf32>
    %15 = arith.truncf %14 : vector<8x128xf32> to vector<8x128xbf16>
    %c0_5 = arith.constant 0 : index
    %c0_6 = arith.constant 0 : index
    %16 = vector.load %arg5[%c0_5, %c0_6] : memref<128x384xbf16, #tpu.memory_space<vmem>>, vector<128x384xbf16>
    %cst_7 = arith.constant dense<0.000000e+00> : vector<8x384xf32>
    %17 = tpu.matmul %15, %16, %cst_7 {dimension_numbers = #tpu.dot_dimension_numbers<[1], [0], [0], [1], [0, 0, 1, 1], [], []>} : vector<8x128xbf16>, vector<128x384xbf16>, vector<8x384xf32> -> vector<8x384xf32>
    %c0_8 = arith.constant 0 : index
    %c0_9 = arith.constant 0 : index
    %c0_10 = arith.constant 0 : index
    %c0_11 = arith.constant 0 : index
    %18 = vector.load %arg2[%c0_8, %c0_9, %c0_10, %c0_11] : memref<1x8x1x16xf32, #tpu.memory_space<vmem>>, vector<1x8x1x16xf32>
    %19 = vector.shape_cast %18 : vector<1x8x1x16xf32> to vector<8x1x16xf32>
    %c0_12 = arith.constant 0 : index
    %c0_13 = arith.constant 0 : index
    %c0_14 = arith.constant 0 : index
    %c0_15 = arith.constant 0 : index
    %20 = vector.load %arg3[%c0_12, %c0_13, %c0_14, %c0_15] : memref<1x8x1x16xf32, #tpu.memory_space<vmem>>, vector<1x8x1x16xf32>
    %21 = vector.shape_cast %20 : vector<1x8x1x16xf32> to vector<8x1x16xf32>
    %22 = vector.extract_strided_slice %17 {offsets = [0, 0], sizes = [8, 128], strides = [1, 1]} : vector<8x384xf32> to vector<8x128xf32>
    %23 = vector.extract_strided_slice %22 {offsets = [0, 0], sizes = [8, 16], strides = [1, 1]} : vector<8x128xf32> to vector<8x16xf32>
    %24 = vector.extract_strided_slice %22 {offsets = [0, 16], sizes = [8, 16], strides = [1, 1]} : vector<8x128xf32> to vector<8x16xf32>
    %25 = vector.extract_strided_slice %22 {offsets = [0, 32], sizes = [8, 16], strides = [1, 1]} : vector<8x128xf32> to vector<8x16xf32>
    %26 = vector.extract_strided_slice %22 {offsets = [0, 48], sizes = [8, 16], strides = [1, 1]} : vector<8x128xf32> to vector<8x16xf32>
    %27 = vector.extract_strided_slice %22 {offsets = [0, 64], sizes = [8, 16], strides = [1, 1]} : vector<8x128xf32> to vector<8x16xf32>
    %28 = vector.extract_strided_slice %22 {offsets = [0, 80], sizes = [8, 16], strides = [1, 1]} : vector<8x128xf32> to vector<8x16xf32>
    %29 = vector.extract_strided_slice %22 {offsets = [0, 96], sizes = [8, 16], strides = [1, 1]} : vector<8x128xf32> to vector<8x16xf32>
    %30 = vector.extract_strided_slice %22 {offsets = [0, 112], sizes = [8, 16], strides = [1, 1]} : vector<8x128xf32> to vector<8x16xf32>
    %31 = vector.shape_cast %23 : vector<8x16xf32> to vector<1x8x16xf32>
    %32 = vector.shape_cast %24 : vector<8x16xf32> to vector<1x8x16xf32>
    %33 = vector.shape_cast %25 : vector<8x16xf32> to vector<1x8x16xf32>
    %34 = vector.shape_cast %26 : vector<8x16xf32> to vector<1x8x16xf32>
    %35 = vector.shape_cast %27 : vector<8x16xf32> to vector<1x8x16xf32>
    %36 = vector.shape_cast %28 : vector<8x16xf32> to vector<1x8x16xf32>
    %37 = vector.shape_cast %29 : vector<8x16xf32> to vector<1x8x16xf32>
    %38 = vector.shape_cast %30 : vector<8x16xf32> to vector<1x8x16xf32>
    %39 = tpu.concatenate %31, %32, %33, %34, %35, %36, %37, %38 in 0 : vector<1x8x16xf32>, vector<1x8x16xf32>, vector<1x8x16xf32>, vector<1x8x16xf32>, vector<1x8x16xf32>, vector<1x8x16xf32>, vector<1x8x16xf32>, vector<1x8x16xf32> -> vector<8x8x16xf32>
    %40 = vector.extract_strided_slice %39 {offsets = [0, 0, 8], sizes = [8, 8, 8], strides = [1, 1, 1]} : vector<8x8x16xf32> to vector<8x8x8xf32>
    %cst_16 = arith.constant 0.000000e+00 : f32
    %41 = vector.broadcast %cst_16 : f32 to vector<8x8x8xf32>
    %42 = arith.subf %41, %40 : vector<8x8x8xf32>
    %43 = vector.extract_strided_slice %39 {offsets = [0, 0, 0], sizes = [8, 8, 8], strides = [1, 1, 1]} : vector<8x8x16xf32> to vector<8x8x8xf32>
    %44 = tpu.concatenate %42, %43 in 2 : vector<8x8x8xf32>, vector<8x8x8xf32> -> vector<8x8x16xf32>
    %45 = vector.broadcast %19 : vector<8x1x16xf32> to vector<8x8x16xf32>
    %46 = arith.mulf %39, %45 : vector<8x8x16xf32>
    %47 = vector.broadcast %21 : vector<8x1x16xf32> to vector<8x8x16xf32>
    %48 = arith.mulf %44, %47 : vector<8x8x16xf32>
    %49 = arith.addf %46, %48 : vector<8x8x16xf32>
    %50 = arith.truncf %49 : vector<8x8x16xf32> to vector<8x8x16xbf16>
    %51 = vector.extract_strided_slice %17 {offsets = [0, 128], sizes = [8, 128], strides = [1, 1]} : vector<8x384xf32> to vector<8x128xf32>
    %52 = vector.extract_strided_slice %51 {offsets = [0, 0], sizes = [8, 16], strides = [1, 1]} : vector<8x128xf32> to vector<8x16xf32>
    %53 = vector.extract_strided_slice %51 {offsets = [0, 16], sizes = [8, 16], strides = [1, 1]} : vector<8x128xf32> to vector<8x16xf32>
    %54 = vector.extract_strided_slice %51 {offsets = [0, 32], sizes = [8, 16], strides = [1, 1]} : vector<8x128xf32> to vector<8x16xf32>
    %55 = vector.extract_strided_slice %51 {offsets = [0, 48], sizes = [8, 16], strides = [1, 1]} : vector<8x128xf32> to vector<8x16xf32>
    %56 = vector.extract_strided_slice %51 {offsets = [0, 64], sizes = [8, 16], strides = [1, 1]} : vector<8x128xf32> to vector<8x16xf32>
    %57 = vector.extract_strided_slice %51 {offsets = [0, 80], sizes = [8, 16], strides = [1, 1]} : vector<8x128xf32> to vector<8x16xf32>
    %58 = vector.extract_strided_slice %51 {offsets = [0, 96], sizes = [8, 16], strides = [1, 1]} : vector<8x128xf32> to vector<8x16xf32>
    %59 = vector.extract_strided_slice %51 {offsets = [0, 112], sizes = [8, 16], strides = [1, 1]} : vector<8x128xf32> to vector<8x16xf32>
    %60 = vector.shape_cast %52 : vector<8x16xf32> to vector<1x8x16xf32>
    %61 = vector.shape_cast %53 : vector<8x16xf32> to vector<1x8x16xf32>
    %62 = vector.shape_cast %54 : vector<8x16xf32> to vector<1x8x16xf32>
    %63 = vector.shape_cast %55 : vector<8x16xf32> to vector<1x8x16xf32>
    %64 = vector.shape_cast %56 : vector<8x16xf32> to vector<1x8x16xf32>
    %65 = vector.shape_cast %57 : vector<8x16xf32> to vector<1x8x16xf32>
    %66 = vector.shape_cast %58 : vector<8x16xf32> to vector<1x8x16xf32>
    %67 = vector.shape_cast %59 : vector<8x16xf32> to vector<1x8x16xf32>
    %68 = tpu.concatenate %60, %61, %62, %63, %64, %65, %66, %67 in 0 : vector<1x8x16xf32>, vector<1x8x16xf32>, vector<1x8x16xf32>, vector<1x8x16xf32>, vector<1x8x16xf32>, vector<1x8x16xf32>, vector<1x8x16xf32>, vector<1x8x16xf32> -> vector<8x8x16xf32>
    %69 = vector.extract_strided_slice %68 {offsets = [0, 0, 8], sizes = [8, 8, 8], strides = [1, 1, 1]} : vector<8x8x16xf32> to vector<8x8x8xf32>
    %cst_17 = arith.constant 0.000000e+00 : f32
    %70 = vector.broadcast %cst_17 : f32 to vector<8x8x8xf32>
    %71 = arith.subf %70, %69 : vector<8x8x8xf32>
    %72 = vector.extract_strided_slice %68 {offsets = [0, 0, 0], sizes = [8, 8, 8], strides = [1, 1, 1]} : vector<8x8x16xf32> to vector<8x8x8xf32>
    %73 = tpu.concatenate %71, %72 in 2 : vector<8x8x8xf32>, vector<8x8x8xf32> -> vector<8x8x16xf32>
    %74 = vector.broadcast %19 : vector<8x1x16xf32> to vector<8x8x16xf32>
    %75 = arith.mulf %68, %74 : vector<8x8x16xf32>
    %76 = vector.broadcast %21 : vector<8x1x16xf32> to vector<8x8x16xf32>
    %77 = arith.mulf %73, %76 : vector<8x8x16xf32>
    %78 = arith.addf %75, %77 : vector<8x8x16xf32>
    %79 = arith.truncf %78 : vector<8x8x16xf32> to vector<8x8x16xbf16>
    %80 = vector.extract_strided_slice %17 {offsets = [0, 256], sizes = [8, 128], strides = [1, 1]} : vector<8x384xf32> to vector<8x128xf32>
    %81 = vector.extract_strided_slice %80 {offsets = [0, 0], sizes = [8, 16], strides = [1, 1]} : vector<8x128xf32> to vector<8x16xf32>
    %82 = vector.extract_strided_slice %80 {offsets = [0, 16], sizes = [8, 16], strides = [1, 1]} : vector<8x128xf32> to vector<8x16xf32>
    %83 = vector.extract_strided_slice %80 {offsets = [0, 32], sizes = [8, 16], strides = [1, 1]} : vector<8x128xf32> to vector<8x16xf32>
    %84 = vector.extract_strided_slice %80 {offsets = [0, 48], sizes = [8, 16], strides = [1, 1]} : vector<8x128xf32> to vector<8x16xf32>
    %85 = vector.extract_strided_slice %80 {offsets = [0, 64], sizes = [8, 16], strides = [1, 1]} : vector<8x128xf32> to vector<8x16xf32>
    %86 = vector.extract_strided_slice %80 {offsets = [0, 80], sizes = [8, 16], strides = [1, 1]} : vector<8x128xf32> to vector<8x16xf32>
    %87 = vector.extract_strided_slice %80 {offsets = [0, 96], sizes = [8, 16], strides = [1, 1]} : vector<8x128xf32> to vector<8x16xf32>
    %88 = vector.extract_strided_slice %80 {offsets = [0, 112], sizes = [8, 16], strides = [1, 1]} : vector<8x128xf32> to vector<8x16xf32>
    %89 = vector.shape_cast %81 : vector<8x16xf32> to vector<1x8x16xf32>
    %90 = vector.shape_cast %82 : vector<8x16xf32> to vector<1x8x16xf32>
    %91 = vector.shape_cast %83 : vector<8x16xf32> to vector<1x8x16xf32>
    %92 = vector.shape_cast %84 : vector<8x16xf32> to vector<1x8x16xf32>
    %93 = vector.shape_cast %85 : vector<8x16xf32> to vector<1x8x16xf32>
    %94 = vector.shape_cast %86 : vector<8x16xf32> to vector<1x8x16xf32>
    %95 = vector.shape_cast %87 : vector<8x16xf32> to vector<1x8x16xf32>
    %96 = vector.shape_cast %88 : vector<8x16xf32> to vector<1x8x16xf32>
    %97 = tpu.concatenate %89, %90, %91, %92, %93, %94, %95, %96 in 0 : vector<1x8x16xf32>, vector<1x8x16xf32>, vector<1x8x16xf32>, vector<1x8x16xf32>, vector<1x8x16xf32>, vector<1x8x16xf32>, vector<1x8x16xf32>, vector<1x8x16xf32> -> vector<8x8x16xf32>
    %98 = arith.truncf %97 : vector<8x8x16xf32> to vector<8x8x16xbf16>
    "tpu.trace_start"() <{level = 10 : i32, message = "hqd,hkd->hqk"}> : () -> ()
    %cst_18 = arith.constant dense<0.000000e+00> : vector<8x8x8xf32>
    %99 = tpu.matmul %50, %79, %cst_18 {dimension_numbers = #tpu.dot_dimension_numbers<[2], [2], [1], [1], [0, 0, 0, 1, 1, 1], [0], [0]>} : vector<8x8x16xbf16>, vector<8x8x16xbf16>, vector<8x8x8xf32> -> vector<8x8x8xf32>
    "tpu.trace_stop"() : () -> ()
    %cst_19 = arith.constant 2.500000e-01 : f32
    %100 = vector.broadcast %cst_19 : f32 to vector<8x8x8xf32>
    %101 = arith.mulf %99, %100 : vector<8x8x8xf32>
    %cst_20 = arith.constant dense<0xFF800000> : vector<8x8xf32>
    %102 = vector.multi_reduction <maximumf>, %101, %cst_20 [2] : vector<8x8x8xf32> to vector<8x8xf32>
    %cst_21 = arith.constant 0xFF800000 : f32
    %103 = vector.broadcast %cst_21 : f32 to vector<8x8xf32>
    %104 = arith.maximumf %103, %102 : vector<8x8xf32>
    %105 = vector.shape_cast %104 : vector<8x8xf32> to vector<8x8x1xf32>
    %106 = vector.broadcast %105 : vector<8x8x1xf32> to vector<8x8x8xf32>
    %107 = arith.subf %101, %106 : vector<8x8x8xf32>
    %108 = math.exp %107 : vector<8x8x8xf32>
    %cst_22 = arith.constant dense<0.000000e+00> : vector<8x8xf32>
    %109 = vector.multi_reduction <add>, %108, %cst_22 [2] : vector<8x8x8xf32> to vector<8x8xf32>
    %110 = vector.shape_cast %109 : vector<8x8xf32> to vector<8x8x1xf32>
    %111 = vector.broadcast %110 : vector<8x8x1xf32> to vector<8x8x8xf32>
    %112 = arith.divf %108, %111 : vector<8x8x8xf32>
    %113 = arith.truncf %112 : vector<8x8x8xf32> to vector<8x8x8xbf16>
    "tpu.trace_start"() <{level = 10 : i32, message = "hqk,hkd->hqd"}> : () -> ()
    %cst_23 = arith.constant dense<0.000000e+00> : vector<8x8x16xf32>
    %114 = tpu.matmul %113, %98, %cst_23 {dimension_numbers = #tpu.dot_dimension_numbers<[2], [1], [1], [2], [0, 0, 0, 1, 1, 2], [0], [0]>} : vector<8x8x8xbf16>, vector<8x8x16xbf16>, vector<8x8x16xf32> -> vector<8x8x16xf32>
    "tpu.trace_stop"() : () -> ()
    %115 = vector.extract_strided_slice %114 {offsets = [0, 0, 0], sizes = [1, 8, 16], strides = [1, 1, 1]} : vector<8x8x16xf32> to vector<1x8x16xf32>
    %116 = vector.shape_cast %115 : vector<1x8x16xf32> to vector<8x16xf32>
    %117 = vector.extract_strided_slice %114 {offsets = [1, 0, 0], sizes = [1, 8, 16], strides = [1, 1, 1]} : vector<8x8x16xf32> to vector<1x8x16xf32>
    %118 = vector.shape_cast %117 : vector<1x8x16xf32> to vector<8x16xf32>
    %119 = vector.extract_strided_slice %114 {offsets = [2, 0, 0], sizes = [1, 8, 16], strides = [1, 1, 1]} : vector<8x8x16xf32> to vector<1x8x16xf32>
    %120 = vector.shape_cast %119 : vector<1x8x16xf32> to vector<8x16xf32>
    %121 = vector.extract_strided_slice %114 {offsets = [3, 0, 0], sizes = [1, 8, 16], strides = [1, 1, 1]} : vector<8x8x16xf32> to vector<1x8x16xf32>
    %122 = vector.shape_cast %121 : vector<1x8x16xf32> to vector<8x16xf32>
    %123 = vector.extract_strided_slice %114 {offsets = [4, 0, 0], sizes = [1, 8, 16], strides = [1, 1, 1]} : vector<8x8x16xf32> to vector<1x8x16xf32>
    %124 = vector.shape_cast %123 : vector<1x8x16xf32> to vector<8x16xf32>
    %125 = vector.extract_strided_slice %114 {offsets = [5, 0, 0], sizes = [1, 8, 16], strides = [1, 1, 1]} : vector<8x8x16xf32> to vector<1x8x16xf32>
    %126 = vector.shape_cast %125 : vector<1x8x16xf32> to vector<8x16xf32>
    %127 = vector.extract_strided_slice %114 {offsets = [6, 0, 0], sizes = [1, 8, 16], strides = [1, 1, 1]} : vector<8x8x16xf32> to vector<1x8x16xf32>
    %128 = vector.shape_cast %127 : vector<1x8x16xf32> to vector<8x16xf32>
    %129 = vector.extract_strided_slice %114 {offsets = [7, 0, 0], sizes = [1, 8, 16], strides = [1, 1, 1]} : vector<8x8x16xf32> to vector<1x8x16xf32>
    %130 = vector.shape_cast %129 : vector<1x8x16xf32> to vector<8x16xf32>
    %131 = tpu.concatenate %116, %118, %120, %122, %124, %126, %128, %130 in 1 : vector<8x16xf32>, vector<8x16xf32>, vector<8x16xf32>, vector<8x16xf32>, vector<8x16xf32>, vector<8x16xf32>, vector<8x16xf32>, vector<8x16xf32> -> vector<8x128xf32>
    %132 = arith.truncf %131 : vector<8x128xf32> to vector<8x128xbf16>
    %c0_24 = arith.constant 0 : index
    %c0_25 = arith.constant 0 : index
    %133 = vector.load %arg6[%c0_24, %c0_25] : memref<128x128xbf16, #tpu.memory_space<vmem>>, vector<128x128xbf16>
    %cst_26 = arith.constant dense<0.000000e+00> : vector<8x128xf32>
    %134 = tpu.matmul %132, %133, %cst_26 {dimension_numbers = #tpu.dot_dimension_numbers<[1], [0], [0], [1], [0, 0, 1, 1], [], []>} : vector<8x128xbf16>, vector<128x128xbf16>, vector<8x128xf32> -> vector<8x128xf32>
    %135 = arith.addf %1, %134 : vector<8x128xf32>
    %136 = arith.mulf %135, %135 : vector<8x128xf32>
    %cst_27 = arith.constant dense<0.000000e+00> : vector<8xf32>
    %137 = vector.multi_reduction <add>, %136, %cst_27 [1] : vector<8x128xf32> to vector<8xf32>
    %138 = vector.shape_cast %137 : vector<8xf32> to vector<8x1xf32>
    %cst_28 = arith.constant 1.280000e+02 : f32
    %139 = vector.broadcast %cst_28 : f32 to vector<8x1xf32>
    %140 = arith.divf %138, %139 : vector<8x1xf32>
    %cst_29 = arith.constant 9.99999997E-7 : f32
    %141 = vector.broadcast %cst_29 : f32 to vector<8x1xf32>
    %142 = arith.addf %140, %141 : vector<8x1xf32>
    %143 = math.rsqrt %142 : vector<8x1xf32>
    %144 = vector.broadcast %143 : vector<8x1xf32> to vector<8x128xf32>
    %145 = arith.mulf %135, %144 : vector<8x128xf32>
    %c0_30 = arith.constant 0 : index
    %c0_31 = arith.constant 0 : index
    %146 = vector.load %arg7[%c0_30, %c0_31] : memref<1x128xf32, #tpu.memory_space<vmem>>, vector<1x128xf32>
    %147 = vector.broadcast %146 : vector<1x128xf32> to vector<8x128xf32>
    %148 = arith.mulf %145, %147 : vector<8x128xf32>
    %149 = arith.truncf %148 : vector<8x128xf32> to vector<8x128xbf16>
    %c0_32 = arith.constant 0 : index
    %c0_33 = arith.constant 0 : index
    %150 = vector.load %arg8[%c0_32, %c0_33] : memref<128x512xbf16, #tpu.memory_space<vmem>>, vector<128x512xbf16>
    %cst_34 = arith.constant dense<0.000000e+00> : vector<8x512xf32>
    %151 = tpu.matmul %149, %150, %cst_34 {dimension_numbers = #tpu.dot_dimension_numbers<[1], [0], [0], [1], [0, 0, 1, 1], [], []>} : vector<8x128xbf16>, vector<128x512xbf16>, vector<8x512xf32> -> vector<8x512xf32>
    %152 = vector.extract_strided_slice %151 {offsets = [0, 0], sizes = [8, 256], strides = [1, 1]} : vector<8x512xf32> to vector<8x256xf32>
    %153 = vector.extract_strided_slice %151 {offsets = [0, 256], sizes = [8, 256], strides = [1, 1]} : vector<8x512xf32> to vector<8x256xf32>
    %154 = arith.negf %152 : vector<8x256xf32>
    %155 = math.exp %154 : vector<8x256xf32>
    %cst_35 = arith.constant 1.000000e+00 : f32
    %156 = vector.broadcast %cst_35 : f32 to vector<8x256xf32>
    %157 = arith.addf %156, %155 : vector<8x256xf32>
    %158 = arith.divf %156, %157 : vector<8x256xf32>
    %159 = arith.mulf %152, %158 : vector<8x256xf32>
    %160 = arith.mulf %159, %153 : vector<8x256xf32>
    %161 = arith.truncf %160 : vector<8x256xf32> to vector<8x256xbf16>
    %c0_36 = arith.constant 0 : index
    %c0_37 = arith.constant 0 : index
    %162 = vector.load %arg9[%c0_36, %c0_37] : memref<256x128xbf16, #tpu.memory_space<vmem>>, vector<256x128xbf16>
    %cst_38 = arith.constant dense<0.000000e+00> : vector<8x128xf32>
    %163 = tpu.matmul %161, %162, %cst_38 {dimension_numbers = #tpu.dot_dimension_numbers<[1], [0], [0], [1], [0, 0, 1, 1], [], []>} : vector<8x256xbf16>, vector<256x128xbf16>, vector<8x128xf32> -> vector<8x128xf32>
    %164 = arith.addf %135, %163 : vector<8x128xf32>
    %165 = arith.truncf %164 : vector<8x128xf32> to vector<8x128xbf16>
    %c0_39 = arith.constant 0 : index
    %c0_40 = arith.constant 0 : index
    %166 = vector.load %arg10[%c0_39, %c0_40] : memref<8x128xbf16, #tpu.memory_space<vmem>>, vector<8x128xbf16>
    tpu.vector_store %arg10[%c0_39, %c0_40], %165 {strides = array<i32>} : memref<8x128xbf16, #tpu.memory_space<vmem>>, vector<8x128xbf16>,
    return
  }
  func.func @transform_0(%arg0: i32) -> (i32, i32) {
    %c0_i32 = arith.constant 0 : i32
    %c0_i32_0 = arith.constant 0 : i32
    return %arg0, %c0_i32 : i32, i32
  }
  func.func @transform_1(%arg0: i32) -> (i32, i32, i32, i32) {
    %c0_i32 = arith.constant 0 : i32
    %c0_i32_0 = arith.constant 0 : i32
    %c0_i32_1 = arith.constant 0 : i32
    %c0_i32_2 = arith.constant 0 : i32
    return %arg0, %c0_i32, %c0_i32_0, %c0_i32_1 : i32, i32, i32, i32
  }
  func.func @transform_2(%arg0: i32) -> (i32, i32, i32, i32) {
    %c0_i32 = arith.constant 0 : i32
    %c0_i32_0 = arith.constant 0 : i32
    %c0_i32_1 = arith.constant 0 : i32
    %c0_i32_2 = arith.constant 0 : i32
    return %arg0, %c0_i32, %c0_i32_0, %c0_i32_1 : i32, i32, i32, i32
  }
  func.func @transform_3(%arg0: i32) -> (i32, i32) {
    %c0_i32 = arith.constant 0 : i32
    %c0_i32_0 = arith.constant 0 : i32
    %c0_i32_1 = arith.constant 0 : i32
    return %c0_i32, %c0_i32_0 : i32, i32
  }
  func.func @transform_4(%arg0: i32) -> (i32, i32) {
    %c0_i32 = arith.constant 0 : i32
    %c0_i32_0 = arith.constant 0 : i32
    %c0_i32_1 = arith.constant 0 : i32
    return %c0_i32, %c0_i32_0 : i32, i32
  }
  func.func @transform_5(%arg0: i32) -> (i32, i32) {
    %c0_i32 = arith.constant 0 : i32
    %c0_i32_0 = arith.constant 0 : i32
    %c0_i32_1 = arith.constant 0 : i32
    return %c0_i32, %c0_i32_0 : i32, i32
  }
  func.func @transform_6(%arg0: i32) -> (i32, i32) {
    %c0_i32 = arith.constant 0 : i32
    %c0_i32_0 = arith.constant 0 : i32
    %c0_i32_1 = arith.constant 0 : i32
    return %c0_i32, %c0_i32_0 : i32, i32
  }
  func.func @transform_7(%arg0: i32) -> (i32, i32) {
    %c0_i32 = arith.constant 0 : i32
    %c0_i32_0 = arith.constant 0 : i32
    %c0_i32_1 = arith.constant 0 : i32
    return %c0_i32, %c0_i32_0 : i32, i32
  }
  func.func @transform_8(%arg0: i32) -> (i32, i32) {
    %c0_i32 = arith.constant 0 : i32
    %c0_i32_0 = arith.constant 0 : i32
    %c0_i32_1 = arith.constant 0 : i32
    return %c0_i32, %c0_i32_0 : i32, i32
  }
  func.func @transform_9(%arg0: i32) -> (i32, i32) {
    %c0_i32 = arith.constant 0 : i32
    %c0_i32_0 = arith.constant 0 : i32
    return %arg0, %c0_i32 : i32, i32
  }
}

module attributes {stable_mosaic.version = 11 : i64} {
  func.func @_decoder_layer_kernel(%arg0: i32, %arg1: memref<8x128xbf16, #tpu.memory_space<vmem>>, %arg2: memref<1x8x1x16xf32, #tpu.memory_space<vmem>>, %arg3: memref<1x8x1x16xf32, #tpu.memory_space<vmem>>, %arg4: memref<1x128xf32, #tpu.memory_space<vmem>>, %arg5: memref<128x384xbf16, #tpu.memory_space<vmem>>, %arg6: memref<128x128xbf16, #tpu.memory_space<vmem>>, %arg7: memref<1x128xf32, #tpu.memory_space<vmem>>, %arg8: memref<128x512xbf16, #tpu.memory_space<vmem>>, %arg9: memref<256x128xbf16, #tpu.memory_space<vmem>>, %arg10: memref<8x128xbf16, #tpu.memory_space<vmem>>) attributes {dimension_semantics = [#tpu.dimension_semantics<parallel>], iteration_bounds = array<i64: 2>, scalar_prefetch = 0 : i64, scratch_operands = 0 : i64, tpu.core_type = #tpu.core_type<tc>, window_params = [{transform_indices = @transform_0, window_bounds = array<i64: 8, 128>}, {transform_indices = @transform_1, window_bounds = array<i64: 1, 8, 1, 16>}, {transform_indices = @transform_2, window_bounds = array<i64: 1, 8, 1, 16>}, {pipeline_mode = #tpu.pipeline_mode<synchronous>, transform_indices = @transform_3, window_bounds = array<i64: 1, 128>}, {pipeline_mode = #tpu.pipeline_mode<synchronous>, transform_indices = @transform_4, window_bounds = array<i64: 128, 384>}, {pipeline_mode = #tpu.pipeline_mode<synchronous>, transform_indices = @transform_5, window_bounds = array<i64: 128, 128>}, {pipeline_mode = #tpu.pipeline_mode<synchronous>, transform_indices = @transform_6, window_bounds = array<i64: 1, 128>}, {pipeline_mode = #tpu.pipeline_mode<synchronous>, transform_indices = @transform_7, window_bounds = array<i64: 128, 512>}, {pipeline_mode = #tpu.pipeline_mode<synchronous>, transform_indices = @transform_8, window_bounds = array<i64: 256, 128>}, {transform_indices = @transform_9, window_bounds = array<i64: 8, 128>}]} {
    %c0 = arith.constant 0 : index
    %c0_0 = arith.constant 0 : index
    %0 = vector.load %arg1[%c0, %c0_0] : memref<8x128xbf16, #tpu.memory_space<vmem>>, vector<8x128xbf16>
    %1 = arith.extf %0 : vector<8x128xbf16> to vector<8x128xf32>
    %2 = arith.mulf %1, %1 : vector<8x128xf32>
    %cst = arith.constant dense<0.000000e+00> : vector<8xf32>
    %3 = vector.multi_reduction <add>, %2, %cst [1] : vector<8x128xf32> to vector<8xf32>
    %4 = vector.shape_cast %3 : vector<8xf32> to vector<8x1xf32>
    %cst_1 = arith.constant 1.280000e+02 : f32
    %5 = vector.broadcast %cst_1 : f32 to vector<8x1xf32>
    %6 = arith.divf %4, %5 : vector<8x1xf32>
    %cst_2 = arith.constant 9.99999997E-7 : f32
    %7 = vector.broadcast %cst_2 : f32 to vector<8x1xf32>
    %8 = arith.addf %6, %7 : vector<8x1xf32>
    %9 = math.rsqrt %8 : vector<8x1xf32>
    %10 = vector.broadcast %9 : vector<8x1xf32> to vector<8x128xf32>
    %11 = arith.mulf %1, %10 : vector<8x128xf32>
    %c0_3 = arith.constant 0 : index
    %c0_4 = arith.constant 0 : index
    %12 = vector.load %arg4[%c0_3, %c0_4] : memref<1x128xf32, #tpu.memory_space<vmem>>, vector<1x128xf32>
    %13 = vector.broadcast %12 : vector<1x128xf32> to vector<8x128xf32>
    %14 = arith.mulf %11, %13 : vector<8x128xf32>
    %15 = arith.truncf %14 : vector<8x128xf32> to vector<8x128xbf16>
    %c0_5 = arith.constant 0 : index
    %c0_6 = arith.constant 0 : index
    %16 = vector.load %arg5[%c0_5, %c0_6] : memref<128x384xbf16, #tpu.memory_space<vmem>>, vector<128x384xbf16>
    %cst_7 = arith.constant dense<0.000000e+00> : vector<8x384xf32>
    %17 = tpu.matmul %15, %16, %cst_7 {dimension_numbers = #tpu.dot_dimension_numbers<[1], [0], [0], [1], [0, 0, 1, 1], [], []>} : vector<8x128xbf16>, vector<128x384xbf16>, vector<8x384xf32> -> vector<8x384xf32>
    %c0_8 = arith.constant 0 : index
    %c0_9 = arith.constant 0 : index
    %c0_10 = arith.constant 0 : index
    %c0_11 = arith.constant 0 : index
    %18 = vector.load %arg2[%c0_8, %c0_9, %c0_10, %c0_11] : memref<1x8x1x16xf32, #tpu.memory_space<vmem>>, vector<1x8x1x16xf32>
    %19 = vector.shape_cast %18 : vector<1x8x1x16xf32> to vector<8x1x16xf32>
    %c0_12 = arith.constant 0 : index
    %c0_13 = arith.constant 0 : index
    %c0_14 = arith.constant 0 : index
    %c0_15 = arith.constant 0 : index
    %20 = vector.load %arg3[%c0_12, %c0_13, %c0_14, %c0_15] : memref<1x8x1x16xf32, #tpu.memory_space<vmem>>, vector<1x8x1x16xf32>
    %21 = vector.shape_cast %20 : vector<1x8x1x16xf32> to vector<8x1x16xf32>
    %22 = vector.extract_strided_slice %17 {offsets = [0, 0], sizes = [8, 128], strides = [1, 1]} : vector<8x384xf32> to vector<8x128xf32>
    %23 = vector.extract_strided_slice %22 {offsets = [0, 0], sizes = [8, 16], strides = [1, 1]} : vector<8x128xf32> to vector<8x16xf32>
    %24 = vector.extract_strided_slice %22 {offsets = [0, 16], sizes = [8, 16], strides = [1, 1]} : vector<8x128xf32> to vector<8x16xf32>
    %25 = vector.extract_strided_slice %22 {offsets = [0, 32], sizes = [8, 16], strides = [1, 1]} : vector<8x128xf32> to vector<8x16xf32>
    %26 = vector.extract_strided_slice %22 {offsets = [0, 48], sizes = [8, 16], strides = [1, 1]} : vector<8x128xf32> to vector<8x16xf32>
    %27 = vector.extract_strided_slice %22 {offsets = [0, 64], sizes = [8, 16], strides = [1, 1]} : vector<8x128xf32> to vector<8x16xf32>
    %28 = vector.extract_strided_slice %22 {offsets = [0, 80], sizes = [8, 16], strides = [1, 1]} : vector<8x128xf32> to vector<8x16xf32>
    %29 = vector.extract_strided_slice %22 {offsets = [0, 96], sizes = [8, 16], strides = [1, 1]} : vector<8x128xf32> to vector<8x16xf32>
    %30 = vector.extract_strided_slice %22 {offsets = [0, 112], sizes = [8, 16], strides = [1, 1]} : vector<8x128xf32> to vector<8x16xf32>
    %31 = vector.shape_cast %23 : vector<8x16xf32> to vector<1x8x16xf32>
    %32 = vector.shape_cast %24 : vector<8x16xf32> to vector<1x8x16xf32>
    %33 = vector.shape_cast %25 : vector<8x16xf32> to vector<1x8x16xf32>
    %34 = vector.shape_cast %26 : vector<8x16xf32> to vector<1x8x16xf32>
    %35 = vector.shape_cast %27 : vector<8x16xf32> to vector<1x8x16xf32>
    %36 = vector.shape_cast %28 : vector<8x16xf32> to vector<1x8x16xf32>
    %37 = vector.shape_cast %29 : vector<8x16xf32> to vector<1x8x16xf32>
    %38 = vector.shape_cast %30 : vector<8x16xf32> to vector<1x8x16xf32>
    %39 = tpu.concatenate %31, %32, %33, %34, %35, %36, %37, %38 in 0 : vector<1x8x16xf32>, vector<1x8x16xf32>, vector<1x8x16xf32>, vector<1x8x16xf32>, vector<1x8x16xf32>, vector<1x8x16xf32>, vector<1x8x16xf32>, vector<1x8x16xf32> -> vector<8x8x16xf32>
    %40 = vector.extract_strided_slice %39 {offsets = [0, 0, 8], sizes = [8, 8, 8], strides = [1, 1, 1]} : vector<8x8x16xf32> to vector<8x8x8xf32>
    %cst_16 = arith.constant 0.000000e+00 : f32
    %41 = vector.broadcast %cst_16 : f32 to vector<8x8x8xf32>
    %42 = arith.subf %41, %40 : vector<8x8x8xf32>
    %43 = vector.extract_strided_slice %39 {offsets = [0, 0, 0], sizes = [8, 8, 8], strides = [1, 1, 1]} : vector<8x8x16xf32> to vector<8x8x8xf32>
    %44 = tpu.concatenate %42, %43 in 2 : vector<8x8x8xf32>, vector<8x8x8xf32> -> vector<8x8x16xf32>
    %45 = vector.broadcast %19 : vector<8x1x16xf32> to vector<8x8x16xf32>
    %46 = arith.mulf %39, %45 : vector<8x8x16xf32>
    %47 = vector.broadcast %21 : vector<8x1x16xf32> to vector<8x8x16xf32>
    %48 = arith.mulf %44, %47 : vector<8x8x16xf32>
    %49 = arith.addf %46, %48 : vector<8x8x16xf32>
    %50 = arith.truncf %49 : vector<8x8x16xf32> to vector<8x8x16xbf16>
    %51 = vector.extract_strided_slice %17 {offsets = [0, 128], sizes = [8, 128], strides = [1, 1]} : vector<8x384xf32> to vector<8x128xf32>
    %52 = vector.extract_strided_slice %51 {offsets = [0, 0], sizes = [8, 16], strides = [1, 1]} : vector<8x128xf32> to vector<8x16xf32>
    %53 = vector.extract_strided_slice %51 {offsets = [0, 16], sizes = [8, 16], strides = [1, 1]} : vector<8x128xf32> to vector<8x16xf32>
    %54 = vector.extract_strided_slice %51 {offsets = [0, 32], sizes = [8, 16], strides = [1, 1]} : vector<8x128xf32> to vector<8x16xf32>
    %55 = vector.extract_strided_slice %51 {offsets = [0, 48], sizes = [8, 16], strides = [1, 1]} : vector<8x128xf32> to vector<8x16xf32>
    %56 = vector.extract_strided_slice %51 {offsets = [0, 64], sizes = [8, 16], strides = [1, 1]} : vector<8x128xf32> to vector<8x16xf32>
    %57 = vector.extract_strided_slice %51 {offsets = [0, 80], sizes = [8, 16], strides = [1, 1]} : vector<8x128xf32> to vector<8x16xf32>
    %58 = vector.extract_strided_slice %51 {offsets = [0, 96], sizes = [8, 16], strides = [1, 1]} : vector<8x128xf32> to vector<8x16xf32>
    %59 = vector.extract_strided_slice %51 {offsets = [0, 112], sizes = [8, 16], strides = [1, 1]} : vector<8x128xf32> to vector<8x16xf32>
    %60 = vector.shape_cast %52 : vector<8x16xf32> to vector<1x8x16xf32>
    %61 = vector.shape_cast %53 : vector<8x16xf32> to vector<1x8x16xf32>
    %62 = vector.shape_cast %54 : vector<8x16xf32> to vector<1x8x16xf32>
    %63 = vector.shape_cast %55 : vector<8x16xf32> to vector<1x8x16xf32>
    %64 = vector.shape_cast %56 : vector<8x16xf32> to vector<1x8x16xf32>
    %65 = vector.shape_cast %57 : vector<8x16xf32> to vector<1x8x16xf32>
    %66 = vector.shape_cast %58 : vector<8x16xf32> to vector<1x8x16xf32>
    %67 = vector.shape_cast %59 : vector<8x16xf32> to vector<1x8x16xf32>
    %68 = tpu.concatenate %60, %61, %62, %63, %64, %65, %66, %67 in 0 : vector<1x8x16xf32>, vector<1x8x16xf32>, vector<1x8x16xf32>, vector<1x8x16xf32>, vector<1x8x16xf32>, vector<1x8x16xf32>, vector<1x8x16xf32>, vector<1x8x16xf32> -> vector<8x8x16xf32>
    %69 = vector.extract_strided_slice %68 {offsets = [0, 0, 8], sizes = [8, 8, 8], strides = [1, 1, 1]} : vector<8x8x16xf32> to vector<8x8x8xf32>
    %cst_17 = arith.constant 0.000000e+00 : f32
    %70 = vector.broadcast %cst_17 : f32 to vector<8x8x8xf32>
    %71 = arith.subf %70, %69 : vector<8x8x8xf32>
    %72 = vector.extract_strided_slice %68 {offsets = [0, 0, 0], sizes = [8, 8, 8], strides = [1, 1, 1]} : vector<8x8x16xf32> to vector<8x8x8xf32>
    %73 = tpu.concatenate %71, %72 in 2 : vector<8x8x8xf32>, vector<8x8x8xf32> -> vector<8x8x16xf32>
    %74 = vector.broadcast %19 : vector<8x1x16xf32> to vector<8x8x16xf32>
    %75 = arith.mulf %68, %74 : vector<8x8x16xf32>
    %76 = vector.broadcast %21 : vector<8x1x16xf32> to vector<8x8x16xf32>
    %77 = arith.mulf %73, %76 : vector<8x8x16xf32>
    %78 = arith.addf %75, %77 : vector<8x8x16xf32>
    %79 = arith.truncf %78 : vector<8x8x16xf32> to vector<8x8x16xbf16>
    %80 = vector.extract_strided_slice %17 {offsets = [0, 256], sizes = [8, 128], strides = [1, 1]} : vector<8x384xf32> to vector<8x128xf32>
    %81 = vector.extract_strided_slice %80 {offsets = [0, 0], sizes = [8, 16], strides = [1, 1]} : vector<8x128xf32> to vector<8x16xf32>
    %82 = vector.extract_strided_slice %80 {offsets = [0, 16], sizes = [8, 16], strides = [1, 1]} : vector<8x128xf32> to vector<8x16xf32>
    %83 = vector.extract_strided_slice %80 {offsets = [0, 32], sizes = [8, 16], strides = [1, 1]} : vector<8x128xf32> to vector<8x16xf32>
    %84 = vector.extract_strided_slice %80 {offsets = [0, 48], sizes = [8, 16], strides = [1, 1]} : vector<8x128xf32> to vector<8x16xf32>
    %85 = vector.extract_strided_slice %80 {offsets = [0, 64], sizes = [8, 16], strides = [1, 1]} : vector<8x128xf32> to vector<8x16xf32>
    %86 = vector.extract_strided_slice %80 {offsets = [0, 80], sizes = [8, 16], strides = [1, 1]} : vector<8x128xf32> to vector<8x16xf32>
    %87 = vector.extract_strided_slice %80 {offsets = [0, 96], sizes = [8, 16], strides = [1, 1]} : vector<8x128xf32> to vector<8x16xf32>
    %88 = vector.extract_strided_slice %80 {offsets = [0, 112], sizes = [8, 16], strides = [1, 1]} : vector<8x128xf32> to vector<8x16xf32>
    %89 = vector.shape_cast %81 : vector<8x16xf32> to vector<1x8x16xf32>
    %90 = vector.shape_cast %82 : vector<8x16xf32> to vector<1x8x16xf32>
    %91 = vector.shape_cast %83 : vector<8x16xf32> to vector<1x8x16xf32>
    %92 = vector.shape_cast %84 : vector<8x16xf32> to vector<1x8x16xf32>
    %93 = vector.shape_cast %85 : vector<8x16xf32> to vector<1x8x16xf32>
    %94 = vector.shape_cast %86 : vector<8x16xf32> to vector<1x8x16xf32>
    %95 = vector.shape_cast %87 : vector<8x16xf32> to vector<1x8x16xf32>
    %96 = vector.shape_cast %88 : vector<8x16xf32> to vector<1x8x16xf32>
    %97 = tpu.concatenate %89, %90, %91, %92, %93, %94, %95, %96 in 0 : vector<1x8x16xf32>, vector<1x8x16xf32>, vector<1x8x16xf32>, vector<1x8x16xf32>, vector<1x8x16xf32>, vector<1x8x16xf32>, vector<1x8x16xf32>, vector<1x8x16xf32> -> vector<8x8x16xf32>
    %98 = arith.truncf %97 : vector<8x8x16xf32> to vector<8x8x16xbf16>
    "tpu.trace_start"() <{level = 10 : i32, message = "hqd,hkd->hqk"}> : () -> ()
    %cst_18 = arith.constant dense<0.000000e+00> : vector<8x8x8xf32>
    %99 = tpu.matmul %50, %79, %cst_18 {dimension_numbers = #tpu.dot_dimension_numbers<[2], [2], [1], [1], [0, 0, 0, 1, 1, 1], [0], [0]>} : vector<8x8x16xbf16>, vector<8x8x16xbf16>, vector<8x8x8xf32> -> vector<8x8x8xf32>
    "tpu.trace_stop"() : () -> ()
    %cst_19 = arith.constant 2.500000e-01 : f32
    %100 = vector.broadcast %cst_19 : f32 to vector<8x8x8xf32>
    %101 = arith.mulf %99, %100 : vector<8x8x8xf32>
    %cst_20 = arith.constant dense<0xFF800000> : vector<8x8xf32>
    %102 = vector.multi_reduction <maximumf>, %101, %cst_20 [2] : vector<8x8x8xf32> to vector<8x8xf32>
    %cst_21 = arith.constant 0xFF800000 : f32
    %103 = vector.broadcast %cst_21 : f32 to vector<8x8xf32>
    %104 = arith.maximumf %103, %102 : vector<8x8xf32>
    %105 = vector.shape_cast %104 : vector<8x8xf32> to vector<8x8x1xf32>
    %106 = vector.broadcast %105 : vector<8x8x1xf32> to vector<8x8x8xf32>
    %107 = arith.subf %101, %106 : vector<8x8x8xf32>
    %108 = math.exp %107 : vector<8x8x8xf32>
    %cst_22 = arith.constant dense<0.000000e+00> : vector<8x8xf32>
    %109 = vector.multi_reduction <add>, %108, %cst_22 [2] : vector<8x8x8xf32> to vector<8x8xf32>
    %110 = vector.shape_cast %109 : vector<8x8xf32> to vector<8x8x1xf32>
    %111 = vector.broadcast %110 : vector<8x8x1xf32> to vector<8x8x8xf32>
    %112 = arith.divf %108, %111 : vector<8x8x8xf32>
    %113 = arith.truncf %112 : vector<8x8x8xf32> to vector<8x8x8xbf16>
    "tpu.trace_start"() <{level = 10 : i32, message = "hqk,hkd->hqd"}> : () -> ()
    %cst_23 = arith.constant dense<0.000000e+00> : vector<8x8x16xf32>
    %114 = tpu.matmul %113, %98, %cst_23 {dimension_numbers = #tpu.dot_dimension_numbers<[2], [1], [1], [2], [0, 0, 0, 1, 1, 2], [0], [0]>} : vector<8x8x8xbf16>, vector<8x8x16xbf16>, vector<8x8x16xf32> -> vector<8x8x16xf32>
    "tpu.trace_stop"() : () -> ()
    %115 = vector.extract_strided_slice %114 {offsets = [0, 0, 0], sizes = [1, 8, 16], strides = [1, 1, 1]} : vector<8x8x16xf32> to vector<1x8x16xf32>
    %116 = vector.shape_cast %115 : vector<1x8x16xf32> to vector<8x16xf32>
    %117 = vector.extract_strided_slice %114 {offsets = [1, 0, 0], sizes = [1, 8, 16], strides = [1, 1, 1]} : vector<8x8x16xf32> to vector<1x8x16xf32>
    %118 = vector.shape_cast %117 : vector<1x8x16xf32> to vector<8x16xf32>
    %119 = vector.extract_strided_slice %114 {offsets = [2, 0, 0], sizes = [1, 8, 16], strides = [1, 1, 1]} : vector<8x8x16xf32> to vector<1x8x16xf32>
    %120 = vector.shape_cast %119 : vector<1x8x16xf32> to vector<8x16xf32>
    %121 = vector.extract_strided_slice %114 {offsets = [3, 0, 0], sizes = [1, 8, 16], strides = [1, 1, 1]} : vector<8x8x16xf32> to vector<1x8x16xf32>
    %122 = vector.shape_cast %121 : vector<1x8x16xf32> to vector<8x16xf32>
    %123 = vector.extract_strided_slice %114 {offsets = [4, 0, 0], sizes = [1, 8, 16], strides = [1, 1, 1]} : vector<8x8x16xf32> to vector<1x8x16xf32>
    %124 = vector.shape_cast %123 : vector<1x8x16xf32> to vector<8x16xf32>
    %125 = vector.extract_strided_slice %114 {offsets = [5, 0, 0], sizes = [1, 8, 16], strides = [1, 1, 1]} : vector<8x8x16xf32> to vector<1x8x16xf32>
    %126 = vector.shape_cast %125 : vector<1x8x16xf32> to vector<8x16xf32>
    %127 = vector.extract_strided_slice %114 {offsets = [6, 0, 0], sizes = [1, 8, 16], strides = [1, 1, 1]} : vector<8x8x16xf32> to vector<1x8x16xf32>
    %128 = vector.shape_cast %127 : vector<1x8x16xf32> to vector<8x16xf32>
    %129 = vector.extract_strided_slice %114 {offsets = [7, 0, 0], sizes = [1, 8, 16], strides = [1, 1, 1]} : vector<8x8x16xf32> to vector<1x8x16xf32>
    %130 = vector.shape_cast %129 : vector<1x8x16xf32> to vector<8x16xf32>
    %131 = tpu.concatenate %116, %118, %120, %122, %124, %126, %128, %130 in 1 : vector<8x16xf32>, vector<8x16xf32>, vector<8x16xf32>, vector<8x16xf32>, vector<8x16xf32>, vector<8x16xf32>, vector<8x16xf32>, vector<8x16xf32> -> vector<8x128xf32>
    %132 = arith.truncf %131 : vector<8x128xf32> to vector<8x128xbf16>
    %c0_24 = arith.constant 0 : index
    %c0_25 = arith.constant 0 : index
    %133 = vector.load %arg6[%c0_24, %c0_25] : memref<128x128xbf16, #tpu.memory_space<vmem>>, vector<128x128xbf16>
    %cst_26 = arith.constant dense<0.000000e+00> : vector<8x128xf32>
    %134 = tpu.matmul %132, %133, %cst_26 {dimension_numbers = #tpu.dot_dimension_numbers<[1], [0], [0], [1], [0, 0, 1, 1], [], []>} : vector<8x128xbf16>, vector<128x128xbf16>, vector<8x128xf32> -> vector<8x128xf32>
    %135 = arith.addf %1, %134 : vector<8x128xf32>
    %136 = arith.mulf %135, %135 : vector<8x128xf32>
    %cst_27 = arith.constant dense<0.000000e+00> : vector<8xf32>
    %137 = vector.multi_reduction <add>, %136, %cst_27 [1] : vector<8x128xf32> to vector<8xf32>
    %138 = vector.shape_cast %137 : vector<8xf32> to vector<8x1xf32>
    %cst_28 = arith.constant 1.280000e+02 : f32
    %139 = vector.broadcast %cst_28 : f32 to vector<8x1xf32>
    %140 = arith.divf %138, %139 : vector<8x1xf32>
    %cst_29 = arith.constant 9.99999997E-7 : f32
    %141 = vector.broadcast %cst_29 : f32 to vector<8x1xf32>
    %142 = arith.addf %140, %141 : vector<8x1xf32>
    %143 = math.rsqrt %142 : vector<8x1xf32>
    %144 = vector.broadcast %143 : vector<8x1xf32> to vector<8x128xf32>
    %145 = arith.mulf %135, %144 : vector<8x128xf32>
    %c0_30 = arith.constant 0 : index
    %c0_31 = arith.constant 0 : index
    %146 = vector.load %arg7[%c0_30, %c0_31] : memref<1x128xf32, #tpu.memory_space<vmem>>, vector<1x128xf32>
    %147 = vector.broadcast %146 : vector<1x128xf32> to vector<8x128xf32>
    %148 = arith.mulf %145, %147 : vector<8x128xf32>
    %149 = arith.truncf %148 : vector<8x128xf32> to vector<8x128xbf16>
    %c0_32 = arith.constant 0 : index
    %c0_33 = arith.constant 0 : index
    %150 = vector.load %arg8[%c0_32, %c0_33] : memref<128x512xbf16, #tpu.memory_space<vmem>>, vector<128x512xbf16>
    %cst_34 = arith.constant dense<0.000000e+00> : vector<8x512xf32>
    %151 = tpu.matmul %149, %150, %cst_34 {dimension_numbers = #tpu.dot_dimension_numbers<[1], [0], [0], [1], [0, 0, 1, 1], [], []>} : vector<8x128xbf16>, vector<128x512xbf16>, vector<8x512xf32> -> vector<8x512xf32>
    %152 = vector.extract_strided_slice %151 {offsets = [0, 0], sizes = [8, 256], strides = [1, 1]} : vector<8x512xf32> to vector<8x256xf32>
    %153 = vector.extract_strided_slice %151 {offsets = [0, 256], sizes = [8, 256], strides = [1, 1]} : vector<8x512xf32> to vector<8x256xf32>
    %154 = arith.negf %152 : vector<8x256xf32>
    %155 = math.exp %154 : vector<8x256xf32>
    %cst_35 = arith.constant 1.000000e+00 : f32
    %156 = vector.broadcast %cst_35 : f32 to vector<8x256xf32>
    %157 = arith.addf %156, %155 : vector<8x256xf32>
    %158 = arith.divf %156, %157 : vector<8x256xf32>
    %159 = arith.mulf %152, %158 : vector<8x256xf32>
    %160 = arith.mulf %159, %153 : vector<8x256xf32>
    %161 = arith.truncf %160 : vector<8x256xf32> to vector<8x256xbf16>
    %c0_36 = arith.constant 0 : index
    %c0_37 = arith.constant 0 : index
    %162 = vector.load %arg9[%c0_36, %c0_37] : memref<256x128xbf16, #tpu.memory_space<vmem>>, vector<256x128xbf16>
    %cst_38 = arith.constant dense<0.000000e+00> : vector<8x128xf32>
    %163 = tpu.matmul %161, %162, %cst_38 {dimension_numbers = #tpu.dot_dimension_numbers<[1], [0], [0], [1], [0, 0, 1, 1], [], []>} : vector<8x256xbf16>, vector<256x128xbf16>, vector<8x128xf32> -> vector<8x128xf32>
    %164 = arith.addf %135, %163 : vector<8x128xf32>
    %165 = arith.truncf %164 : vector<8x128xf32> to vector<8x128xbf16>
    %c0_39 = arith.constant 0 : index
    %c0_40 = arith.constant 0 : index
    %166 = vector.load %arg10[%c0_39, %c0_40] : memref<8x128xbf16, #tpu.memory_space<vmem>>, vector<8x128xbf16>
    tpu.vector_store %arg10[%c0_39, %c0_40], %165 {strides = array<i32>} : memref<8x128xbf16, #tpu.memory_space<vmem>>, vector<8x128xbf16>,
    return
  }
  func.func @transform_0(%arg0: i32) -> (i32, i32) {
    %c0_i32 = arith.constant 0 : i32
    %c0_i32_0 = arith.constant 0 : i32
    return %arg0, %c0_i32 : i32, i32
  }
  func.func @transform_1(%arg0: i32) -> (i32, i32, i32, i32) {
    %c0_i32 = arith.constant 0 : i32
    %c0_i32_0 = arith.constant 0 : i32
    %c0_i32_1 = arith.constant 0 : i32
    %c0_i32_2 = arith.constant 0 : i32
    return %arg0, %c0_i32, %c0_i32_0, %c0_i32_1 : i32, i32, i32, i32
  }
  func.func @transform_2(%arg0: i32) -> (i32, i32, i32, i32) {
    %c0_i32 = arith.constant 0 : i32
    %c0_i32_0 = arith.constant 0 : i32
    %c0_i32_1 = arith.constant 0 : i32
    %c0_i32_2 = arith.constant 0 : i32
    return %arg0, %c0_i32, %c0_i32_0, %c0_i32_1 : i32, i32, i32, i32
  }
  func.func @transform_3(%arg0: i32) -> (i32, i32) {
    %c0_i32 = arith.constant 0 : i32
    %c0_i32_0 = arith.constant 0 : i32
    %c0_i32_1 = arith.constant 0 : i32
    return %c0_i32, %c0_i32_0 : i32, i32
  }
  func.func @transform_4(%arg0: i32) -> (i32, i32) {
    %c0_i32 = arith.constant 0 : i32
    %c0_i32_0 = arith.constant 0 : i32
    %c0_i32_1 = arith.constant 0 : i32
    return %c0_i32, %c0_i32_0 : i32, i32
  }
  func.func @transform_5(%arg0: i32) -> (i32, i32) {
    %c0_i32 = arith.constant 0 : i32
    %c0_i32_0 = arith.constant 0 : i32
    %c0_i32_1 = arith.constant 0 : i32
    return %c0_i32, %c0_i32_0 : i32, i32
  }
  func.func @transform_6(%arg0: i32) -> (i32, i32) {
    %c0_i32 = arith.constant 0 : i32
    %c0_i32_0 = arith.constant 0 : i32
    %c0_i32_1 = arith.constant 0 : i32
    return %c0_i32, %c0_i32_0 : i32, i32
  }
  func.func @transform_7(%arg0: i32) -> (i32, i32) {
    %c0_i32 = arith.constant 0 : i32
    %c0_i32_0 = arith.constant 0 : i32
    %c0_i32_1 = arith.constant 0 : i32
    return %c0_i32, %c0_i32_0 : i32, i32
  }
  func.func @transform_8(%arg0: i32) -> (i32, i32) {
    %c0_i32 = arith.constant 0 : i32
    %c0_i32_0 = arith.constant 0 : i32
    %c0_i32_1 = arith.constant 0 : i32
    return %c0_i32, %c0_i32_0 : i32, i32
  }
  func.func @transform_9(%arg0: i32) -> (i32, i32) {
    %c0_i32 = arith.constant 0 : i32
    %c0_i32_0 = arith.constant 0 : i32
    return %arg0, %c0_i32 : i32, i32
  }
}

module attributes {stable_mosaic.version = 11 : i64} {
  func.func @_ln_matmul_kernel(%arg0: memref<16x128xbf16, #tpu.memory_space<vmem>>, %arg1: memref<1x128xf32, #tpu.memory_space<vmem>>, %arg2: memref<128x128xbf16, #tpu.memory_space<vmem>>, %arg3: memref<16x128xf32, #tpu.memory_space<vmem>>) attributes {dimension_semantics = [], scalar_prefetch = 0 : i64, scratch_operands = 0 : i64, tpu.core_type = #tpu.core_type<tc>} {
    %c0 = arith.constant 0 : index
    %c0_0 = arith.constant 0 : index
    %0 = vector.load %arg0[%c0, %c0_0] : memref<16x128xbf16, #tpu.memory_space<vmem>>, vector<16x128xbf16>
    %1 = arith.extf %0 : vector<16x128xbf16> to vector<16x128xf32>
    %2 = arith.mulf %1, %1 : vector<16x128xf32>
    %cst = arith.constant dense<0.000000e+00> : vector<16xf32>
    %3 = vector.multi_reduction <add>, %2, %cst [1] : vector<16x128xf32> to vector<16xf32>
    %4 = vector.shape_cast %3 : vector<16xf32> to vector<16x1xf32>
    %cst_1 = arith.constant 1.280000e+02 : f32
    %5 = vector.broadcast %cst_1 : f32 to vector<16x1xf32>
    %6 = arith.divf %4, %5 : vector<16x1xf32>
    %cst_2 = arith.constant 9.99999997E-7 : f32
    %7 = vector.broadcast %cst_2 : f32 to vector<16x1xf32>
    %8 = arith.addf %6, %7 : vector<16x1xf32>
    %9 = math.rsqrt %8 : vector<16x1xf32>
    %10 = vector.broadcast %9 : vector<16x1xf32> to vector<16x128xf32>
    %11 = arith.mulf %1, %10 : vector<16x128xf32>
    %c0_3 = arith.constant 0 : index
    %c0_4 = arith.constant 0 : index
    %12 = vector.load %arg1[%c0_3, %c0_4] : memref<1x128xf32, #tpu.memory_space<vmem>>, vector<1x128xf32>
    %13 = vector.broadcast %12 : vector<1x128xf32> to vector<16x128xf32>
    %14 = arith.mulf %11, %13 : vector<16x128xf32>
    %15 = arith.truncf %14 : vector<16x128xf32> to vector<16x128xbf16>
    %c0_5 = arith.constant 0 : index
    %c0_6 = arith.constant 0 : index
    %16 = vector.load %arg2[%c0_5, %c0_6] : memref<128x128xbf16, #tpu.memory_space<vmem>>, vector<128x128xbf16>
    %cst_7 = arith.constant dense<0.000000e+00> : vector<16x128xf32>
    %17 = tpu.matmul %15, %16, %cst_7 {dimension_numbers = #tpu.dot_dimension_numbers<[1], [0], [0], [1], [0, 0, 1, 1], [], []>} : vector<16x128xbf16>, vector<128x128xbf16>, vector<16x128xf32> -> vector<16x128xf32>
    %c0_8 = arith.constant 0 : index
    %c0_9 = arith.constant 0 : index
    %18 = vector.load %arg3[%c0_8, %c0_9] : memref<16x128xf32, #tpu.memory_space<vmem>>, vector<16x128xf32>
    tpu.vector_store %arg3[%c0_8, %c0_9], %17 {strides = array<i32>} : memref<16x128xf32, #tpu.memory_space<vmem>>, vector<16x128xf32>,
    return
  }
}

</mosaic_0001>

<bundles_post_ra>
// kernel: llama_forward.5
= control target key start
LH: loop header
LB: loop body
LE: loop exit
PB: predicated region body
PF: predicated region fallthrough
CT: control target
= control target key end

     0   :  { %s301_s0 = inlined_call_operand.vmem [shape: bf16[16,128], index: 0, kind: input, shape index: {}]   ;;  %s302_s1 = inlined_call_operand.vmem [shape: f32[1,128], index: 1, kind: input, shape index: {}]   ;;  %s303_s2 = inlined_call_operand.vmem [shape: bf16[128,128], index: 2, kind: input, shape index: {}]   ;;  %s304_s3 = inlined_call_operand.hbm [shape: f32[16,128], index: 3, kind: output, shape index: {}]  }
   0x1   :  { %v204_v0 = vld [vmem:[%s301_s0] sm:$0xff]  }
   0x2   :  { %8 = vsyncpa [#allocation3], 0  ;;  %v205_v1 = vunpack.c.l.bf16 %v204_v0  ;;  %v206_v3 = vunpack.c.h.bf16 %v204_v0  ;;  %v202_v5 = vld [vmem:[%s303_s2 + $0x38] sm:$0xff]  ;;  %v244_v6 = vmov 128.0   ;;  %v201_v7 = vld [vmem:[%s303_s2 + $0x30] sm:$0xff]  ;;  %s245_s30 = smov [#allocation2]  }
   0x3   :  { %212 = vrcp.f32 %v244_v6  ;;  %129 = vmatpush.bf16.msra.mxu0 %v202_v5  ;;  %v200_v9 = vld [vmem:[%s303_s2 + $0x28] sm:$0xff]  ;;  %v199_v11 = vld [vmem:[%s303_s2 + $0x20] sm:$0xff]  ;;  %v198_v13 = vld [vmem:[%s303_s2 + $0x18] sm:$0xff]  ;;  %s149_s4 = sshll.u32 %s245_s30, 4  ;;  %s151_s7 = sshll.u32 %s304_s3, 4  ;;  %s150_s4 = int_to_ptr.vmem [resolvable:$true] %s149_s4  ;;  %s152_s7 = int_to_ptr.hbm [resolvable:$true] %s151_s7 }
   0x4   :  { %v19_v2 = vmul.f32 %v205_v1, %v205_v1  ;;  %v20_v4 = vmul.f32 %v206_v3, %v206_v3  ;;  %v197_v15 = vld [vmem:[%s303_s2 + $0x10] sm:$0xff]  ;;  %v196_v17 = vld [vmem:[%s303_s2 + $0x8] sm:$0xff]  ;;  %v195_v19 = vld [vmem:[%s303_s2] sm:$0xff]  ;;  %s246_s8 = smov 128  }
   0x5   :  { %v211_v40 = vld [vmem:[%s302_s1] ss:$0 sm:$0xff]  ;;  %s247_s1 = smov 8  }
   0x6   :  { %21 = vadd.xlane.f32.xlu0 %v19_v2 }
   0x7   :  { %130 = vmatpush.bf16.msra.mxu0 %v201_v7 }
   0x9   :  { %v213_v8 = vpop.eup %212 }
   0xa   :  { %v26_v10 = vmul.f32 128.0, %v213_v8  ;;  %vm30_vm0 = vweird.f32 %v213_v8 }
   0xb   :  { %131 = vmatpush.bf16.msra.mxu0 %v200_v9 }
   0xc   :  { %v27_v12 = vsub.f32 1.0, %v26_v10 }
   0xe   :  { %23 = vadd.xlane.f32.xlu0 %v20_v4  ;;  %v28_v14 = vmul.f32 %v213_v8, %v27_v12 }
   0xf   :  { %132 = vmatpush.bf16.msra.mxu0 %v199_v11 }
  0x10   :  { %v29_v16 = vadd.f32 %v213_v8, %v28_v14 }
  0x12   :  { %v31_v18 = vsel %vm30_vm0, %v213_v8, %v29_v16 }
  0x13   :  { %133 = vmatpush.bf16.msra.mxu0 %v198_v13 }
  0x17   :  { %134 = vmatpush.bf16.msra.mxu0 %v197_v15 }
  0x1b   :  { %135 = vmatpush.bf16.msra.mxu0 %v196_v17 }
  0x1f   :  { %136 = vmatpush.bf16.msra.mxu0 %v195_v19 }
  0x79   :  { %v22_v20 = vpop.xlane.xlu0 %21 }
  0x7a   :  { %v32_v21 = vmul.f32 %v31_v18, %v22_v20 }
  0x7c   :  { %v34_v22 = vadd.f32 1e-06, %v32_v21 }
  0x7e   :  { %214 = vrsqrt.f32 %v34_v22  ;;  %vm42_vm2 = vweird.f32 %v34_v22 }
  0x81   :  { %v24_v23 = vpop.xlane.xlu0 %23 }
  0x82   :  { %v33_v24 = vmul.f32 %v31_v18, %v24_v23 }
  0x84   :  { %v215_v25 = vpop.eup %214  ;;  %v35_v26 = vadd.f32 1e-06, %v33_v24 }
  0x85   :  { %v37_v27 = vmul.f32 %v215_v25, %v34_v22  ;;  %vm43_vm1 = vweird.f32 %v215_v25 }
  0x86   :  { %216 = vrsqrt.f32 %v35_v26  ;;  %vm44_vm3 = vmor %vm42_vm2, %vm43_vm1  ;;  %vm52_vm5 = vweird.f32 %v35_v26 }
  0x87   :  { %v38_v28 = vmul.f32 %v215_v25, %v37_v27 }
  0x89   :  { %v39_v29 = vmul.f32 0.5, %v38_v28 }
  0x8b   :  { %v40_v30 = vsub.f32 1.5, %v39_v29 }
  0x8c   :  { %v217_v31 = vpop.eup %216 }
  0x8d   :  { %v47_v32 = vmul.f32 %v217_v31, %v35_v26  ;;  %v41_v33 = vmul.f32 %v215_v25, %v40_v30  ;;  %vm53_vm4 = vweird.f32 %v217_v31 }
  0x8e   :  { %vm54_vm6 = vmor %vm52_vm5, %vm53_vm4 }
  0x8f   :  { %v48_v34 = vmul.f32 %v217_v31, %v47_v32  ;;  %v45_v37 = vsel %vm44_vm3, %v215_v25, %v41_v33 }
  0x90   :  { %v56_v39 = vmul.f32 %v205_v1, %v45_v37 }
  0x91   :  { %v49_v35 = vmul.f32 0.5, %v48_v34 }
  0x92   :  { %v62_v43 = vmul.f32 %v211_v40, %v56_v39 }
  0x93   :  { %v50_v36 = vsub.f32 1.5, %v49_v35 }
  0x95   :  { %v51_v38 = vmul.f32 %v217_v31, %v50_v36 }
  0x97   :  { %v55_v41 = vsel %vm54_vm6, %v217_v31, %v51_v38 }
  0x98   :  { %v57_v42 = vmul.f32 %v206_v3, %v55_v41 }
  0x9a   :  { %v63_v44 = vmul.f32 %v211_v40, %v57_v42 }
  0x9c   :  { %v64_v45 = vpack.c.bf16 %v63_v44, %v62_v43 }
  0x9e   :  { %137 = vmatmul.bf16.vlgmr.msra.gmra.mxu0 %v64_v45 }
 0x11b   :  { %v138_v46 = vpop.f32.mrf.mxu0 }
 0x11c   :  { %143 = vst [vmem:[#allocation2] sm:$0xff] %v138_v46 }
 0x123   :  { %v140_v47 = vpop.f32.mrf.mxu0 }
 0x124   :  { %144 = vst [vmem:[#allocation2 + $0x8] sm:$0xff] %v140_v47 }
 0x125   :  { %157 = dma.vmem_to_hbm [thread:$0]  %s150_s4, 256, %s152_s7, [#allocation3], %s246_s8, %s246_s8, %s247_s1  }
 0x126   :  { %242 = dma.done.wait [#allocation3], 256  }
 0x127   :  { %243 = vsyncadd [#allocation3], 4294967040 }
 0x128   :  { %162 = vsyncpa [#allocation3], 1 }

// kernel: llama_forward.4
= control target key start
LH: loop header
LB: loop body
LE: loop exit
PB: predicated region body
PF: predicated region fallthrough
CT: control target
= control target key end

     0   :  { %s2697_s30 = smov 0   ;;  %s3486_s0 = inlined_call_operand.vmem [shape: bf16[16,128], index: 0, kind: input, shape index: {}, may-alias: {0,9}]   ;;  %s3487_s1 = inlined_call_operand.vmem [shape: f32[2,8,1,16], index: 1, kind: input, shape index: {}]   ;;  %s3488_s2 = inlined_call_operand.vmem [shape: f32[2,8,1,16], index: 2, kind: input, shape index: {}]   ;;  %s3489_s3 = inlined_call_operand.vmem [shape: f32[1,128], index: 3, kind: input, shape index: {}]   ;;  %s3490_s4 = inlined_call_operand.vmem [shape: bf16[128,384], index: 4, kind: input, shape index: {}]   ;;  %s3491_s5 = inlined_call_operand.vmem [shape: bf16[128,128], index: 5, kind: input, shape index: {}]   ;;  %s3492_s6 = inlined_call_operand.vmem [shape: f32[1,128], index: 6, kind: input, shape index: {}]   ;;  %s3493_s7 = inlined_call_operand.vmem [shape: bf16[128,512], index: 7, kind: input, shape index: {}]   ;;  %s3494_s8 = inlined_call_operand.vmem [shape: bf16[256,128], index: 8, kind: input, shape index: {}]   ;;  %s3495_s9 = inlined_call_operand.vmem [shape: bf16[16,128], index: 9, kind: output, shape index: {}, may-alias: {0,9}]  }
   0x1 LB: > { %s2118_s10 = sadd.s32 4294967295, %s2635_s30   ;;  %p2122_p0 = scmp.ge.s32.totalorder %s2635_s30, 1  ;;  %s2635_s30 = sphi %s2697_s30, %s19_s30  }
   0x2   : > { %p304_p1 = scmp.lt.s32.totalorder %s2635_s30, 3 }
   0x4   : > { %p305_p2 = pnand %p2122_p0, %p304_p1 }
   0x5   : > { %p346_p3 = scmp.lt.s32.totalorder (!%p305_p2), %s2118_s10, 1  ;;  %s2638_s21 = smov (!%p305_p2), 112  }
   0x6   : > { %308 = sbr.rel (%p305_p2) target bundleno = 1845 (0x735), region = 56  ;;  %s2639_s22 = smov (!%p305_p2), 96  }
   0x7   : > { %s2641_s25 = smov (!%p305_p2), 80   ;;  %s2642_s26 = smov (!%p305_p2), 64  }
   0x8   : > { %s2644_s28 = smov (!%p305_p2), 120   ;;  %s2645_s29 = smov (!%p305_p2), 16  }
   0x9   : > { %s2646_s12 = smov (!%p305_p2), 8  }
   0xb   : > { %v2213_v0 = vld [vmem:[%s3490_s4 + $0xa8] sm:$0xf]  ;;  %v2489_v1 = vld [vmem:[%s3490_s4 + $0xb0] sm:$0xf0]  ;;  %v2488_v3 = vld [vmem:[%s3490_s4 + $0xac] sm:$0xf] }
   0xc   : > { %v2214_v2 = vor.u32 %v2489_v1, %v2213_v0  ;;  %v2215_v4 = vld [vmem:[%s3490_s4 + $0xb4] sm:$0xf0]  ;;  %v2221_v5 = vld [vmem:[%s3490_s4 + $0xb0] sm:$0xf]  ;;  %s3497_s10 = smov (!%p346_p3, %s2118_s10), 1  ;;  %v2637_v28 = vmov 128.0  }
   0xd   : > { %v2218_v6 = vor.u32 %v2488_v3, %v2215_v4  ;;  %v2490_v7 = vld [vmem:[%s3490_s4 + $0xb8] sm:$0xf0]  ;;  %s2123_s23 = sshll.u32 %s3497_s10, 2  ;;  %s2124_s24 = sshll.u32 %s3497_s10, 3  ;;  %v2201_v12 = vld [vmem:[%s3490_s4 + $0x90] sm:$0xf]  ;;  %2583 = vrcp.f32 %v2637_v28 }
   0xe   : > { %554 = vmatpush.bf16.msra.mxu0 %v2214_v2  ;;  %v2222_v8 = vor.u32 %v2490_v7, %v2221_v5  ;;  %s349_s27 = scalar_lea.vmem %s3486_s0, %s2123_s23  ;;  %s2735_s11 = scalar_lea.vmem %s3487_s1, %s2124_s24  ;;  %v2486_v13 = vld [vmem:[%s3490_s4 + $0x98] sm:$0xf0]  ;;  %v2485_v14 = vld [vmem:[%s3490_s4 + $0x94] sm:$0xf]  ;;  %v2203_v16 = vld [vmem:[%s3490_s4 + $0x9c] sm:$0xf0] }
   0xf   : > { %567 = vmatpush.bf16.msra.mxu1 %v2218_v6  ;;  %v363_v9 = vld [vmem:[%s349_s27] sm:$0xf]  ;;  %s2742_s14 = scalar_lea.vmem %s3488_s2, %s2124_s24  ;;  %v2202_v15 = vor.u32 %v2486_v13, %v2201_v12  ;;  %v2209_v17 = vld [vmem:[%s3490_s4 + $0x98] sm:$0xf]  ;;  %v2487_v18 = vld [vmem:[%s3490_s4 + $0xa0] sm:$0xf0]  ;;  %v2206_v19 = vor.u32 %v2485_v14, %v2203_v16 }
  0x10   : > { %580 = vmatpush.bf16.msra.mxu2 %v2222_v8  ;;  %v2737_v10 = vunpack.c.l.bf16 %v363_v9  ;;  %v2210_v20 = vor.u32 %v2487_v18, %v2209_v17  ;;  %v2189_v21 = vld [vmem:[%s3490_s4 + $0x78] sm:$0xf]  ;;  %v2483_v22 = vld [vmem:[%s3490_s4 + $0x80] sm:$0xf0]  ;;  %v2482_v23 = vld [vmem:[%s3490_s4 + $0x7c] sm:$0xf] }
  0x11   : > { %v2190_v24 = vor.u32 %v2483_v22, %v2189_v21  ;;  %v2191_v25 = vld [vmem:[%s3490_s4 + $0x84] sm:$0xf0]  ;;  %v2197_v26 = vld [vmem:[%s3490_s4 + $0x80] sm:$0xf]  ;;  %v2484_v27 = vld [vmem:[%s3490_s4 + $0x88] sm:$0xf0] }
  0x12   : > { %v365_v11 = vmul.f32 %v2737_v10, %v2737_v10  ;;  %555 = vmatpush.bf16.msra.mxu0 %v2202_v15  ;;  %v2194_v29 = vor.u32 %v2482_v23, %v2191_v25  ;;  %v2198_v30 = vor.u32 %v2484_v27, %v2197_v26  ;;  %v2177_v31 = vld [vmem:[%s3490_s4 + $0x60] sm:$0xf]  ;;  %v2480_v32 = vld [vmem:[%s3490_s4 + $0x68] sm:$0xf0]  ;;  %v2479_v33 = vld [vmem:[%s3490_s4 + $0x64] sm:$0xf] }
  0x13   : > { %568 = vmatpush.bf16.msra.mxu1 %v2206_v19  ;;  %v2178_v34 = vor.u32 %v2480_v32, %v2177_v31  ;;  %v2179_v35 = vld [vmem:[%s3490_s4 + $0x6c] sm:$0xf0]  ;;  %v2185_v36 = vld [vmem:[%s3490_s4 + $0x68] sm:$0xf]  ;;  %v2481_v37 = vld [vmem:[%s3490_s4 + $0x70] sm:$0xf0]  ;;  %v2584_v40 = vpop.eup %2583 }
  0x14   : > { %366 = vadd.xlane.f32.xlu0 %v365_v11  ;;  %581 = vmatpush.bf16.msra.mxu2 %v2210_v20  ;;  %v2182_v38 = vor.u32 %v2479_v33, %v2179_v35  ;;  %v2186_v39 = vor.u32 %v2481_v37, %v2185_v36  ;;  %v2165_v41 = vld [vmem:[%s3490_s4 + $0x48] sm:$0xf]  ;;  %v2477_v42 = vld [vmem:[%s3490_s4 + $0x50] sm:$0xf0]  ;;  %v2476_v43 = vld [vmem:[%s3490_s4 + $0x4c] sm:$0xf]  ;;  %vm373_vm0 = vweird.f32 %v2584_v40 }
  0x15   : > { %v2166_v44 = vor.u32 %v2477_v42, %v2165_v41  ;;  %v2167_v45 = vld [vmem:[%s3490_s4 + $0x54] sm:$0xf0]  ;;  %v2173_v46 = vld [vmem:[%s3490_s4 + $0x50] sm:$0xf]  ;;  %v2478_v47 = vld [vmem:[%s3490_s4 + $0x58] sm:$0xf0] }
  0x16   : > { %556 = vmatpush.bf16.msra.mxu0 %v2190_v24  ;;  %v2170_v48 = vor.u32 %v2476_v43, %v2167_v45  ;;  %v2174_v49 = vor.u32 %v2478_v47, %v2173_v46  ;;  %v369_v50 = vmul.f32 128.0, %v2584_v40  ;;  %v2153_v51 = vld [vmem:[%s3490_s4 + $0x30] sm:$0xf]  ;;  %v2474_v52 = vld [vmem:[%s3490_s4 + $0x38] sm:$0xf0]  ;;  %s2640_s24 = smov 32  }
  0x17   : > { %569 = vmatpush.bf16.msra.mxu1 %v2194_v29  ;;  %v2473_v53 = vld [vmem:[%s3490_s4 + $0x34] sm:$0xf]  ;;  %v2154_v54 = vor.u32 %v2474_v52, %v2153_v51  ;;  %v2155_v55 = vld [vmem:[%s3490_s4 + $0x3c] sm:$0xf0]  ;;  %v2161_v56 = vld [vmem:[%s3490_s4 + $0x38] sm:$0xf] }
  0x18   : > { %582 = vmatpush.bf16.msra.mxu2 %v2198_v30  ;;  %v2475_v57 = vld [vmem:[%s3490_s4 + $0x40] sm:$0xf0]  ;;  %v2158_v58 = vor.u32 %v2473_v53, %v2155_v55  ;;  %v370_v60 = vsub.f32 1.0, %v369_v50  ;;  %v2141_v61 = vld [vmem:[%s3490_s4 + $0x18] sm:$0xf]  ;;  %s2643_s27 = smov 48  }
  0x19   : > { %v2162_v59 = vor.u32 %v2475_v57, %v2161_v56  ;;  %v2471_v62 = vld [vmem:[%s3490_s4 + $0x20] sm:$0xf0]  ;;  %v2470_v63 = vld [vmem:[%s3490_s4 + $0x1c] sm:$0xf]  ;;  %v2143_v1 = vld [vmem:[%s3490_s4 + $0x24] sm:$0xf0] }
  0x1a   : > { %557 = vmatpush.bf16.msra.mxu0 %v2178_v34  ;;  %v2142_v0 = vor.u32 %v2471_v62, %v2141_v61  ;;  %v2149_v2 = vld [vmem:[%s3490_s4 + $0x20] sm:$0xf]  ;;  %v2472_v3 = vld [vmem:[%s3490_s4 + $0x28] sm:$0xf0]  ;;  %v2146_v4 = vor.u32 %v2470_v63, %v2143_v1  ;;  %v2467_v8 = vld [vmem:[%s3490_s4 + $0x4] sm:$0xf]  ;;  %v371_v9 = vmul.f32 %v2584_v40, %v370_v60 }
  0x1b   : > { %570 = vmatpush.bf16.msra.mxu1 %v2182_v38  ;;  %v2150_v5 = vor.u32 %v2472_v3, %v2149_v2  ;;  %v2129_v6 = vld [vmem:[%s3490_s4] sm:$0xf]  ;;  %v2468_v7 = vld [vmem:[%s3490_s4 + $0x8] sm:$0xf0]  ;;  %v2131_v12 = vld [vmem:[%s3490_s4 + $0xc] sm:$0xf0] }
  0x1c   : > { %583 = vmatpush.bf16.msra.mxu2 %v2186_v39  ;;  %v2130_v11 = vor.u32 %v2468_v7, %v2129_v6  ;;  %v2137_v13 = vld [vmem:[%s3490_s4 + $0x8] sm:$0xf]  ;;  %v2469_v14 = vld [vmem:[%s3490_s4 + $0x10] sm:$0xf0]  ;;  %v2134_v15 = vor.u32 %v2467_v8, %v2131_v12  ;;  %v372_v17 = vadd.f32 %v2584_v40, %v371_v9  ;;  %v2565_v28 = vld [vmem:[%s3489_s3] ss:$0 sm:$0xff] }
  0x1d   : > { %v2138_v16 = vor.u32 %v2469_v14, %v2137_v13  ;;  %vm695_vm4 = vcmask 64512   ;;  %v2573_v61 = vld [vmem:[%s2742_s14] ss:$0 sm:$0xff]  ;;  %vm940_vm5 = vcmask 130048   ;;  %vm1304_vm6 = vcmask 1043456  }
  0x1e   : > { %558 = vmatpush.bf16.msra.mxu0 %v2166_v44  ;;  %v2872_v18 = vsel %vm373_vm0, %v2584_v40, %v372_v17  ;;  %v2574_v62 = vld [vmem:[%s2735_s11] ss:$0 sm:$0xff] }
  0x1f   : > { %571 = vmatpush.bf16.msra.mxu1 %v2170_v48 }
  0x20   : > { %584 = vmatpush.bf16.msra.mxu2 %v2174_v49 }
  0x22   : > { %559 = vmatpush.bf16.msra.mxu0 %v2154_v54 }
  0x23   : > { %572 = vmatpush.bf16.msra.mxu1 %v2158_v58 }
  0x24   : > { %585 = vmatpush.bf16.msra.mxu2 %v2162_v59 }
  0x26   : > { %560 = vmatpush.bf16.msra.mxu0 %v2142_v0 }
  0x27   : > { %573 = vmatpush.bf16.msra.mxu1 %v2146_v4 }
  0x28   : > { %586 = vmatpush.bf16.msra.mxu2 %v2150_v5 }
  0x2a   : > { %561 = vmatpush.bf16.msra.mxu0 %v2130_v11 }
  0x2b   : > { %574 = vmatpush.bf16.msra.mxu1 %v2134_v15 }
  0x2c   : > { %587 = vmatpush.bf16.msra.mxu2 %v2138_v16 }
  0x87   : > { %v367_v19 = vpop.xlane.xlu0 %366 }
  0x88   : > { %v375_v20 = vmul.f32 %v2872_v18, %v367_v19 }
  0x8a   : > { %v376_v21 = vadd.f32 1e-06, %v375_v20 }
  0x8c   : > { %2585 = vrsqrt.f32 %v376_v21  ;;  %vm383_vm2 = vweird.f32 %v376_v21 }
  0x92   : > { %v2586_v22 = vpop.eup %2585 }
  0x93   : > { %v378_v23 = vmul.f32 %v2586_v22, %v376_v21  ;;  %vm384_vm1 = vweird.f32 %v2586_v22 }
  0x94   : > { %vm385_vm3 = vmor %vm383_vm2, %vm384_vm1 }
  0x95   : > { %v379_v24 = vmul.f32 %v2586_v22, %v378_v23 }
  0x97   : > { %v380_v25 = vmul.f32 0.5, %v379_v24 }
  0x99   : > { %v381_v26 = vsub.f32 1.5, %v380_v25 }
  0x9b   : > { %v382_v27 = vmul.f32 %v2586_v22, %v381_v26  ;;  %v2569_v26 = vld [vmem:[%s2735_s11 + $0x1] ss:$0 sm:$0xff] }
  0x9d   : > { %v386_v29 = vsel %vm385_vm3, %v2586_v22, %v382_v27  ;;  %v2575_v27 = vld [vmem:[%s2742_s14 + $0x1] ss:$0 sm:$0xff] }
  0x9e   : > { %v387_v30 = vmul.f32 %v386_v29, %v2737_v10 }
  0xa0   : > { %v392_v31 = vmul.f32 %v2565_v28, %v387_v30 }
  0xa2   : > { %v393_v32 = vpack.c.bf16 %v392_v31, %v392_v31 }
  0xa4   : > { %562 = vmatmul.bf16.vlgmr.msra.gmra.mxu0 %v393_v32  ;;  %575 = vmatmul.bf16.vlgmr.msra.gmra.mxu1 %v393_v32 }
  0xa5   : > { %588 = vmatmul.bf16.vlgmr.msra.gmra.mxu2 %v393_v32 }
 0x121   : > { %v2879_v33 = vpop.f32.mrf.mxu0  ;;  %v2881_v34 = vpop.f32.mrf.mxu1 }
 0x122   : > { %785 = vrot.lane.b32.xlu0 %v2881_v34, %s2638_s21  ;;  %613 = vrot.lane.b32.xlu2 %v2879_v33, %s2639_s22  ;;  %v806_v39 = vsub.f32 0.0, %v2881_v34  ;;  %v631_v40 = vsub.f32 0.0, %v2879_v33  ;;  %v878_v6 = vmul.f32 %v2574_v62, %v2881_v34  ;;  %v728_v16 = vmul.f32 %v2574_v62, %v2879_v33 }
 0x123   : > { %610 = vrot.lane.b32.xlu1 %v2879_v33, %s2638_s21 }
 0x128   : > { %v2889_v35 = vpop.f32.mrf.mxu2 }
 0x129   : > { %v565_v36 = vpop.f32.mrf.mxu0  ;;  %v578_v37 = vpop.f32.mrf.mxu1 }
 0x12a   : > { %625 = vrot.lane.b32.xlu0 %v2879_v33, %s2640_s24  ;;  %791 = vrot.lane.b32.xlu2 %v2881_v34, %s2641_s25 }
 0x12b   : > { %788 = vrot.lane.b32.xlu1 %v2881_v34, %s2639_s22 }
 0x130   : > { %v591_v38 = vpop.f32.mrf.mxu2 }
 0x132   : > { %794 = vrot.lane.b32.xlu0 %v2881_v34, %s2642_s26  ;;  %800 = vrot.lane.b32.xlu2 %v2881_v34, %s2640_s24 }
 0x133   : > { %797 = vrot.lane.b32.xlu1 %v2881_v34, %s2643_s27 }
 0x13a   : > { %822 = vrot.lane.b32.xlu0 %v806_v39, %s2644_s28  ;;  %622 = vrot.lane.b32.xlu2 %v2879_v33, %s2643_s27 }
 0x13b   : > { %616 = vrot.lane.b32.xlu1 %v2879_v33, %s2641_s25 }
 0x142   : > { %628 = vrot.lane.b32.xlu2 %v2879_v33, %s2645_s29 }
 0x143   : > { %803 = vrot.lane.b32.xlu1 %v2881_v34, %s2645_s29 }
 0x14a   : > { %671 = vrot.lane.b32.xlu2 %v2879_v33, %s2646_s12 }
 0x14b   : > { %619 = vrot.lane.b32.xlu1 %v2879_v33, %s2642_s26 }
 0x153   : > { %846 = vrot.lane.b32.xlu1 %v2881_v34, %s2646_s12 }
 0x15b   : > { %647 = vrot.lane.b32.xlu1 %v631_v40, %s2644_s28 }
 0x17c   : > { %v2921_v41 = vpop.permute.xlu2 %613 }
 0x17d   : > { %v633_v56 = vsub.f32 0.0, %v2921_v41 }
 0x184   : > { %v2933_v45 = vpop.permute.xlu2 %791 }
 0x185   : > { %v809_v63 = vsub.f32 0.0, %v2933_v45 }
 0x18c   : > { %v2941_v47 = vpop.permute.xlu2 %800 }
 0x18d   : > { %v812_v0 = vsub.f32 0.0, %v2941_v47 }
 0x194   : > { %v2923_v42 = vpop.permute.xlu0 %785  ;;  %v2953_v50 = vpop.permute.xlu2 %622 }
 0x195   : > { %v807_v43 = vsub.f32 0.0, %v2923_v42  ;;  %v2926_v44 = vpop.permute.xlu1 %610  ;;  %848 = vrot.lane.b32.xlu2 %v2923_v42, %s2646_s12  ;;  %v636_v58 = vsub.f32 0.0, %v2953_v50  ;;  %v879_v32 = vmul.f32 %v2569_v26, %v2923_v42  ;;  %v2566_v42 = vld [vmem:[%s2735_s11 + $0x2] ss:$0 sm:$0xff] }
 0x196   : > { %673 = vrot.lane.b32.xlu0 %v2926_v44, %s2646_s12  ;;  %v632_v52 = vsub.f32 0.0, %v2926_v44 }
 0x197   : > { %824 = vrot.lane.b32.xlu1 %v807_v43, %s2644_s28 }
 0x19c   : > { %v2951_v49 = vpop.permute.xlu0 %625  ;;  %v2981_v60 = vpop.permute.xlu2 %628 }
 0x19d   : > { %v2935_v46 = vpop.permute.xlu1 %788  ;;  %v637_v9 = vsub.f32 0.0, %v2951_v49  ;;  %v638_v23 = vsub.f32 0.0, %v2981_v60 }
 0x19e   : > { %850 = vrot.lane.b32.xlu0 %v2935_v46, %s2646_s12  ;;  %v808_v57 = vsub.f32 0.0, %v2935_v46 }
 0x19f   : > { %675 = vrot.lane.b32.xlu1 %v2921_v41, %s2646_s12 }
 0x1a4   : > { %v2964_v53 = vpop.permute.xlu0 %794  ;;  %v672_v12 = vpop.permute.xlu2 %671 }
 0x1a5   : > { %v2943_v48 = vpop.permute.xlu1 %797  ;;  %v810_v21 = vsub.f32 0.0, %v2964_v53 }
 0x1a6   : > { %852 = vrot.lane.b32.xlu0 %v2933_v45, %s2646_s12  ;;  %856 = vrot.lane.b32.xlu2 %v2943_v48, %s2646_s12  ;;  %v811_v54 = vsub.f32 0.0, %v2943_v48 }
 0x1a7   : > { %858 = vrot.lane.b32.xlu1 %v2941_v47, %s2646_s12 }
 0x1ac   : > { %v823_v1 = vpop.permute.xlu0 %822 }
 0x1ad   : > { %v2955_v51 = vpop.permute.xlu1 %616 }
 0x1ae   : > { %681 = vrot.lane.b32.xlu2 %v2953_v50, %s2646_s12  ;;  %677 = vrot.lane.b32.xlu0 %v2955_v51, %s2646_s12  ;;  %v634_v11 = vsub.f32 0.0, %v2955_v51 }
 0x1af   : > { %683 = vrot.lane.b32.xlu1 %v2951_v49, %s2646_s12 }
 0x1b5   : > { %v2967_v55 = vpop.permute.xlu1 %803 }
 0x1b6   : > { %649 = vrot.lane.b32.xlu2 %v632_v52, %s2644_s28  ;;  %854 = vrot.lane.b32.xlu0 %v2964_v53, %s2646_s12  ;;  %v813_v2 = vsub.f32 0.0, %v2967_v55  ;;  %v729_v52 = vmul.f32 %v2569_v26, %v2926_v44 }
 0x1b7   : > { %832 = vrot.lane.b32.xlu1 %v811_v54, %s2644_s28 }
 0x1bd   : > { %v2976_v59 = vpop.permute.xlu1 %619 }
 0x1be   : > { %826 = vrot.lane.b32.xlu2 %v808_v57, %s2644_s28  ;;  %651 = vrot.lane.b32.xlu0 %v633_v56, %s2644_s28  ;;  %v635_v22 = vsub.f32 0.0, %v2976_v59  ;;  %v2576_v57 = vld [vmem:[%s2742_s14 + $0x2] ss:$0 sm:$0xff] }
 0x1bf   : > { %657 = vrot.lane.b32.xlu1 %v636_v58, %s2644_s28 }
 0x1c5   : > { %v847_v3 = vpop.permute.xlu1 %846 }
 0x1c6   : > { %v870_v4 = vsel %vm695_vm4, %v823_v1, %v847_v3  ;;  %828 = vrot.lane.b32.xlu2 %v809_v63, %s2644_s28  ;;  %834 = vrot.lane.b32.xlu0 %v812_v0, %s2644_s28  ;;  %v880_v1 = vmul.f32 %v2566_v42, %v2935_v46  ;;  %v2567_v3 = vld [vmem:[%s2735_s11 + $0x3] ss:$0 sm:$0xff] }
 0x1c7   : > { %v886_v5 = vmul.f32 %v2573_v61, %v870_v4  ;;  %836 = vrot.lane.b32.xlu1 %v813_v2, %s2644_s28  ;;  %v2577_v4 = vld [vmem:[%s2742_s14 + $0x3] ss:$0 sm:$0xff] }
 0x1c9   : > { %v894_v7 = vadd.f32 %v886_v5, %v878_v6 }
 0x1cb   : > { %v902_v8 = vpack.c.bf16 %v894_v7, %v894_v7 }
 0x1cd   : > { %v648_v13 = vpop.permute.xlu1 %647  ;;  %v945_v14 = vsel %vm940_vm5, %v902_v8, 0 }
 0x1ce   : > { %v696_v15 = vsel %vm695_vm4, %v648_v13, %v672_v12  ;;  %653 = vrot.lane.b32.xlu2 %v634_v11, %s2644_s28  ;;  %659 = vrot.lane.b32.xlu0 %v637_v9, %s2644_s28  ;;  %v881_v12 = vmul.f32 %v2567_v3, %v2933_v45 }
 0x1cf   : > { %v760_v17 = vmul.f32 %v2573_v61, %v696_v15  ;;  %954 = vmatpush.bf16.xpose.msrb.mxu0 %v945_v14  ;;  %679 = vrot.lane.b32.xlu1 %v2976_v59, %s2646_s12  ;;  %v2578_v15 = vld [vmem:[%s2742_s14 + $0x5] ss:$0 sm:$0xff] }
 0x1d1   : > { %v768_v19 = vadd.f32 %v760_v17, %v728_v16 }
 0x1d3   : > { %v776_v20 = vpack.c.bf16 %v768_v19, %v768_v19 }
 0x1d6   : > { %2223 = vmatmul.msk.bf16.vlgmr.msrb.gmra.mxu0 %vm940_vm5, %v776_v20  ;;  %830 = vrot.lane.b32.xlu2 %v810_v21, %s2644_s28  ;;  %v2570_v20 = vld [vmem:[%s2735_s11 + $0x5] ss:$0 sm:$0xff] }
 0x1d7   : > { %655 = vrot.lane.b32.xlu0 %v635_v22, %s2644_s28  ;;  %v883_v26 = vmul.f32 %v2570_v20, %v2943_v48 }
 0x1de   : > { %860 = vrot.lane.b32.xlu2 %v2967_v55, %s2646_s12 }
 0x1df   : > { %685 = vrot.lane.b32.xlu0 %v2981_v60, %s2646_s12 }
 0x1e6   : > { %661 = vrot.lane.b32.xlu2 %v638_v23, %s2644_s28  ;;  %v731_v23 = vmul.f32 %v2567_v3, %v2955_v51  ;;  %v730_v51 = vmul.f32 %v2566_v42, %v2921_v41  ;;  %v733_v41 = vmul.f32 %v2570_v20, %v2953_v50 }
 0x1ee   : > { %911 = vrot.lane.b32.xlu2 %v2889_v35, %s2638_s21 }
 0x1ef   : > { %v849_v24 = vpop.permute.xlu2 %848 }
 0x200   : > { %v857_v25 = vpop.permute.xlu2 %856 }
 0x208   : > { %v674_v28 = vpop.permute.xlu0 %673  ;;  %v3017_v29 = vpop.permute.xlu2 %681 }
 0x209   : > { %v825_v30 = vpop.permute.xlu1 %824 }
 0x20a   : > { %v871_v31 = vsel %vm695_vm4, %v825_v30, %v849_v24 }
 0x20b   : > { %v887_v33 = vmul.f32 %v2575_v27, %v871_v31  ;;  %v3046_v31 = vld [vmem:[%s2735_s11 + $0x4] ss:$0 sm:$0xff] }
 0x20d   : > { %v895_v34 = vadd.f32 %v887_v33, %v879_v32  ;;  %v3049_v33 = vld [vmem:[%s2742_s14 + $0x4] ss:$0 sm:$0xff] }
 0x20f   : > { %v903_v36 = vpack.c.bf16 %v895_v34, %v895_v34 }
 0x210   : > { %v851_v37 = vpop.permute.xlu0 %850  ;;  %v650_v38 = vpop.permute.xlu2 %649 }
 0x211   : > { %v697_v39 = vsel %vm695_vm4, %v650_v38, %v674_v28  ;;  %v676_v40 = vpop.permute.xlu1 %675  ;;  %v964_v43 = vsel %vm940_vm5, %v903_v36, 0 }
 0x212   : > { %v761_v54 = vmul.f32 %v2575_v27, %v697_v39  ;;  %973 = vmatpush.bf16.xpose.msra.mxu3 %v964_v43  ;;  %v882_v43 = vmul.f32 %v3046_v31, %v2964_v53 }
 0x214   : > { %v769_v56 = vadd.f32 %v761_v54, %v729_v52 }
 0x216   : > { %v777_v58 = vpack.c.bf16 %v769_v56, %v769_v56 }
 0x218   : > { %v853_v61 = vpop.permute.xlu0 %852  ;;  %v827_v62 = vpop.permute.xlu2 %826 }
 0x219   : > { %v872_v63 = vsel %vm695_vm4, %v827_v62, %v851_v37  ;;  %2224 = vmatmul.msk.bf16.vlgmr.msra.gmra.mxu3 %vm940_vm5, %v777_v58  ;;  %v3028_v0 = vpop.permute.xlu1 %858  ;;  %v932_v62 = vpack.c.bf16 %v2889_v35, %v2889_v35 }
 0x21a   : > { %v888_v2 = vmul.f32 %v2576_v57, %v872_v63  ;;  %v2568_v63 = vld [vmem:[%s2735_s11 + $0x6] ss:$0 sm:$0xff] }
 0x21c   : > { %v896_v44 = vadd.f32 %v888_v2, %v880_v1  ;;  %v2580_v1 = vld [vmem:[%s2742_s14 + $0x6] ss:$0 sm:$0xff] }
 0x21e   : > { %v904_v5 = vpack.c.bf16 %v896_v44, %v896_v44  ;;  %v2581_v44 = vld [vmem:[%s2742_s14 + $0x7] ss:$0 sm:$0xff] }
 0x220   : > { %v829_v6 = vpop.permute.xlu2 %828  ;;  %v678_v7 = vpop.permute.xlu0 %677  ;;  %v983_v8 = vsel %vm940_vm5, %v904_v5, 0 }
 0x221   : > { %v873_v9 = vsel %vm695_vm4, %v829_v6, %v853_v61  ;;  %992 = vmatpush.bf16.xpose.msrb.mxu3 %v983_v8  ;;  %v3035_v11 = vpop.permute.xlu1 %683  ;;  %v1306_v6 = vsel %vm1304_vm6, %v932_v62, 0  ;;  %v884_v8 = vmul.f32 %v2568_v63, %v2941_v47 }
 0x222   : > { %v889_v13 = vmul.f32 %v2577_v4, %v873_v9 }
 0x224   : > { %v897_v46 = vadd.f32 %v889_v13, %v881_v12 }
 0x226   : > { %v905_v14 = vpack.c.bf16 %v897_v46, %v897_v46 }
 0x228   : > { %v654_v16 = vpop.permute.xlu2 %653  ;;  %v855_v17 = vpop.permute.xlu0 %854  ;;  %v1002_v19 = vsel %vm940_vm5, %v905_v14, 0 }
 0x229   : > { %v699_v21 = vsel %vm695_vm4, %v654_v16, %v678_v7  ;;  %1011 = vmatpush.bf16.xpose.msra.mxu0 %v1002_v19  ;;  %v833_v22 = vpop.permute.xlu1 %832 }
 0x22a   : > { %v763_v24 = vmul.f32 %v2577_v4, %v699_v21  ;;  %v875_v45 = vsel %vm695_vm4, %v833_v22, %v857_v25  ;;  %v2571_v4 = vld [vmem:[%s2735_s11 + $0x7] ss:$0 sm:$0xff]  ;;  %v734_v22 = vmul.f32 %v2568_v63, %v2951_v49  ;;  %s361_s11 = scalar_lea.vmem %s3495_s9, %s2123_s23 }
 0x22b   : > { %v891_v27 = vmul.f32 %v2578_v15, %v875_v45  ;;  %v885_v13 = vmul.f32 %v2571_v4, %v2967_v55 }
 0x22c   : > { %v771_v28 = vadd.f32 %v763_v24, %v731_v23 }
 0x22d   : > { %v899_v30 = vadd.f32 %v891_v27, %v883_v26 }
 0x22e   : > { %v779_v32 = vpack.c.bf16 %v771_v28, %v771_v28 }
 0x22f   : > { %v907_v34 = vpack.c.bf16 %v899_v30, %v899_v30 }
 0x230   : > { %v831_v36 = vpop.permute.xlu2 %830  ;;  %v652_v37 = vpop.permute.xlu0 %651  ;;  %2226 = vmatmul.msk.bf16.vlgmr.msra.gmra.mxu0 %vm940_vm5, %v779_v32 }
 0x231   : > { %v874_v25 = vsel %vm695_vm4, %v831_v36, %v855_v17  ;;  %v698_v48 = vsel %vm695_vm4, %v652_v37, %v676_v40  ;;  %v658_v38 = vpop.permute.xlu1 %657  ;;  %v1040_v39 = vsel %vm940_vm5, %v907_v34, 0 }
 0x232   : > { %v890_v52 = vmul.f32 %v3049_v33, %v874_v25  ;;  %v762_v54 = vmul.f32 %v2576_v57, %v698_v48  ;;  %v701_v56 = vsel %vm695_vm4, %v658_v38, %v3017_v29  ;;  %1049 = vmatpush.bf16.xpose.msrb.mxu2 %v1040_v39  ;;  %v735_v25 = vmul.f32 %v2571_v4, %v2981_v60 }
 0x233   : > { %v765_v58 = vmul.f32 %v2578_v15, %v701_v56 }
 0x234   : > { %v770_v40 = vadd.f32 %v762_v54, %v730_v51  ;;  %v898_v42 = vadd.f32 %v890_v52, %v882_v43 }
 0x235   : > { %v773_v61 = vadd.f32 %v765_v58, %v733_v41 }
 0x236   : > { %v778_v53 = vpack.c.bf16 %v770_v40, %v770_v40  ;;  %v906_v2 = vpack.c.bf16 %v898_v42, %v898_v42 }
 0x237   : > { %v781_v57 = vpack.c.bf16 %v773_v61, %v773_v61 }
 0x238   : > { %v835_v3 = vpop.permute.xlu0 %834  ;;  %v861_v29 = vpop.permute.xlu2 %860  ;;  %2225 = vmatmul.msk.bf16.vlgmr.msrb.gmra.mxu3 %vm940_vm5, %v778_v53  ;;  %v1021_v50 = vsel %vm940_vm5, %v906_v2, 0 }
 0x239   : > { %v876_v5 = vsel %vm695_vm4, %v835_v3, %v3028_v0  ;;  %1030 = vmatpush.bf16.xpose.msrb.mxu1 %v1021_v50  ;;  %2228 = vmatmul.msk.bf16.vlgmr.msrb.gmra.mxu2 %vm940_vm5, %v781_v57  ;;  %v837_v7 = vpop.permute.xlu1 %836 }
 0x23a   : > { %v892_v9 = vmul.f32 %v2580_v1, %v876_v5  ;;  %v877_v12 = vsel %vm695_vm4, %v837_v7, %v861_v29 }
 0x23b   : > { %v893_v46 = vmul.f32 %v2581_v44, %v877_v12 }
 0x23c   : > { %v900_v14 = vadd.f32 %v892_v9, %v884_v8 }
 0x23d   : > { %v901_v15 = vadd.f32 %v893_v46, %v885_v13 }
 0x23e   : > { %v908_v16 = vpack.c.bf16 %v900_v14, %v900_v14 }
 0x23f   : > { %v909_v17 = vpack.c.bf16 %v901_v15, %v901_v15 }
 0x240   : > { %v660_v0 = vpop.permute.xlu0 %659  ;;  %v662_v19 = vpop.permute.xlu2 %661  ;;  %v1059_v20 = vsel %vm940_vm5, %v908_v16, 0 }
 0x241   : > { %1315 = vmatpush.bf16.msra.mxu1 %v1306_v6  ;;  %v702_v21 = vsel %vm695_vm4, %v660_v0, %v3035_v11  ;;  %1068 = vmatpush.bf16.xpose.msra.mxu3 %v1059_v20  ;;  %v1078_v47 = vsel %vm940_vm5, %v909_v17, 0  ;;  %v680_v26 = vpop.permute.xlu1 %679  ;;  %v732_v11 = vmul.f32 %v3046_v31, %v2976_v59 }
 0x242   : > { %v766_v23 = vmul.f32 %v2580_v1, %v702_v21  ;;  %1087 = vmatpush.bf16.xpose.msrb.mxu0 %v1078_v47 }
 0x244   : > { %v774_v55 = vadd.f32 %v766_v23, %v734_v22 }
 0x246   : > { %v782_v24 = vpack.c.bf16 %v774_v55, %v774_v55 }
 0x248   : > { %v912_v45 = vpop.permute.xlu2 %911  ;;  %2229 = vmatmul.msk.bf16.vlgmr.msra.gmra.mxu3 %vm940_vm5, %v782_v24 }
 0x249   : > { %v933_v27 = vpack.c.bf16 %v912_v45, %v912_v45  ;;  %v656_v28 = vpop.permute.xlu0 %655 }
 0x24a   : > { %v700_v30 = vsel %vm695_vm4, %v656_v28, %v680_v26 }
 0x24b   : > { %v1325_v32 = vsel %vm1304_vm6, %v933_v27, 0  ;;  %v764_v34 = vmul.f32 %v3049_v33, %v700_v30 }
 0x24c   : > { %1334 = vmatpush.bf16.msra.mxu2 %v1325_v32 }
 0x24d   : > { %v772_v49 = vadd.f32 %v764_v34, %v732_v11 }
 0x24f   : > { %v780_v36 = vpack.c.bf16 %v772_v49, %v772_v49 }
 0x251   : > { %v686_v37 = vpop.permute.xlu0 %685  ;;  %2227 = vmatmul.msk.bf16.vlgmr.msrb.gmra.mxu1 %vm940_vm5, %v780_v36 }
 0x252   : > { %v703_v51 = vsel %vm695_vm4, %v662_v19, %v686_v37 }
 0x253   : > { %v767_v48 = vmul.f32 %v2581_v44, %v703_v51  ;;  %v956_v38 = vpop.f32.mrf.mxu0 }
 0x254   : > { %v1093_v39 = vmul.f32 0.25, %v956_v38 }
 0x255   : > { %v775_v43 = vadd.f32 %v767_v48, %v735_v25 }
 0x256   : > { %v1101_v59 = vsel %vm695_vm4, %v1093_v39, -inf }
 0x257   : > { %v783_v31 = vpack.c.bf16 %v775_v43, %v775_v43  ;;  %1102 = vmax.xlane.f32.xlu0 %v1101_v59 }
 0x259   : > { %2230 = vmatmul.msk.bf16.vlgmr.msrb.gmra.mxu0 %vm940_vm5, %v783_v31 }
 0x25b   : > { %v958_v33 = vpop.f32.mrf.mxu0 }
 0x29c   : > { %v975_v52 = vpop.f32.mrf.mxu3 }
 0x29d   : > { %v1094_v54 = vmul.f32 0.25, %v975_v52 }
 0x29f   : > { %v1104_v56 = vsel %vm695_vm4, %v1094_v54, -inf }
 0x2a0   : > { %1105 = vmax.xlane.f32.xlu1 %v1104_v56 }
 0x2a4   : > { %v977_v41 = vpop.f32.mrf.mxu3 }
 0x2ad   : > { %v1013_v58 = vpop.f32.mrf.mxu0 }
 0x2ae   : > { %v1096_v40 = vmul.f32 0.25, %v1013_v58 }
 0x2b0   : > { %v1110_v60 = vsel %vm695_vm4, %v1096_v40, -inf }
 0x2b1   : > { %1111 = vmax.xlane.f32.xlu2 %v1110_v60 }
 0x2b5   : > { %v1015_v42 = vpop.f32.mrf.mxu0 }
 0x2bb   : > { %v994_v61 = vpop.f32.mrf.mxu3 }
 0x2bc   : > { %v1051_v62 = vpop.f32.mrf.mxu2  ;;  %v1095_v12 = vmul.f32 0.25, %v994_v61 }
 0x2bd   : > { %v1098_v63 = vmul.f32 0.25, %v1051_v62 }
 0x2be   : > { %v1107_v15 = vsel %vm695_vm4, %v1095_v12, -inf }
 0x2bf   : > { %v1116_v53 = vsel %vm695_vm4, %v1098_v63, -inf }
 0x2c0   : > { %1117 = vmax.xlane.f32.xlu1 %v1116_v53 }
 0x2c3   : > { %v996_v1 = vpop.f32.mrf.mxu3 }
 0x2c4   : > { %v1053_v2 = vpop.f32.mrf.mxu2 }
 0x2ca   : > { %v1103_v57 = vpop.xlane.xlu0 %1102 }
 0x2cb   : > { %v1125_v44 = vsub.f32 %v1093_v39, %v1103_v57  ;;  %v1070_v3 = vpop.f32.mrf.mxu3 }
 0x2cc   : > { %v1099_v29 = vmul.f32 0.25, %v1070_v3 }
 0x2cd   : > { %v1133_v50 = vmul.f32 1.442695, %v1125_v44 }
 0x2ce   : > { %v1032_v4 = vpop.f32.mrf.mxu1  ;;  %v1119_v5 = vsel %vm695_vm4, %v1099_v29, -inf }
 0x2cf   : > { %2587 = vpow2.f32 %v1133_v50  ;;  %v1097_v6 = vmul.f32 0.25, %v1032_v4  ;;  %1120 = vmax.xlane.f32.xlu0 %v1119_v5 }
 0x2d1   : > { %v1113_v7 = vsel %vm695_vm4, %v1097_v6, -inf }
 0x2d2   : > { %1114 = vmax.xlane.f32.xlu2 %v1113_v7 }
 0x2d3   : > { %v1072_v8 = vpop.f32.mrf.mxu3 }
 0x2d5   : > { %v3098_v9 = vpop.eup %2587 }
 0x2d6   : > { %v1034_v13 = vpop.f32.mrf.mxu1  ;;  %v1089_v46 = vpop.f32.mrf.mxu0  ;;  %v1149_v14 = vsel %vm695_vm4, %v3098_v9, 0.0 }
 0x2d7   : > { %1150 = vadd.xlane.f32.xlu1 %v1149_v14  ;;  %v3103_v16 = vmul.f32 0.25, %v1089_v46 }
 0x2d9   : > { %v1122_v0 = vsel %vm695_vm4, %v3103_v16, -inf }
 0x2da   : > { %1108 = vmax.xlane.f32.xlu2 %v1107_v15 }
 0x2de   : > { %v1091_v17 = vpop.f32.mrf.mxu0 }
 0x2df   : > { %1123 = vmax.xlane.f32.xlu1 %v1122_v0 }
 0x2f2   : > { %917 = vrot.lane.b32.xlu2 %v2889_v35, %s2641_s25 }
 0x313   : > { %v1106_v19 = vpop.xlane.xlu1 %1105 }
 0x314   : > { %v1126_v47 = vsub.f32 %v1094_v54, %v1106_v19 }
 0x316   : > { %v1135_v23 = vmul.f32 1.442695, %v1126_v47 }
 0x324   : > { %v1112_v20 = vpop.xlane.xlu2 %1111 }
 0x325   : > { %v1128_v21 = vsub.f32 %v1096_v40, %v1112_v20 }
 0x327   : > { %v1139_v22 = vmul.f32 1.442695, %v1128_v21 }
 0x329   : > { %2589 = vpow2.f32 %v1139_v22 }
 0x32a   : > { %2591 = vpow2.f32 %v1135_v23 }
 0x32f   : > { %v3109_v55 = vpop.eup %2589 }
 0x330   : > { %v1158_v24 = vsel %vm695_vm4, %v3109_v55, 0.0  ;;  %v3113_v45 = vpop.eup %2591 }
 0x331   : > { %1159 = vadd.xlane.f32.xlu0 %v1158_v24  ;;  %v1152_v26 = vsel %vm695_vm4, %v3113_v45, 0.0 }
 0x333   : > { %v1118_v27 = vpop.xlane.xlu1 %1117 }
 0x334   : > { %v1130_v11 = vsub.f32 %v1098_v63, %v1118_v27 }
 0x336   : > { %v1143_v49 = vmul.f32 1.442695, %v1130_v11 }
 0x339   : > { %1153 = vadd.xlane.f32.xlu0 %v1152_v26 }
 0x342   : > { %v1121_v36 = vpop.xlane.xlu0 %1120 }
 0x343   : > { %v1131_v48 = vsub.f32 %v1099_v29, %v1121_v36 }
 0x345   : > { %v1115_v28 = vpop.xlane.xlu2 %1114  ;;  %v1145_v31 = vmul.f32 1.442695, %v1131_v48 }
 0x346   : > { %v1129_v30 = vsub.f32 %v1097_v6, %v1115_v28 }
 0x348   : > { %v1141_v32 = vmul.f32 1.442695, %v1129_v30 }
 0x34a   : > { %2593 = vpow2.f32 %v1141_v32  ;;  %v1151_v34 = vpop.xlane.xlu1 %1150 }
 0x34b   : > { %2595 = vrcp.f32 %v1151_v34  ;;  %v1184_v52 = vand.u32 2147483648, %v1151_v34  ;;  %v1182_v58 = vand.u32 2147483647, %v1151_v34  ;;  %vm1178_vm8 = vweird.f32 %v1151_v34 }
 0x34c   : > { %2597 = vpow2.f32 %v1143_v49 }
 0x34d   : > { %v1109_v37 = vpop.xlane.xlu2 %1108  ;;  %914 = vrot.lane.b32.xlu0 %v2889_v35, %s2639_s22  ;;  %v1185_v62 = vor.u32 1.1754944e-38, %v1184_v52  ;;  %vm1183_vm10 = vcmp.eq.f32.partialorder %v1182_v58, 8.507059e+37 }
 0x34e   : > { %v1127_v51 = vsub.f32 %v1095_v12, %v1109_v37 }
 0x350   : > { %v3119_v25 = vpop.eup %2593  ;;  %v1137_v38 = vmul.f32 1.442695, %v1127_v51 }
 0x351   : > { %v2596_v39 = vpop.eup %2595  ;;  %v1161_v43 = vsel %vm695_vm4, %v3119_v25, 0.0 }
 0x352   : > { %v1174_v59 = vmul.f32 %v2596_v39, %v1151_v34  ;;  %2599 = vpow2.f32 %v1137_v38  ;;  %1162 = vadd.xlane.f32.xlu1 %v1161_v43  ;;  %v3123_v56 = vpop.eup %2597  ;;  %vm1179_vm7 = vweird.f32 %v2596_v39  ;;  %v1124_v50 = vpop.xlane.xlu1 %1123 }
 0x353   : > { %2601 = vpow2.f32 %v1145_v31  ;;  %vm1180_vm9 = vmor %vm1178_vm8, %vm1179_vm7  ;;  %v1164_v53 = vsel %vm695_vm4, %v3123_v56, 0.0  ;;  %v1132_v4 = vsub.f32 %v3103_v16, %v1124_v50 }
 0x354   : > { %v1175_v33 = vsub.f32 1.0, %v1174_v59 }
 0x355   : > { %v918_v54 = vpop.permute.xlu2 %917  ;;  %v1147_v5 = vmul.f32 1.442695, %v1132_v4 }
 0x356   : > { %v1176_v41 = vmul.f32 %v2596_v39, %v1175_v33  ;;  %v935_v40 = vpack.c.bf16 %v918_v54, %v918_v54 }
 0x357   : > { %2603 = vpow2.f32 %v1147_v5 }
 0x358   : > { %v3125_v60 = vpop.eup %2599  ;;  %v1177_v42 = vadd.f32 %v2596_v39, %v1176_v41  ;;  %v1363_v61 = vsel %vm1304_vm6, %v935_v40, 0 }
 0x359   : > { %1372 = vmatpush.bf16.msra.mxu0 %v1363_v61  ;;  %v1155_v63 = vsel %vm695_vm4, %v3125_v60, 0.0  ;;  %v3133_v44 = vpop.eup %2601 }
 0x35a   : > { %v1181_v1 = vsel %vm1180_vm9, %v2596_v39, %v1177_v42  ;;  %1156 = vadd.xlane.f32.xlu2 %v1155_v63  ;;  %1165 = vadd.xlane.f32.xlu1 %v1164_v53  ;;  %v1167_v29 = vsel %vm695_vm4, %v3133_v44, 0.0 }
 0x35b   : > { %v1186_v2 = vsel %vm1183_vm10, %v1185_v62, %v1181_v1 }
 0x35c   : > { %v1187_v57 = vmul.f32 %v3098_v9, %v1186_v2 }
 0x35d   : > { %v3141_v6 = vpop.eup %2603 }
 0x35e   : > { %v1293_v3 = vpack.c.bf16 %v1187_v57, %v1187_v57  ;;  %v1170_v7 = vsel %vm695_vm4, %v3141_v6, 0.0 }
 0x360   : > { %2231 = vmatmul.msk.bf16.vlgmr.msra.gmra.mxu1 %vm695_vm4, %v1293_v3 }
 0x362   : > { %1168 = vadd.xlane.f32.xlu1 %v1167_v29 }
 0x372   : > { %926 = vrot.lane.b32.xlu2 %v2889_v35, %s2640_s24 }
 0x377   : > { %1171 = vadd.xlane.f32.xlu0 %v1170_v7 }
 0x37a   : > { %920 = vrot.lane.b32.xlu2 %v2889_v35, %s2642_s26 }
 0x37b   : > { %923 = vrot.lane.b32.xlu1 %v2889_v35, %s2643_s27 }
 0x382   : > { %929 = vrot.lane.b32.xlu2 %v2889_v35, %s2645_s29 }
 0x3a4   : > { %v1160_v8 = vpop.xlane.xlu0 %1159 }
 0x3a5   : > { %2605 = vrcp.f32 %v1160_v8  ;;  %v1229_v14 = vand.u32 2147483648, %v1160_v8  ;;  %v1227_v16 = vand.u32 2147483647, %v1160_v8  ;;  %vm1223_vm12 = vweird.f32 %v1160_v8 }
 0x3a7   : > { %v1230_v19 = vor.u32 1.1754944e-38, %v1229_v14  ;;  %vm1228_vm14 = vcmp.eq.f32.partialorder %v1227_v16, 8.507059e+37 }
 0x3ab   : > { %v2606_v9 = vpop.eup %2605 }
 0x3ac   : > { %v1219_v12 = vmul.f32 %v2606_v9, %v1160_v8  ;;  %v1154_v13 = vpop.xlane.xlu0 %1153  ;;  %vm1224_vm11 = vweird.f32 %v2606_v9 }
 0x3ad   : > { %2607 = vrcp.f32 %v1154_v13  ;;  %vm1225_vm13 = vmor %vm1223_vm12, %vm1224_vm11  ;;  %v1199_v23 = vand.u32 2147483648, %v1154_v13  ;;  %v1197_v26 = vand.u32 2147483647, %v1154_v13  ;;  %vm1193_vm0 = vweird.f32 %v1154_v13 }
 0x3ae   : > { %v1220_v46 = vsub.f32 1.0, %v1219_v12 }
 0x3af   : > { %v1200_v30 = vor.u32 1.1754944e-38, %v1199_v23  ;;  %vm1198_vm2 = vcmp.eq.f32.partialorder %v1197_v26, 8.507059e+37 }
 0x3b0   : > { %v1221_v15 = vmul.f32 %v2606_v9, %v1220_v46 }
 0x3b2   : > { %v1222_v17 = vadd.f32 %v2606_v9, %v1221_v15 }
 0x3b3   : > { %v2608_v0 = vpop.eup %2607 }
 0x3b4   : > { %v1226_v20 = vsel %vm1225_vm13, %v2606_v9, %v1222_v17  ;;  %v1189_v21 = vmul.f32 %v2608_v0, %v1154_v13  ;;  %vm1194_vm15 = vweird.f32 %v2608_v0 }
 0x3b5   : > { %v1231_v35 = vsel %vm1228_vm14, %v1230_v19, %v1226_v20  ;;  %vm1195_vm1 = vmor %vm1193_vm0, %vm1194_vm15 }
 0x3b6   : > { %v1232_v47 = vmul.f32 %v3109_v55, %v1231_v35  ;;  %v1190_v22 = vsub.f32 1.0, %v1189_v21 }
 0x3b8   : > { %v1191_v24 = vmul.f32 %v2608_v0, %v1190_v22  ;;  %v1296_v27 = vpack.c.bf16 %v1232_v47, %v1232_v47 }
 0x3ba   : > { %v1192_v28 = vadd.f32 %v2608_v0, %v1191_v24  ;;  %2234 = vmatmul.msk.bf16.vlgmr.msra.gmra.mxu0 %vm695_vm4, %v1296_v27 }
 0x3bc   : > { %v1196_v11 = vsel %vm1195_vm1, %v2608_v0, %v1192_v28 }
 0x3bd   : > { %v1201_v32 = vsel %vm1198_vm2, %v1200_v30, %v1196_v11 }
 0x3be   : > { %v1202_v34 = vmul.f32 %v3113_v45, %v1201_v32 }
 0x3bf   : > { %v915_v49 = vpop.permute.xlu0 %914 }
 0x3c0   : > { %v934_v36 = vpack.c.bf16 %v915_v49, %v915_v49  ;;  %v1294_v55 = vpack.c.bf16 %v1202_v34, %v1202_v34 }
 0x3c2   : > { %v1344_v37 = vsel %vm1304_vm6, %v934_v36, 0  ;;  %2232 = vmatmul.msk.bf16.vlgmr.msra.gmra.mxu2 %vm695_vm4, %v1294_v55 }
 0x3c3   : > { %1353 = vmatpush.bf16.msrb.mxu3 %v1344_v37 }
 0x3c5   : > { %v1163_v51 = vpop.xlane.xlu1 %1162 }
 0x3c6   : > { %2609 = vrcp.f32 %v1163_v51  ;;  %v1244_v40 = vand.u32 2147483648, %v1163_v51  ;;  %vm1238_vm7 = vweird.f32 %v1163_v51  ;;  %v1242_v61 = vand.u32 2147483647, %v1163_v51 }
 0x3c8   : > { %v1245_v29 = vor.u32 1.1754944e-38, %v1244_v40  ;;  %vm1243_vm10 = vcmp.eq.f32.partialorder %v1242_v61, 8.507059e+37 }
 0x3cc   : > { %v2610_v48 = vpop.eup %2609 }
 0x3cd   : > { %v1234_v38 = vmul.f32 %v2610_v48, %v1163_v51  ;;  %v1157_v39 = vpop.xlane.xlu2 %1156  ;;  %v3156_v43 = vpop.xlane.xlu1 %1165  ;;  %vm1239_vm3 = vweird.f32 %v2610_v48 }
 0x3ce   : > { %2611 = vrcp.f32 %v1157_v39  ;;  %vm1240_vm8 = vmor %vm1238_vm7, %vm1239_vm3  ;;  %v1214_v63 = vand.u32 2147483648, %v1157_v39  ;;  %v1212_v3 = vand.u32 2147483647, %v1157_v39  ;;  %vm1208_vm11 = vweird.f32 %v1157_v39 }
 0x3cf   : > { %v1235_v59 = vsub.f32 1.0, %v1234_v38  ;;  %2613 = vrcp.f32 %v3156_v43  ;;  %v1259_v23 = vand.u32 2147483648, %v3156_v43  ;;  %vm1253_vm1 = vweird.f32 %v3156_v43 }
 0x3d0   : > { %v1215_v5 = vor.u32 1.1754944e-38, %v1214_v63  ;;  %vm1213_vm13 = vcmp.eq.f32.partialorder %v1212_v3, 8.507059e+37  ;;  %v1257_v28 = vand.u32 2147483647, %v3156_v43 }
 0x3d1   : > { %v1236_v45 = vmul.f32 %v2610_v48, %v1235_v59  ;;  %v1260_v36 = vor.u32 1.1754944e-38, %v1259_v23 }
 0x3d3   : > { %v1237_v52 = vadd.f32 %v2610_v48, %v1236_v45 }
 0x3d4   : > { %v2612_v31 = vpop.eup %2611 }
 0x3d5   : > { %v3159_v33 = vpop.eup %2613  ;;  %v1204_v54 = vmul.f32 %v2612_v31, %v1157_v39  ;;  %v927_v41 = vpop.permute.xlu2 %926  ;;  %v1241_v2 = vsel %vm1240_vm8, %v2610_v48, %v1237_v52  ;;  %vm1209_vm9 = vweird.f32 %v2612_v31  ;;  %vm1258_vm8 = vcmp.eq.f32.partialorder %v1257_v28, 8.507059e+37 }
 0x3d6   : > { %v3161_v58 = vpop.xlane.xlu1 %1168  ;;  %v938_v42 = vpack.c.bf16 %v927_v41, %v927_v41  ;;  %v1249_v53 = vmul.f32 %v3159_v33, %v3156_v43  ;;  %v1246_v4 = vsel %vm1243_vm10, %v1245_v29, %v1241_v2  ;;  %vm1210_vm12 = vmor %vm1208_vm11, %vm1209_vm9  ;;  %vm1254_vm15 = vweird.f32 %v3159_v33 }
 0x3d7   : > { %v1205_v62 = vsub.f32 1.0, %v1204_v54  ;;  %2615 = vrcp.f32 %v3161_v58  ;;  %v1247_v15 = vmul.f32 %v3119_v25, %v1246_v4  ;;  %vm1268_vm0 = vweird.f32 %v3161_v58  ;;  %vm1255_vm3 = vmor %vm1253_vm1, %vm1254_vm15 }
 0x3d8   : > { %v1420_v1 = vsel %vm1304_vm6, %v938_v42, 0  ;;  %v1250_v7 = vsub.f32 1.0, %v1249_v53  ;;  %v1272_v24 = vand.u32 2147483647, %v3161_v58  ;;  %vm1491_vm15 = vcmask 785408  }
 0x3d9   : > { %v1206_v57 = vmul.f32 %v2612_v31, %v1205_v62  ;;  %1429 = vmatpush.bf16.msra.mxu3 %v1420_v1  ;;  %v1297_v47 = vpack.c.bf16 %v1247_v15, %v1247_v15  ;;  %v2496_v15 = vld [vmem:[%s3491_s5 + $0x28] sm:$0xff] }
 0x3da   : > { %v1251_v0 = vmul.f32 %v3159_v33, %v1250_v7  ;;  %vm1273_vm7 = vcmp.eq.f32.partialorder %v1272_v24, 8.507059e+37 }
 0x3db   : > { %v1207_v50 = vadd.f32 %v2612_v31, %v1206_v57 }
 0x3dc   : > { %v1252_v22 = vadd.f32 %v3159_v33, %v1251_v0  ;;  %v2493_v0 = vld [vmem:[%s3491_s5 + $0x10] sm:$0xff] }
 0x3dd   : > { %v2616_v8 = vpop.eup %2615  ;;  %v1211_v9 = vsel %vm1210_vm12, %v2612_v31, %v1207_v50  ;;  %v3167_v12 = vpop.f32.mrf.mxu1  ;;  %vm1485_vm12 = vcmask 392192  }
 0x3de   : > { %v921_v13 = vpop.permute.xlu2 %920  ;;  %v1216_v46 = vsel %vm1213_vm13, %v1215_v5, %v1211_v9  ;;  %v1264_v14 = vmul.f32 %v2616_v8, %v3161_v58  ;;  %vm1269_vm14 = vweird.f32 %v2616_v8  ;;  %v1256_v32 = vsel %vm1255_vm3, %v3159_v33, %v1252_v22 }
 0x3df   : > { %v1217_v16 = vmul.f32 %v3125_v60, %v1216_v46  ;;  %v936_v17 = vpack.c.bf16 %v921_v13, %v921_v13  ;;  %v1274_v60 = vand.u32 2147483648, %v3161_v58  ;;  %vm1270_vm2 = vmor %vm1268_vm0, %vm1269_vm14  ;;  %v1261_v51 = vsel %vm1258_vm8, %v1260_v36, %v1256_v32  ;;  %v2498_v46 = vld [vmem:[%s3491_s5 + $0x38] sm:$0xff]  ;;  %v2527_v36 = vld [vmem:[%s3493_s7 + $0xe4] sm:$0xf] }
 0x3e0   : > { %v1265_v19 = vsub.f32 1.0, %v1264_v14  ;;  %v1262_v39 = vmul.f32 %v3123_v56, %v1261_v51  ;;  %v2497_v14 = vld [vmem:[%s3491_s5 + $0x30] sm:$0xff]  ;;  %vm1487_vm13 = vcmask 523264   ;;  %vm1489_vm14 = vcmask 654336   ;;  %v2393_v51 = vld [vmem:[%s3493_s7 + $0xe8] sm:$0xf] }
 0x3e1   : > { %v1382_v20 = vsel %vm1304_vm6, %v936_v17, 0  ;;  %v1295_v21 = vpack.c.bf16 %v1217_v16, %v1217_v16  ;;  %v1275_v34 = vor.u32 1.1754944e-38, %v1274_v60  ;;  %v2495_v16 = vld [vmem:[%s3491_s5 + $0x20] sm:$0xff]  ;;  %v2494_v17 = vld [vmem:[%s3491_s5 + $0x18] sm:$0xff]  ;;  %vm1493_vm0 = vcmask 916480  }
 0x3e2   : > { %v1266_v35 = vmul.f32 %v2616_v8, %v1265_v19  ;;  %1391 = vmatpush.bf16.msrb.mxu1 %v1382_v20  ;;  %v1298_v52 = vpack.c.bf16 %v1262_v39, %v1262_v39  ;;  %v2492_v19 = vld [vmem:[%s3491_s5 + $0x8] sm:$0xff]  ;;  %v2491_v20 = vld [vmem:[%s3491_s5] sm:$0xff] }
 0x3e3   : > { %2233 = vmatmul.msk.bf16.vlgmr.msrb.gmra.mxu3 %vm695_vm4, %v1295_v21 }
 0x3e4   : > { %v1267_v25 = vadd.f32 %v2616_v8, %v1266_v35 }
 0x3e5   : > { %2235 = vmatmul.msk.bf16.vlgmr.msrb.gmra.mxu1 %vm695_vm4, %v1297_v47  ;;  %v1319_v26 = vpop.f32.mrf.mxu1 }
 0x3e6   : > { %v930_v27 = vpop.permute.xlu2 %929  ;;  %v1271_v11 = vsel %vm1270_vm2, %v2616_v8, %v1267_v25  ;;  %1560 = vmatpush.bf16.msra.mxu1 %v2498_v46  ;;  %v2337_v46 = vld [vmem:[%s3493_s7 + $0x80] sm:$0xf] }
 0x3e7   : > { %v939_v30 = vpack.c.bf16 %v930_v27, %v930_v27  ;;  %v1276_v55 = vsel %vm1273_vm7, %v1275_v34, %v1271_v11 }
 0x3e8   : > { %v1277_v48 = vmul.f32 %v3133_v44, %v1276_v55 }
 0x3e9   : > { %v1439_v49 = vsel %vm1304_vm6, %v939_v30, 0 }
 0x3ea   : > { %1448 = vmatpush.bf16.msrb.mxu0 %v1439_v49  ;;  %v1172_v37 = vpop.xlane.xlu0 %1171  ;;  %v1299_v31 = vpack.c.bf16 %v1277_v48, %v1277_v48  ;;  %1561 = vmatpush.bf16.msra.mxu1 %v2497_v14  ;;  %v2529_v49 = vld [vmem:[%s3493_s7 + $0xec] sm:$0xf0]  ;;  %v2530_v48 = vld [vmem:[%s3493_s7 + $0xf4] sm:$0xf0] }
 0x3eb   : > { %2617 = vrcp.f32 %v1172_v37  ;;  %v1289_v41 = vand.u32 2147483648, %v1172_v37  ;;  %v1287_v44 = vand.u32 2147483647, %v1172_v37  ;;  %vm1283_vm10 = vweird.f32 %v1172_v37  ;;  %v2517_v14 = vld [vmem:[%s3493_s7 + $0x8c] sm:$0xf0] }
 0x3ec   : > { %v2394_v39 = vor.u32 %v2530_v48, %v2393_v51  ;;  %v2307_v51 = vld [vmem:[%s3493_s7 + $0x50] sm:$0xf0]  ;;  %v2313_v48 = vld [vmem:[%s3493_s7 + $0x48] sm:$0xf] }
 0x3ed   : > { %v924_v38 = vpop.permute.xlu1 %923  ;;  %v1290_v56 = vor.u32 1.1754944e-38, %v1289_v41  ;;  %v2369_v41 = vld [vmem:[%s3493_s7 + $0xc0] sm:$0xf] }
 0x3ee   : > { %v937_v43 = vpack.c.bf16 %v924_v38, %v924_v38  ;;  %1562 = vmatpush.bf16.msra.mxu1 %v2496_v15  ;;  %1814 = vmatpush.bf16.msra.mxu0 %v2394_v39  ;;  %v2515_v15 = vld [vmem:[%s3493_s7 + $0x84] sm:$0xf] }
 0x3f0   : > { %v1401_v59 = vsel %vm1304_vm6, %v937_v43, 0  ;;  %vm1288_vm6 = vcmp.eq.f32.partialorder %v1287_v44, 8.507059e+37  ;;  %v2528_v43 = vld [vmem:[%s3493_s7 + $0xec] sm:$0xf]  ;;  %v2523_v44 = vld [vmem:[%s3493_s7 + $0xc4] sm:$0xf] }
 0x3f1   : > { %v2618_v45 = vpop.eup %2617  ;;  %1410 = vmatpush.bf16.msrb.mxu2 %v1401_v59  ;;  %v2395_v59 = vld [vmem:[%s3493_s7 + $0xf8] sm:$0xf0] }
 0x3f2   : > { %v1279_v33 = vmul.f32 %v2618_v45, %v1172_v37  ;;  %vm1284_vm9 = vweird.f32 %v2618_v45  ;;  %1563 = vmatpush.bf16.msra.mxu1 %v2495_v16  ;;  %v2387_v37 = vld [vmem:[%s3493_s7 + $0xf0] sm:$0xf0]  ;;  %v2338_v16 = vor.u32 %v2517_v14, %v2337_v46 }
 0x3f3   : > { %2237 = vmatmul.msk.bf16.vlgmr.msra.gmra.mxu3 %vm695_vm4, %v1299_v31  ;;  %vm1285_vm11 = vmor %vm1283_vm10, %vm1284_vm9  ;;  %v2390_v38 = vor.u32 %v2527_v36, %v2387_v37  ;;  %v2509_v36 = vld [vmem:[%s3493_s7 + $0x4c] sm:$0xf0] }
 0x3f4   : > { %v1280_v54 = vsub.f32 1.0, %v1279_v33  ;;  %2236 = vmatmul.msk.bf16.vlgmr.msrb.gmra.mxu2 %vm695_vm4, %v1298_v52 }
 0x3f5   : > { %1801 = vmatpush.bf16.msrb.mxu3 %v2390_v38  ;;  %v2510_v38 = vld [vmem:[%s3493_s7 + $0x54] sm:$0xf0] }
 0x3f6   : > { %v1281_v58 = vmul.f32 %v2618_v45, %v1280_v54  ;;  %1564 = vmatpush.bf16.msra.mxu1 %v2494_v17  ;;  %v2339_v17 = vld [vmem:[%s3493_s7 + $0x90] sm:$0xf0] }
 0x3f8   : > { %v1282_v40 = vadd.f32 %v2618_v45, %v1281_v58  ;;  %v2525_v58 = vld [vmem:[%s3493_s7 + $0xcc] sm:$0xf0] }
 0x3fa   : > { %v1286_v42 = vsel %vm1285_vm11, %v2618_v45, %v1282_v40  ;;  %1565 = vmatpush.bf16.msra.mxu1 %v2493_v0  ;;  %v2398_v45 = vor.u32 %v2528_v43, %v2395_v59  ;;  %v2370_v40 = vor.u32 %v2525_v58, %v2369_v41  ;;  %v2345_v0 = vld [vmem:[%s3493_s7 + $0x88] sm:$0xf]  ;;  %v2314_v43 = vor.u32 %v2510_v38, %v2313_v48  ;;  %v2508_v59 = vld [vmem:[%s3493_s7 + $0x4c] sm:$0xf]  ;;  %v2503_v41 = vld [vmem:[%s3493_s7 + $0x24] sm:$0xf] }
 0x3fb   : > { %v1291_v61 = vsel %vm1288_vm6, %v1290_v56, %v1286_v42  ;;  %v2377_v56 = vld [vmem:[%s3493_s7 + $0xc8] sm:$0xf]  ;;  %v2526_v42 = vld [vmem:[%s3493_s7 + $0xd4] sm:$0xf0]  ;;  %v2531_v48 = vld [vmem:[%s3494_s8] sm:$0xff] }
 0x3fc   : > { %v1292_v62 = vmul.f32 %v3141_v6, %v1291_v61  ;;  %v2539_v38 = vld [vmem:[%s3494_s8 + $0x40] sm:$0xff] }
 0x3fe   : > { %v1300_v63 = vpack.c.bf16 %v1292_v62, %v1292_v62  ;;  %1566 = vmatpush.bf16.msra.mxu1 %v2492_v19  ;;  %v2378_v62 = vor.u32 %v2526_v42, %v2377_v56  ;;  %v2518_v19 = vld [vmem:[%s3493_s7 + $0x94] sm:$0xf0] }
 0x400   : > { %2238 = vmatmul.msk.bf16.vlgmr.msrb.gmra.mxu0 %vm695_vm4, %v1300_v63  ;;  %vm1483_vm4 = vcmask 261120   ;;  %v2524_v63 = vld [vmem:[%s3493_s7 + $0xcc] sm:$0xf] }
 0x401   : > { %1815 = vmatpush.bf16.msra.mxu0 %v2378_v62  ;;  %v2299_v62 = vld [vmem:[%s3493_s7 + $0x38] sm:$0xf0] }
 0x402   : > { %1567 = vmatpush.bf16.msra.mxu1 %v2491_v20  ;;  %v2342_v20 = vor.u32 %v2515_v15, %v2339_v17 }
 0x406   : > { %1827 = vmatpush.bf16.msrb.mxu1 %v2398_v45  ;;  %v2315_v45 = vld [vmem:[%s3493_s7 + $0x58] sm:$0xf0] }
 0x437   : > { %v1374_v53 = vpop.f32.mrf.mxu0 }
 0x438   : > { %1463 = vrot.lane.b32.xlu1 %v1374_v53, %s2643_s27  ;;  %v2379_v53 = vld [vmem:[%s3493_s7 + $0xd8] sm:$0xf0] }
 0x43f   : > { %v1376_v1 = vpop.f32.mrf.mxu0 }
 0x440   : > { %v2382_v1 = vor.u32 %v2524_v63, %v2379_v53  ;;  %v2273_v63 = vld [vmem:[%s3493_s7] sm:$0xf] }
 0x442   : > { %1828 = vmatpush.bf16.msrb.mxu1 %v2382_v1  ;;  %v2501_v1 = vld [vmem:[%s3493_s7 + $0xc] sm:$0xf0] }
 0x445   : > { %v1336_v2 = vpop.f32.mrf.mxu2 }
 0x446   : > { %1455 = vrot.lane.b32.xlu1 %v1336_v2, %s2645_s29  ;;  %v2353_v2 = vld [vmem:[%s3493_s7 + $0xa0] sm:$0xf] }
 0x44d   : > { %v1338_v57 = vpop.f32.mrf.mxu2 }
 0x44e   : > { %v2521_v57 = vld [vmem:[%s3493_s7 + $0xac] sm:$0xf0] }
 0x462   : > { %v1393_v3 = vpop.f32.mrf.mxu1 }
 0x463   : > { %1467 = vrot.lane.b32.xlu2 %v1393_v3, %s2642_s26  ;;  %v2519_v3 = vld [vmem:[%s3493_s7 + $0xa4] sm:$0xf] }
 0x466   : > { %v1355_v29 = vpop.f32.mrf.mxu3 }
 0x46a   : > { %v1395_v50 = vpop.f32.mrf.mxu1 }
 0x46b   : > { %1459 = vrot.lane.b32.xlu2 %v1355_v29, %s2640_s24  ;;  %v2354_v29 = vor.u32 %v2521_v57, %v2353_v2  ;;  %v2355_v50 = vld [vmem:[%s3493_s7 + $0xb0] sm:$0xf0]  ;;  %v2499_v2 = vld [vmem:[%s3493_s7 + $0x4] sm:$0xf] }
 0x46c   : > { %v2275_v57 = vld [vmem:[%s3493_s7 + $0x10] sm:$0xf0] }
 0x46e   : > { %v1357_v4 = vpop.f32.mrf.mxu3 }
 0x46f   : > { %v2361_v4 = vld [vmem:[%s3493_s7 + $0xa8] sm:$0xf] }
 0x476   : > { %v1431_v6 = vpop.f32.mrf.mxu3 }
 0x477   : > { %1475 = vrot.lane.b32.xlu0 %v1431_v6, %s2639_s22  ;;  %v1412_v5 = vpop.f32.mrf.mxu2  ;;  %v2522_v6 = vld [vmem:[%s3493_s7 + $0xb4] sm:$0xf0] }
 0x478   : > { %1471 = vrot.lane.b32.xlu1 %v1412_v5, %s2641_s25  ;;  %v2358_v5 = vor.u32 %v2519_v3, %v2355_v50  ;;  %v2274_v3 = vor.u32 %v2501_v1, %v2273_v63  ;;  %v2281_v50 = vld [vmem:[%s3493_s7 + $0x8] sm:$0xf] }
 0x47d   : > { %v1450_v7 = vpop.f32.mrf.mxu0 }
 0x47e   : > { %v1433_v8 = vpop.f32.mrf.mxu3  ;;  %1479 = vrot.lane.b32.xlu2 %v1450_v7, %s2638_s21  ;;  %v2362_v7 = vor.u32 %v2522_v6, %v2361_v4  ;;  %v2502_v4 = vld [vmem:[%s3493_s7 + $0x14] sm:$0xf0]  ;;  %v2500_v6 = vld [vmem:[%s3493_s7 + $0xc] sm:$0xf] }
 0x47f   : > { %v1414_v9 = vpop.f32.mrf.mxu2  ;;  %v2520_v8 = vld [vmem:[%s3493_s7 + $0xac] sm:$0xf] }
 0x480   : > { %v2363_v9 = vld [vmem:[%s3493_s7 + $0xb8] sm:$0xf0]  ;;  %1816 = vmatpush.bf16.msra.mxu0 %v2362_v7 }
 0x481   : > { %v2283_v7 = vld [vmem:[%s3493_s7 + $0x18] sm:$0xf0] }
 0x485   : > { %v1452_v13 = vpop.f32.mrf.mxu0 }
 0x486   : > { %v2366_v13 = vor.u32 %v2520_v8, %v2363_v9  ;;  %v2286_v8 = vor.u32 %v2500_v6, %v2283_v7 }
 0x488   : > { %1829 = vmatpush.bf16.msrb.mxu1 %v2366_v13 }
 0x4aa   : > { %v1464_v35 = vpop.permute.xlu1 %1463 }
 0x4b8   : > { %v1456_v47 = vpop.permute.xlu1 %1455 }
 0x4b9   : > { %v1482_v25 = vsel %vm940_vm5, %v3167_v12, %v1456_v47  ;;  %v2385_v12 = vld [vmem:[%s3493_s7 + $0xe0] sm:$0xf]  ;;  %v2347_v47 = vld [vmem:[%s3493_s7 + $0x98] sm:$0xf0] }
 0x4ba   : > { %v2386_v55 = vor.u32 %v2529_v49, %v2385_v12  ;;  %v2305_v49 = vld [vmem:[%s3493_s7 + $0x40] sm:$0xf] }
 0x4bb   : > { %v2306_v37 = vor.u32 %v2509_v36, %v2305_v49  ;;  %v2532_v36 = vld [vmem:[%s3494_s8 + $0x8] sm:$0xff] }
 0x4bc   : > { %1788 = vmatpush.bf16.msra.mxu2 %v2386_v55  ;;  %v2507_v55 = vld [vmem:[%s3493_s7 + $0x44] sm:$0xf] }
 0x4bd   : > { %v1468_v21 = vpop.permute.xlu2 %1467  ;;  %v2310_v39 = vor.u32 %v2507_v55, %v2307_v51  ;;  %v2540_v55 = vld [vmem:[%s3494_s8 + $0x48] sm:$0xff] }
 0x4c0   : > { %1789 = vmatpush.bf16.msra.mxu2 %v2370_v40  ;;  %v2297_v40 = vld [vmem:[%s3493_s7 + $0x28] sm:$0xf] }
 0x4c4   : > { %1790 = vmatpush.bf16.msra.mxu2 %v2354_v29  ;;  %v2278_v29 = vor.u32 %v2499_v2, %v2275_v57 }
 0x4c5   : > { %v1460_v22 = vpop.permute.xlu2 %1459 }
 0x4c6   : > { %v1484_v60 = vsel %vm1483_vm4, %v1482_v25, %v1460_v22  ;;  %v2321_v25 = vld [vmem:[%s3493_s7 + $0x60] sm:$0xf] }
 0x4c7   : > { %v1486_v23 = vsel %vm1485_vm12, %v1484_v60, %v1464_v35  ;;  %v2516_v35 = vld [vmem:[%s3493_s7 + $0x8c] sm:$0xf]  ;;  %v2513_v60 = vld [vmem:[%s3493_s7 + $0x6c] sm:$0xf0] }
 0x4c8   : > { %v1488_v24 = vsel %vm1487_vm13, %v1486_v23, %v1468_v21  ;;  %v2346_v21 = vor.u32 %v2518_v19, %v2345_v0  ;;  %1791 = vmatpush.bf16.msra.mxu2 %v2338_v16  ;;  %v2350_v22 = vor.u32 %v2516_v35, %v2347_v47  ;;  %v2511_v23 = vld [vmem:[%s3493_s7 + $0x64] sm:$0xf] }
 0x4ca   : > { %1817 = vmatpush.bf16.msra.mxu0 %v2346_v21  ;;  %1830 = vmatpush.bf16.msrb.mxu1 %v2350_v22  ;;  %v2538_v22 = vld [vmem:[%s3494_s8 + $0x38] sm:$0xff] }
 0x4d8   : > { %v1480_v30 = vpop.permute.xlu2 %1479 }
 0x4e9   : > { %v1476_v27 = vpop.permute.xlu0 %1475 }
 0x4ea   : > { %v1472_v26 = vpop.permute.xlu1 %1471 }
 0x4eb   : > { %v1490_v28 = vsel %vm1489_vm14, %v1488_v24, %v1472_v26  ;;  %v2322_v24 = vor.u32 %v2513_v60, %v2321_v25  ;;  %v2323_v26 = vld [vmem:[%s3493_s7 + $0x70] sm:$0xf0]  ;;  %v2546_v25 = vld [vmem:[%s3494_s8 + $0x78] sm:$0xff] }
 0x4ec   : > { %v1492_v11 = vsel %vm1491_vm15, %v1490_v28, %v1476_v27  ;;  %v2329_v27 = vld [vmem:[%s3493_s7 + $0x68] sm:$0xf]  ;;  %v2514_v28 = vld [vmem:[%s3493_s7 + $0x74] sm:$0xf0]  ;;  %v2537_v60 = vld [vmem:[%s3494_s8 + $0x30] sm:$0xff] }
 0x4ed   : > { %v1494_v32 = vsel %vm1493_vm0, %v1492_v11, %v1480_v30  ;;  %v2326_v30 = vor.u32 %v2511_v23, %v2323_v26  ;;  %v2330_v11 = vor.u32 %v2514_v28, %v2329_v27  ;;  %1792 = vmatpush.bf16.msra.mxu2 %v2322_v24  ;;  %v2545_v23 = vld [vmem:[%s3494_s8 + $0x70] sm:$0xff]  ;;  %v2536_v24 = vld [vmem:[%s3494_s8 + $0x28] sm:$0xff]  ;;  %v2535_v27 = vld [vmem:[%s3494_s8 + $0x20] sm:$0xff] }
 0x4ee   : > { %v1495_v34 = vpack.c.bf16 %v1494_v32, %v1494_v32  ;;  %v2512_v32 = vld [vmem:[%s3493_s7 + $0x6c] sm:$0xf]  ;;  %v2543_v28 = vld [vmem:[%s3494_s8 + $0x60] sm:$0xff] }
 0x4ef   : > { %1818 = vmatpush.bf16.msra.mxu0 %v2330_v11  ;;  %v2544_v26 = vld [vmem:[%s3494_s8 + $0x68] sm:$0xff]  ;;  %v2542_v11 = vld [vmem:[%s3494_s8 + $0x58] sm:$0xff] }
 0x4f0   : > { %1568 = vmatmul.bf16.vlgmr.msra.gmra.mxu1 %v1495_v34  ;;  %v2331_v34 = vld [vmem:[%s3493_s7 + $0x78] sm:$0xf0] }
 0x4f1   : > { %v2334_v12 = vor.u32 %v2512_v32, %v2331_v34  ;;  %1793 = vmatpush.bf16.msra.mxu2 %v2306_v37  ;;  %v2533_v32 = vld [vmem:[%s3494_s8 + $0x10] sm:$0xff] }
 0x4f2   : > { %v2541_v34 = vld [vmem:[%s3494_s8 + $0x50] sm:$0xff] }
 0x4f3   : > { %1831 = vmatpush.bf16.msrb.mxu1 %v2334_v12  ;;  %1819 = vmatpush.bf16.msra.mxu0 %v2314_v43 }
 0x56d   : > { %v1569_v31 = vpop.f32.mrf.mxu1 }
 0x56e   : > { %v3252_v33 = vadd.f32 %v1569_v31, %v2737_v10  ;;  %v2371_v10 = vld [vmem:[%s3493_s7 + $0xd0] sm:$0xf0]  ;;  %v2318_v31 = vor.u32 %v2508_v59, %v2315_v45 }
 0x56f   : > { %v2374_v61 = vor.u32 %v2523_v44, %v2371_v10  ;;  %v2291_v44 = vld [vmem:[%s3493_s7 + $0x30] sm:$0xf0]  ;;  %v2506_v10 = vld [vmem:[%s3493_s7 + $0x34] sm:$0xf0] }
 0x570   : > { %v1574_v52 = vmul.f32 %v3252_v33, %v3252_v33  ;;  %1832 = vmatpush.bf16.msrb.mxu1 %v2318_v31  ;;  %v2294_v56 = vor.u32 %v2503_v41, %v2291_v44  ;;  %v2298_v42 = vor.u32 %v2506_v10, %v2297_v40 }
 0x571   : > { %1802 = vmatpush.bf16.msrb.mxu3 %v2374_v61  ;;  %v2504_v61 = vld [vmem:[%s3493_s7 + $0x2c] sm:$0xf] }
 0x572   : > { %1575 = vadd.xlane.f32.xlu1 %v1574_v52  ;;  %v2289_v52 = vld [vmem:[%s3493_s7 + $0x20] sm:$0xf]  ;;  %v2302_v53 = vor.u32 %v2504_v61, %v2299_v62  ;;  %1820 = vmatpush.bf16.msra.mxu0 %v2298_v42 }
 0x574   : > { %1833 = vmatpush.bf16.msrb.mxu1 %v2302_v53 }
 0x575   : > { %v1571_v54 = vpop.f32.mrf.mxu1  ;;  %1803 = vmatpush.bf16.msrb.mxu3 %v2358_v5  ;;  %v2282_v5 = vor.u32 %v2502_v4, %v2281_v50 }
 0x576   : > { %v2505_v54 = vld [vmem:[%s3493_s7 + $0x2c] sm:$0xf0] }
 0x577   : > { %v2290_v58 = vor.u32 %v2505_v54, %v2289_v52  ;;  %1821 = vmatpush.bf16.msra.mxu0 %v2282_v5 }
 0x578   : > { %1834 = vmatpush.bf16.msrb.mxu1 %v2286_v8 }
 0x579   : > { %1804 = vmatpush.bf16.msrb.mxu3 %v2342_v20  ;;  %1794 = vmatpush.bf16.msra.mxu2 %v2290_v58  ;;  %v2582_v20 = vld [vmem:[%s3492_s6] ss:$0 sm:$0xff] }
 0x57d   : > { %1805 = vmatpush.bf16.msrb.mxu3 %v2326_v30  ;;  %1795 = vmatpush.bf16.msra.mxu2 %v2274_v3  ;;  %v2534_v30 = vld [vmem:[%s3494_s8 + $0x18] sm:$0xff] }
 0x581   : > { %1806 = vmatpush.bf16.msrb.mxu3 %v2310_v39  ;;  %2012 = vmatpush.bf16.msrb.mxu2 %v2538_v22 }
 0x585   : > { %1807 = vmatpush.bf16.msrb.mxu3 %v2294_v56  ;;  %2013 = vmatpush.bf16.msrb.mxu2 %v2537_v60 }
 0x589   : > { %1808 = vmatpush.bf16.msrb.mxu3 %v2278_v29  ;;  %2014 = vmatpush.bf16.msrb.mxu2 %v2536_v24 }
 0x58d   : > { %2025 = vmatpush.bf16.msra.mxu3 %v2546_v25  ;;  %2015 = vmatpush.bf16.msrb.mxu2 %v2535_v27 }
 0x591   : > { %2026 = vmatpush.bf16.msra.mxu3 %v2545_v23  ;;  %2016 = vmatpush.bf16.msrb.mxu2 %v2534_v30 }
 0x595   : > { %2027 = vmatpush.bf16.msra.mxu3 %v2544_v26  ;;  %2017 = vmatpush.bf16.msrb.mxu2 %v2533_v32 }
 0x599   : > { %2028 = vmatpush.bf16.msra.mxu3 %v2543_v28  ;;  %2018 = vmatpush.bf16.msrb.mxu2 %v2532_v36 }
 0x59d   : > { %2029 = vmatpush.bf16.msra.mxu3 %v2542_v11  ;;  %2019 = vmatpush.bf16.msrb.mxu2 %v2531_v48 }
 0x5a1   : > { %2030 = vmatpush.bf16.msra.mxu3 %v2541_v34 }
 0x5a5   : > { %2031 = vmatpush.bf16.msra.mxu3 %v2540_v55 }
 0x5a9   : > { %2032 = vmatpush.bf16.msra.mxu3 %v2539_v38 }
 0x5e5   : > { %v1576_v9 = vpop.xlane.xlu1 %1575 }
 0x5e6   : > { %v1577_v13 = vmul.f32 %v1576_v9, %v2872_v18 }
 0x5e8   : > { %v1578_v46 = vadd.f32 1e-06, %v1577_v13 }
 0x5ea   : > { %2619 = vrsqrt.f32 %v1578_v46  ;;  %vm1585_vm1 = vweird.f32 %v1578_v46 }
 0x5f0   : > { %v2620_v14 = vpop.eup %2619 }
 0x5f1   : > { %v1580_v15 = vmul.f32 %v2620_v14, %v1578_v46  ;;  %vm1586_vm5 = vweird.f32 %v2620_v14 }
 0x5f2   : > { %vm1587_vm2 = vmor %vm1585_vm1, %vm1586_vm5 }
 0x5f3   : > { %v1581_v16 = vmul.f32 %v2620_v14, %v1580_v15 }
 0x5f5   : > { %v1582_v17 = vmul.f32 0.5, %v1581_v16 }
 0x5f7   : > { %v1583_v0 = vsub.f32 1.5, %v1582_v17 }
 0x5f9   : > { %v1584_v19 = vmul.f32 %v2620_v14, %v1583_v0 }
 0x5fb   : > { %v1588_v21 = vsel %vm1587_vm2, %v2620_v14, %v1584_v19 }
 0x5fc   : > { %v1589_v35 = vmul.f32 %v1588_v21, %v3252_v33 }
 0x5fe   : > { %v1594_v47 = vmul.f32 %v2582_v20, %v1589_v35 }
 0x600   : > { %v1595_v18 = vpack.c.bf16 %v1594_v47, %v1594_v47 }
 0x602   : > { %1796 = vmatmul.bf16.vlgmr.msra.gmra.mxu2 %v1595_v18  ;;  %1809 = vmatmul.bf16.vlgmr.msrb.gmra.mxu3 %v1595_v18 }
 0x603   : > { %1822 = vmatmul.bf16.vlgmr.msra.gmra.mxu0 %v1595_v18  ;;  %1835 = vmatmul.bf16.vlgmr.msrb.gmra.mxu1 %v1595_v18 }
 0x680   : > { %v1823_v12 = vpop.f32.mrf.mxu0  ;;  %v1836_v49 = vpop.f32.mrf.mxu1 }
 0x685   : > { %v1797_v37 = vpop.f32.mrf.mxu2  ;;  %v1810_v51 = vpop.f32.mrf.mxu3 }
 0x686   : > { %v2399_v39 = vmul.f32 -1.442695, %v1797_v37  ;;  %v2400_v43 = vmul.f32 -1.442695, %v1810_v51 }
 0x688   : > { %2621 = vpow2.f32 %v2399_v39  ;;  %v1825_v59 = vpop.f32.mrf.mxu0  ;;  %v1838_v45 = vpop.f32.mrf.mxu1 }
 0x689   : > { %2623 = vpow2.f32 %v2400_v43 }
 0x68d   : > { %v1799_v31 = vpop.f32.mrf.mxu2  ;;  %v1812_v52 = vpop.f32.mrf.mxu3 }
 0x68e   : > { %v2622_v54 = vpop.eup %2621 }
 0x68f   : > { %v2624_v41 = vpop.eup %2623  ;;  %v1846_v58 = vadd.f32 1.0, %v2622_v54 }
 0x690   : > { %v1847_v44 = vadd.f32 1.0, %v2624_v41 }
 0x691   : > { %2625 = vrcp.f32 %v1846_v58  ;;  %v1859_v62 = vand.u32 2147483648, %v1846_v58  ;;  %v1857_v1 = vand.u32 2147483647, %v1846_v58  ;;  %vm1853_vm8 = vweird.f32 %v1846_v58 }
 0x692   : > { %2627 = vrcp.f32 %v1847_v44  ;;  %v1874_v2 = vand.u32 2147483648, %v1847_v44  ;;  %v1872_v3 = vand.u32 2147483647, %v1847_v44  ;;  %vm1868_vm10 = vweird.f32 %v1847_v44 }
 0x693   : > { %v1860_v50 = vor.u32 1.1754944e-38, %v1859_v62  ;;  %vm1858_vm11 = vcmp.eq.f32.partialorder %v1857_v1, 8.507059e+37 }
 0x694   : > { %v1875_v5 = vor.u32 1.1754944e-38, %v1874_v2  ;;  %vm1873_vm4 = vcmp.eq.f32.partialorder %v1872_v3, 8.507059e+37 }
 0x697   : > { %v2626_v40 = vpop.eup %2625 }
 0x698   : > { %v2628_v10 = vpop.eup %2627  ;;  %v1849_v56 = vmul.f32 %v2626_v40, %v1846_v58  ;;  %vm1854_vm3 = vweird.f32 %v2626_v40 }
 0x699   : > { %v1864_v42 = vmul.f32 %v2628_v10, %v1847_v44  ;;  %vm1869_vm7 = vweird.f32 %v2628_v10  ;;  %vm1855_vm9 = vmor %vm1853_vm8, %vm1854_vm3 }
 0x69a   : > { %v1850_v61 = vsub.f32 1.0, %v1849_v56  ;;  %vm1870_vm6 = vmor %vm1868_vm10, %vm1869_vm7 }
 0x69b   : > { %v1865_v63 = vsub.f32 1.0, %v1864_v42 }
 0x69c   : > { %v1851_v53 = vmul.f32 %v2626_v40, %v1850_v61 }
 0x69d   : > { %v1866_v57 = vmul.f32 %v2628_v10, %v1865_v63 }
 0x69e   : > { %v1852_v29 = vadd.f32 %v2626_v40, %v1851_v53 }
 0x69f   : > { %v1867_v4 = vadd.f32 %v2628_v10, %v1866_v57 }
 0x6a0   : > { %v1856_v6 = vsel %vm1855_vm9, %v2626_v40, %v1852_v29 }
 0x6a1   : > { %v1861_v7 = vsel %vm1858_vm11, %v1860_v50, %v1856_v6  ;;  %v1871_v8 = vsel %vm1870_vm6, %v2628_v10, %v1867_v4 }
 0x6a2   : > { %v1878_v9 = vmul.f32 %v1861_v7, %v1797_v37  ;;  %v1876_v13 = vsel %vm1873_vm4, %v1875_v5, %v1871_v8 }
 0x6a3   : > { %v1879_v46 = vmul.f32 %v1876_v13, %v1810_v51 }
 0x6a4   : > { %v1880_v14 = vmul.f32 %v1878_v9, %v1823_v12 }
 0x6a5   : > { %v1881_v15 = vmul.f32 %v1879_v46, %v1836_v49 }
 0x6a6   : > { %v1882_v16 = vpack.c.bf16 %v1880_v14, %v1880_v14 }
 0x6a7   : > { %v1883_v17 = vpack.c.bf16 %v1881_v15, %v1881_v15 }
 0x6a8   : > { %2020 = vmatmul.bf16.vlgmr.msrb.gmra.mxu2 %v1882_v16 }
 0x6a9   : > { %2033 = vmatmul.bf16.vlgmr.msra.gmra.mxu3 %v1883_v17 }
 0x72b   : > { %v2021_v0 = vpop.f32.mrf.mxu2 }
 0x72c   : > { %v2034_v19 = vpop.f32.mrf.mxu3 }
 0x72d   : > { %v2035_v20 = vadd.f32 %v2034_v19, %v2021_v0 }
 0x72f   : > { %v2038_v21 = vadd.f32 %v2035_v20, %v3252_v33 }
 0x731   : > { %v2039_v35 = vpack.c.bf16 %v2038_v21, %v2038_v21 }
 0x733   : > { %2040 = vst [vmem:[%s361_s11] sm:$0xf] %v2039_v35  ;;  %v2023_v47 = vpop.f32.mrf.mxu2 }
 0x734   : > { %v2036_v18 = vpop.f32.mrf.mxu3 }
 0x735 PF: > { %s19_s30 = sadd.s32 1, %s2635_s30  }
 0x736   : > { %p16_p4 = scmp.ge.s32.totalorder %s19_s30, 4  }
 0x738   :  { %18 = sbr.rel (!%p16_p4) target bundleno = 1 (0x1), region = 92 }

// kernel: llama_forward.3
= control target key start
LH: loop header
LB: loop body
LE: loop exit
PB: predicated region body
PF: predicated region fallthrough
CT: control target
= control target key end

     0   :  { %14 = vsyncpa [#allocation3], 0  ;;  %s3399_s0 = inlined_call_operand.vmem [shape: bf16[16,128], index: 0, kind: input, shape index: {}, may-alias: {0,9}]   ;;  %s3400_s1 = inlined_call_operand.vmem [shape: f32[2,8,1,16], index: 1, kind: input, shape index: {}]   ;;  %s3401_s2 = inlined_call_operand.vmem [shape: f32[2,8,1,16], index: 2, kind: input, shape index: {}]   ;;  %s3402_s3 = inlined_call_operand.vmem [shape: f32[1,128], index: 3, kind: input, shape index: {}]   ;;  %s3403_s4 = inlined_call_operand.hbm [shape: bf16[128,384], index: 4, kind: input, shape index: {}]   ;;  %s3404_s5 = inlined_call_operand.hbm [shape: bf16[128,128], index: 5, kind: input, shape index: {}]   ;;  %s3405_s6 = inlined_call_operand.vmem [shape: f32[1,128], index: 6, kind: input, shape index: {}]   ;;  %s3406_s7 = inlined_call_operand.hbm [shape: bf16[128,512], index: 7, kind: input, shape index: {}]   ;;  %s3407_s8 = inlined_call_operand.vmem [shape: bf16[256,128], index: 8, kind: input, shape index: {}]   ;;  %s3408_s9 = inlined_call_operand.vmem [shape: bf16[16,128], index: 9, kind: output, shape index: {}, may-alias: {0,9}]  }
   0x1   :  { %15 = vsyncpa [#allocation5], 0  ;;  %s2928_s30 = smov 0  }
   0x2 LB: > { %s284_s12 = sshll.u32 %s3404_s5, 4  ;;  %s2937_s13 = sadd.s32 4294967295, %s2857_s30   ;;  %s2857_s30 = sphi %s2928_s30, %s21_s30   ;;  %s285_s12 = int_to_ptr.hbm [resolvable:$true] %s284_s12 }
   0x3   : > { %p2201_p0 = scmp.ge.s32.totalorder %s2857_s30, 1  ;;  %p256_p1 = scmp.lt.s32.totalorder %s2857_s30, 3 }
   0x4   : > { %p2656_p2 = scmp.eq.s32.totalorder %s2937_s13, 0  ;;  %s2859_s15 = smov [#allocation4]  }
   0x5   : > { %p2942_p3 = pnand %p2201_p0, %p256_p1  ;;  %s286_s16 = sshll.u32 %s2859_s15, 4  ;;  %s287_s16 = int_to_ptr.vmem [resolvable:$true] %s286_s16 }
   0x6   : > { %s270_s19 = sshll.u32 %s3403_s4, 4  ;;  %s2860_s21 = smov [#allocation2]   ;;  %s271_s19 = int_to_ptr.hbm [resolvable:$true] %s270_s19 }
   0x7   : > { %p2646_p4 = pneg %p2942_p3  ;;  %s272_s22 = sshll.u32 %s2860_s21, 4  ;;  %s273_s22 = int_to_ptr.vmem [resolvable:$true] %s272_s22 }
   0x8   : > { %s2861_s23 = smov 64   ;;  %s2862_s24 = smov 4  }
   0x9   : > { %p2953_p5 = pnand %p2656_p2, %p2646_p4  ;;  %s301_s27 = sshll.u32 %s3406_s7, 4  ;;  %s302_s27 = int_to_ptr.hbm [resolvable:$true] %s301_s27 }
   0xa   : > { %s2863_s28 = smov 192   ;;  %s2864_s29 = smov 12  }
   0xb   : > { %2652 = dma.hbm_to_vmem [thread:$0]  (!%p2953_p5), %s285_s12, 1024, %s287_s16, [#allocation5], %s2861_s23, %s2861_s23, %s2862_s24  }
   0xc   : > { %2649 = dma.hbm_to_vmem [thread:$0]  (!%p2953_p5), %s271_s19, 3072, %s273_s22, [#allocation3], %s2863_s28, %s2863_s28, %s2864_s29  }
   0xd   : > { %s2865_s10 = smov [#allocation6]   ;;  %s2866_s15 = smov 256  }
   0xe   : > { %s303_s11 = sshll.u32 %s2865_s10, 4  ;;  %s2867_s17 = smov 16   ;;  %s304_s11 = int_to_ptr.vmem [resolvable:$true] %s303_s11 }
   0xf   : > { %2655 = dma.hbm_to_vmem [thread:$0]  (!%p2953_p5), %s302_s27, 4096, %s304_s11, [#allocation5], %s2866_s15, %s2866_s15, %s2867_s17  }
  0x10   : > { %343 = sbr.rel (%p2942_p3) target bundleno = 1859 (0x743), region = 56 }
  0x15   : > { %2848 = dma.done.wait (%p2656_p2), [#allocation3], 3072  }
  0x16   : > { %2850 = vsyncadd (%p2656_p2), [#allocation3], 4294964224 }
  0x17   : > { %2852 = dma.done.wait (%p2656_p2), [#allocation5], 5120  }
  0x18   : > { %2854 = vsyncadd (%p2656_p2), [#allocation5], 4294962176  ;;  %p396_p6 = scmp.lt.s32.totalorder %s2937_s13, 1  ;;  %v2300_v1 = vld [vmem:[#allocation2 + $0xa8] sm:$0xf]  ;;  %v2868_v28 = vmov 128.0  }
  0x19   : > { %v2576_v2 = vld [vmem:[#allocation2 + $0xb0] sm:$0xf0]  ;;  %v2575_v5 = vld [vmem:[#allocation2 + $0xac] sm:$0xf]  ;;  %v2302_v6 = vld [vmem:[#allocation2 + $0xb4] sm:$0xf0]  ;;  %2707 = vrcp.f32 %v2868_v28 }
  0x1a   : > { %s3412_s13 = smov (!%p396_p6, %s2937_s13), 1  ;;  %v2301_v4 = vor.u32 %v2576_v2, %v2300_v1  ;;  %v2308_v7 = vld [vmem:[#allocation2 + $0xb0] sm:$0xf]  ;;  %v2305_v8 = vor.u32 %v2575_v5, %v2302_v6  ;;  %v2577_v9 = vld [vmem:[#allocation2 + $0xb8] sm:$0xf0]  ;;  %s2869_s28 = smov 112  }
  0x1b   : > { %s2210_s12 = sshll.u32 %s3412_s13, 2  ;;  %s2211_s19 = sshll.u32 %s3412_s13, 3  ;;  %v2309_v11 = vor.u32 %v2577_v9, %v2308_v7  ;;  %v2288_v12 = vld [vmem:[#allocation2 + $0x90] sm:$0xf]  ;;  %v2573_v13 = vld [vmem:[#allocation2 + $0x98] sm:$0xf0] }
  0x1c   : > { %s399_s18 = scalar_lea.vmem %s3399_s0, %s2210_s12  ;;  %s2992_s22 = scalar_lea.vmem %s3400_s1, %s2211_s19  ;;  %604 = vmatpush.bf16.msra.mxu0 %v2301_v4  ;;  %617 = vmatpush.bf16.msra.mxu1 %v2305_v8  ;;  %v2572_v14 = vld [vmem:[#allocation2 + $0x94] sm:$0xf]  ;;  %v2289_v15 = vor.u32 %v2573_v13, %v2288_v12  ;;  %v2290_v16 = vld [vmem:[#allocation2 + $0x9c] sm:$0xf0]  ;;  %v2296_v17 = vld [vmem:[#allocation2 + $0x98] sm:$0xf] }
  0x1d   : > { %v413_v0 = vld [vmem:[%s399_s18] sm:$0xf]  ;;  %s2999_s25 = scalar_lea.vmem %s3401_s2, %s2211_s19  ;;  %630 = vmatpush.bf16.msra.mxu2 %v2309_v11  ;;  %v2574_v18 = vld [vmem:[#allocation2 + $0xa0] sm:$0xf0]  ;;  %v2293_v19 = vor.u32 %v2572_v14, %v2290_v16  ;;  %v2276_v21 = vld [vmem:[#allocation2 + $0x78] sm:$0xf]  ;;  %s411_s19 = scalar_lea.vmem %s3408_s9, %s2210_s12 }
  0x1e   : > { %v2987_v3 = vunpack.c.l.bf16 %v413_v0  ;;  %v2297_v20 = vor.u32 %v2574_v18, %v2296_v17  ;;  %v2570_v22 = vld [vmem:[#allocation2 + $0x80] sm:$0xf0]  ;;  %v2569_v23 = vld [vmem:[#allocation2 + $0x7c] sm:$0xf]  ;;  %v2278_v25 = vld [vmem:[#allocation2 + $0x84] sm:$0xf0] }
  0x1f   : > { %v2277_v24 = vor.u32 %v2570_v22, %v2276_v21  ;;  %v2284_v26 = vld [vmem:[#allocation2 + $0x80] sm:$0xf]  ;;  %v2571_v27 = vld [vmem:[#allocation2 + $0x88] sm:$0xf0]  ;;  %v2281_v29 = vor.u32 %v2569_v23, %v2278_v25  ;;  %v2566_v33 = vld [vmem:[#allocation2 + $0x64] sm:$0xf]  ;;  %v2708_v40 = vpop.eup %2707 }
  0x20   : > { %v415_v10 = vmul.f32 %v2987_v3, %v2987_v3  ;;  %605 = vmatpush.bf16.msra.mxu0 %v2289_v15  ;;  %618 = vmatpush.bf16.msra.mxu1 %v2293_v19  ;;  %v2285_v30 = vor.u32 %v2571_v27, %v2284_v26  ;;  %v2264_v31 = vld [vmem:[#allocation2 + $0x60] sm:$0xf]  ;;  %v2567_v32 = vld [vmem:[#allocation2 + $0x68] sm:$0xf0]  ;;  %v2266_v35 = vld [vmem:[#allocation2 + $0x6c] sm:$0xf0]  ;;  %vm423_vm0 = vweird.f32 %v2708_v40 }
  0x21   : > { %631 = vmatpush.bf16.msra.mxu2 %v2297_v20  ;;  %v2265_v34 = vor.u32 %v2567_v32, %v2264_v31  ;;  %v2272_v36 = vld [vmem:[#allocation2 + $0x68] sm:$0xf]  ;;  %v2568_v37 = vld [vmem:[#allocation2 + $0x70] sm:$0xf0]  ;;  %v2269_v38 = vor.u32 %v2566_v33, %v2266_v35  ;;  %v2563_v43 = vld [vmem:[#allocation2 + $0x4c] sm:$0xf] }
  0x22   : > { %416 = vadd.xlane.f32.xlu0 %v415_v10  ;;  %v2273_v39 = vor.u32 %v2568_v37, %v2272_v36  ;;  %v2252_v41 = vld [vmem:[#allocation2 + $0x48] sm:$0xf]  ;;  %v2564_v42 = vld [vmem:[#allocation2 + $0x50] sm:$0xf0]  ;;  %v2254_v45 = vld [vmem:[#allocation2 + $0x54] sm:$0xf0] }
  0x23   : > { %v2253_v44 = vor.u32 %v2564_v42, %v2252_v41  ;;  %v2260_v46 = vld [vmem:[#allocation2 + $0x50] sm:$0xf]  ;;  %v2565_v47 = vld [vmem:[#allocation2 + $0x58] sm:$0xf0]  ;;  %v2257_v48 = vor.u32 %v2563_v43, %v2254_v45  ;;  %v419_v50 = vmul.f32 128.0, %v2708_v40  ;;  %s2870_s29 = smov 96  }
  0x24   : > { %606 = vmatpush.bf16.msra.mxu0 %v2277_v24  ;;  %619 = vmatpush.bf16.msra.mxu1 %v2281_v29  ;;  %v2261_v49 = vor.u32 %v2565_v47, %v2260_v46  ;;  %v2240_v51 = vld [vmem:[#allocation2 + $0x30] sm:$0xf]  ;;  %v2561_v52 = vld [vmem:[#allocation2 + $0x38] sm:$0xf0]  ;;  %v2560_v53 = vld [vmem:[#allocation2 + $0x34] sm:$0xf] }
  0x25   : > { %632 = vmatpush.bf16.msra.mxu2 %v2285_v30  ;;  %v2241_v54 = vor.u32 %v2561_v52, %v2240_v51  ;;  %v2242_v55 = vld [vmem:[#allocation2 + $0x3c] sm:$0xf0]  ;;  %v2248_v56 = vld [vmem:[#allocation2 + $0x38] sm:$0xf]  ;;  %v2562_v57 = vld [vmem:[#allocation2 + $0x40] sm:$0xf0] }
  0x26   : > { %v2245_v58 = vor.u32 %v2560_v53, %v2242_v55  ;;  %v2249_v59 = vor.u32 %v2562_v57, %v2248_v56  ;;  %v420_v60 = vsub.f32 1.0, %v419_v50  ;;  %v2228_v61 = vld [vmem:[#allocation2 + $0x18] sm:$0xf]  ;;  %v2558_v62 = vld [vmem:[#allocation2 + $0x20] sm:$0xf0]  ;;  %s2871_s10 = smov 32  }
  0x27   : > { %v2557_v63 = vld [vmem:[#allocation2 + $0x1c] sm:$0xf]  ;;  %v2229_v0 = vor.u32 %v2558_v62, %v2228_v61  ;;  %v2230_v1 = vld [vmem:[#allocation2 + $0x24] sm:$0xf0]  ;;  %v2236_v2 = vld [vmem:[#allocation2 + $0x20] sm:$0xf] }
  0x28   : > { %607 = vmatpush.bf16.msra.mxu0 %v2265_v34  ;;  %620 = vmatpush.bf16.msra.mxu1 %v2269_v38  ;;  %v2559_v4 = vld [vmem:[#allocation2 + $0x28] sm:$0xf0]  ;;  %v2233_v5 = vor.u32 %v2557_v63, %v2230_v1  ;;  %v2216_v7 = vld [vmem:[#allocation2] sm:$0xf]  ;;  %v2554_v9 = vld [vmem:[#allocation2 + $0x4] sm:$0xf]  ;;  %v421_v10 = vmul.f32 %v2708_v40, %v420_v60 }
  0x29   : > { %633 = vmatpush.bf16.msra.mxu2 %v2273_v39  ;;  %v2237_v6 = vor.u32 %v2559_v4, %v2236_v2  ;;  %v2555_v8 = vld [vmem:[#allocation2 + $0x8] sm:$0xf0]  ;;  %v2218_v12 = vld [vmem:[#allocation2 + $0xc] sm:$0xf0]  ;;  %v2224_v13 = vld [vmem:[#allocation2 + $0x8] sm:$0xf] }
  0x2a   : > { %v2217_v11 = vor.u32 %v2555_v8, %v2216_v7  ;;  %v2556_v14 = vld [vmem:[#allocation2 + $0x10] sm:$0xf0]  ;;  %v2221_v15 = vor.u32 %v2554_v9, %v2218_v12  ;;  %v422_v17 = vadd.f32 %v2708_v40, %v421_v10  ;;  %v2689_v28 = vld [vmem:[%s3402_s3] ss:$0 sm:$0xff]  ;;  %s2872_s11 = smov 80   ;;  %s2873_s15 = smov 64  }
  0x2b   : > { %v2225_v16 = vor.u32 %v2556_v14, %v2224_v13  ;;  %s2874_s17 = smov 48   ;;  %s2875_s14 = smov 120   ;;  %vm745_vm4 = vcmask 64512   ;;  %v2697_v61 = vld [vmem:[%s2999_s25] ss:$0 sm:$0xff]  ;;  %vm990_vm5 = vcmask 130048  }
  0x2c   : > { %608 = vmatpush.bf16.msra.mxu0 %v2253_v44  ;;  %621 = vmatpush.bf16.msra.mxu1 %v2257_v48  ;;  %v3001_v18 = vsel %vm423_vm0, %v2708_v40, %v422_v17  ;;  %s2876_s16 = smov 16   ;;  %s2877_s18 = smov 8   ;;  %v2698_v62 = vld [vmem:[%s2992_s22] ss:$0 sm:$0xff]  ;;  %vm1354_vm6 = vcmask 1043456  }
  0x2d   : > { %634 = vmatpush.bf16.msra.mxu2 %v2261_v49 }
  0x30   : > { %609 = vmatpush.bf16.msra.mxu0 %v2241_v54  ;;  %622 = vmatpush.bf16.msra.mxu1 %v2245_v58 }
  0x31   : > { %635 = vmatpush.bf16.msra.mxu2 %v2249_v59 }
  0x34   : > { %610 = vmatpush.bf16.msra.mxu0 %v2229_v0  ;;  %623 = vmatpush.bf16.msra.mxu1 %v2233_v5 }
  0x35   : > { %636 = vmatpush.bf16.msra.mxu2 %v2237_v6 }
  0x38   : > { %611 = vmatpush.bf16.msra.mxu0 %v2217_v11  ;;  %624 = vmatpush.bf16.msra.mxu1 %v2221_v15 }
  0x39   : > { %637 = vmatpush.bf16.msra.mxu2 %v2225_v16 }
  0x95   : > { %v417_v19 = vpop.xlane.xlu0 %416 }
  0x96   : > { %v425_v20 = vmul.f32 %v3001_v18, %v417_v19 }
  0x98   : > { %v426_v21 = vadd.f32 1e-06, %v425_v20 }
  0x9a   : > { %2709 = vrsqrt.f32 %v426_v21  ;;  %vm433_vm2 = vweird.f32 %v426_v21 }
  0xa0   : > { %v2710_v22 = vpop.eup %2709 }
  0xa1   : > { %v428_v23 = vmul.f32 %v2710_v22, %v426_v21  ;;  %vm434_vm1 = vweird.f32 %v2710_v22 }
  0xa2   : > { %vm435_vm3 = vmor %vm433_vm2, %vm434_vm1 }
  0xa3   : > { %v429_v24 = vmul.f32 %v2710_v22, %v428_v23 }
  0xa5   : > { %v430_v25 = vmul.f32 0.5, %v429_v24 }
  0xa7   : > { %v431_v26 = vsub.f32 1.5, %v430_v25 }
  0xa9   : > { %v432_v27 = vmul.f32 %v2710_v22, %v431_v26  ;;  %v2693_v26 = vld [vmem:[%s2992_s22 + $0x1] ss:$0 sm:$0xff] }
  0xab   : > { %v436_v29 = vsel %vm435_vm3, %v2710_v22, %v432_v27  ;;  %v2699_v27 = vld [vmem:[%s2999_s25 + $0x1] ss:$0 sm:$0xff] }
  0xac   : > { %v437_v30 = vmul.f32 %v436_v29, %v2987_v3 }
  0xae   : > { %v442_v31 = vmul.f32 %v2689_v28, %v437_v30 }
  0xb0   : > { %v443_v32 = vpack.c.bf16 %v442_v31, %v442_v31 }
  0xb2   : > { %612 = vmatmul.bf16.vlgmr.msra.gmra.mxu0 %v443_v32  ;;  %625 = vmatmul.bf16.vlgmr.msra.gmra.mxu1 %v443_v32 }
  0xb3   : > { %638 = vmatmul.bf16.vlgmr.msra.gmra.mxu2 %v443_v32 }
 0x12f   : > { %v3008_v33 = vpop.f32.mrf.mxu0  ;;  %v3010_v34 = vpop.f32.mrf.mxu1 }
 0x130   : > { %835 = vrot.lane.b32.xlu0 %v3010_v34, %s2869_s28  ;;  %663 = vrot.lane.b32.xlu2 %v3008_v33, %s2870_s29  ;;  %v856_v39 = vsub.f32 0.0, %v3010_v34  ;;  %v681_v40 = vsub.f32 0.0, %v3008_v33  ;;  %v928_v7 = vmul.f32 %v2698_v62, %v3010_v34  ;;  %v778_v16 = vmul.f32 %v2698_v62, %v3008_v33 }
 0x131   : > { %660 = vrot.lane.b32.xlu1 %v3008_v33, %s2869_s28 }
 0x136   : > { %v3018_v35 = vpop.f32.mrf.mxu2 }
 0x137   : > { %v615_v36 = vpop.f32.mrf.mxu0  ;;  %v628_v37 = vpop.f32.mrf.mxu1 }
 0x138   : > { %675 = vrot.lane.b32.xlu0 %v3008_v33, %s2871_s10  ;;  %841 = vrot.lane.b32.xlu2 %v3010_v34, %s2872_s11 }
 0x139   : > { %838 = vrot.lane.b32.xlu1 %v3010_v34, %s2870_s29 }
 0x13e   : > { %v641_v38 = vpop.f32.mrf.mxu2 }
 0x140   : > { %844 = vrot.lane.b32.xlu0 %v3010_v34, %s2873_s15  ;;  %850 = vrot.lane.b32.xlu2 %v3010_v34, %s2871_s10 }
 0x141   : > { %847 = vrot.lane.b32.xlu1 %v3010_v34, %s2874_s17 }
 0x148   : > { %872 = vrot.lane.b32.xlu0 %v856_v39, %s2875_s14  ;;  %672 = vrot.lane.b32.xlu2 %v3008_v33, %s2874_s17 }
 0x149   : > { %666 = vrot.lane.b32.xlu1 %v3008_v33, %s2872_s11 }
 0x150   : > { %678 = vrot.lane.b32.xlu2 %v3008_v33, %s2876_s16 }
 0x151   : > { %853 = vrot.lane.b32.xlu1 %v3010_v34, %s2876_s16 }
 0x158   : > { %721 = vrot.lane.b32.xlu2 %v3008_v33, %s2877_s18 }
 0x159   : > { %669 = vrot.lane.b32.xlu1 %v3008_v33, %s2873_s15 }
 0x161   : > { %896 = vrot.lane.b32.xlu1 %v3010_v34, %s2877_s18 }
 0x169   : > { %697 = vrot.lane.b32.xlu1 %v681_v40, %s2875_s14 }
 0x18a   : > { %v3050_v41 = vpop.permute.xlu2 %663 }
 0x18b   : > { %v683_v56 = vsub.f32 0.0, %v3050_v41 }
 0x192   : > { %v3062_v45 = vpop.permute.xlu2 %841 }
 0x193   : > { %v859_v63 = vsub.f32 0.0, %v3062_v45 }
 0x19a   : > { %v3070_v47 = vpop.permute.xlu2 %850 }
 0x19b   : > { %v862_v0 = vsub.f32 0.0, %v3070_v47 }
 0x1a2   : > { %v3052_v42 = vpop.permute.xlu0 %835  ;;  %v3082_v50 = vpop.permute.xlu2 %672 }
 0x1a3   : > { %v857_v43 = vsub.f32 0.0, %v3052_v42  ;;  %v3055_v44 = vpop.permute.xlu1 %660  ;;  %898 = vrot.lane.b32.xlu2 %v3052_v42, %s2877_s18  ;;  %v686_v58 = vsub.f32 0.0, %v3082_v50  ;;  %v929_v32 = vmul.f32 %v2693_v26, %v3052_v42  ;;  %v2690_v42 = vld [vmem:[%s2992_s22 + $0x2] ss:$0 sm:$0xff] }
 0x1a4   : > { %723 = vrot.lane.b32.xlu0 %v3055_v44, %s2877_s18  ;;  %v682_v52 = vsub.f32 0.0, %v3055_v44 }
 0x1a5   : > { %874 = vrot.lane.b32.xlu1 %v857_v43, %s2875_s14 }
 0x1aa   : > { %v3080_v49 = vpop.permute.xlu0 %675  ;;  %v3110_v60 = vpop.permute.xlu2 %678 }
 0x1ab   : > { %v3064_v46 = vpop.permute.xlu1 %838  ;;  %v687_v10 = vsub.f32 0.0, %v3080_v49  ;;  %v688_v23 = vsub.f32 0.0, %v3110_v60 }
 0x1ac   : > { %900 = vrot.lane.b32.xlu0 %v3064_v46, %s2877_s18  ;;  %v858_v57 = vsub.f32 0.0, %v3064_v46 }
 0x1ad   : > { %725 = vrot.lane.b32.xlu1 %v3050_v41, %s2877_s18 }
 0x1b2   : > { %v3093_v53 = vpop.permute.xlu0 %844  ;;  %v722_v12 = vpop.permute.xlu2 %721 }
 0x1b3   : > { %v3072_v48 = vpop.permute.xlu1 %847  ;;  %v860_v21 = vsub.f32 0.0, %v3093_v53 }
 0x1b4   : > { %902 = vrot.lane.b32.xlu0 %v3062_v45, %s2877_s18  ;;  %906 = vrot.lane.b32.xlu2 %v3072_v48, %s2877_s18  ;;  %v861_v54 = vsub.f32 0.0, %v3072_v48 }
 0x1b5   : > { %908 = vrot.lane.b32.xlu1 %v3070_v47, %s2877_s18 }
 0x1ba   : > { %v873_v1 = vpop.permute.xlu0 %872 }
 0x1bb   : > { %v3084_v51 = vpop.permute.xlu1 %666 }
 0x1bc   : > { %731 = vrot.lane.b32.xlu2 %v3082_v50, %s2877_s18  ;;  %727 = vrot.lane.b32.xlu0 %v3084_v51, %s2877_s18  ;;  %v684_v11 = vsub.f32 0.0, %v3084_v51 }
 0x1bd   : > { %733 = vrot.lane.b32.xlu1 %v3080_v49, %s2877_s18 }
 0x1c3   : > { %v3096_v55 = vpop.permute.xlu1 %853 }
 0x1c4   : > { %699 = vrot.lane.b32.xlu2 %v682_v52, %s2875_s14  ;;  %904 = vrot.lane.b32.xlu0 %v3093_v53, %s2877_s18  ;;  %v863_v2 = vsub.f32 0.0, %v3096_v55  ;;  %v779_v52 = vmul.f32 %v2693_v26, %v3055_v44 }
 0x1c5   : > { %882 = vrot.lane.b32.xlu1 %v861_v54, %s2875_s14 }
 0x1cb   : > { %v3105_v59 = vpop.permute.xlu1 %669 }
 0x1cc   : > { %876 = vrot.lane.b32.xlu2 %v858_v57, %s2875_s14  ;;  %701 = vrot.lane.b32.xlu0 %v683_v56, %s2875_s14  ;;  %v685_v22 = vsub.f32 0.0, %v3105_v59  ;;  %v2700_v57 = vld [vmem:[%s2999_s25 + $0x2] ss:$0 sm:$0xff] }
 0x1cd   : > { %707 = vrot.lane.b32.xlu1 %v686_v58, %s2875_s14 }
 0x1d3   : > { %v897_v4 = vpop.permute.xlu1 %896 }
 0x1d4   : > { %v920_v5 = vsel %vm745_vm4, %v873_v1, %v897_v4  ;;  %878 = vrot.lane.b32.xlu2 %v859_v63, %s2875_s14  ;;  %884 = vrot.lane.b32.xlu0 %v862_v0, %s2875_s14  ;;  %v930_v1 = vmul.f32 %v2690_v42, %v3064_v46  ;;  %v2691_v4 = vld [vmem:[%s2992_s22 + $0x3] ss:$0 sm:$0xff] }
 0x1d5   : > { %v936_v6 = vmul.f32 %v2697_v61, %v920_v5  ;;  %886 = vrot.lane.b32.xlu1 %v863_v2, %s2875_s14  ;;  %v2701_v5 = vld [vmem:[%s2999_s25 + $0x3] ss:$0 sm:$0xff] }
 0x1d7   : > { %v944_v8 = vadd.f32 %v936_v6, %v928_v7 }
 0x1d9   : > { %v952_v9 = vpack.c.bf16 %v944_v8, %v944_v8 }
 0x1db   : > { %v698_v13 = vpop.permute.xlu1 %697  ;;  %v995_v14 = vsel %vm990_vm5, %v952_v9, 0 }
 0x1dc   : > { %v746_v15 = vsel %vm745_vm4, %v698_v13, %v722_v12  ;;  %703 = vrot.lane.b32.xlu2 %v684_v11, %s2875_s14  ;;  %709 = vrot.lane.b32.xlu0 %v687_v10, %s2875_s14  ;;  %v931_v12 = vmul.f32 %v2691_v4, %v3062_v45 }
 0x1dd   : > { %v810_v17 = vmul.f32 %v2697_v61, %v746_v15  ;;  %1004 = vmatpush.bf16.xpose.msrb.mxu0 %v995_v14  ;;  %729 = vrot.lane.b32.xlu1 %v3105_v59, %s2877_s18  ;;  %v2702_v15 = vld [vmem:[%s2999_s25 + $0x5] ss:$0 sm:$0xff] }
 0x1df   : > { %v818_v19 = vadd.f32 %v810_v17, %v778_v16 }
 0x1e1   : > { %v826_v20 = vpack.c.bf16 %v818_v19, %v818_v19 }
 0x1e4   : > { %2310 = vmatmul.msk.bf16.vlgmr.msrb.gmra.mxu0 %vm990_vm5, %v826_v20  ;;  %880 = vrot.lane.b32.xlu2 %v860_v21, %s2875_s14  ;;  %v2694_v20 = vld [vmem:[%s2992_s22 + $0x5] ss:$0 sm:$0xff] }
 0x1e5   : > { %705 = vrot.lane.b32.xlu0 %v685_v22, %s2875_s14  ;;  %v933_v26 = vmul.f32 %v2694_v20, %v3072_v48 }
 0x1ec   : > { %910 = vrot.lane.b32.xlu2 %v3096_v55, %s2877_s18 }
 0x1ed   : > { %735 = vrot.lane.b32.xlu0 %v3110_v60, %s2877_s18 }
 0x1f4   : > { %711 = vrot.lane.b32.xlu2 %v688_v23, %s2875_s14  ;;  %v781_v23 = vmul.f32 %v2691_v4, %v3084_v51  ;;  %v780_v51 = vmul.f32 %v2690_v42, %v3050_v41  ;;  %v783_v41 = vmul.f32 %v2694_v20, %v3082_v50 }
 0x1fc   : > { %961 = vrot.lane.b32.xlu2 %v3018_v35, %s2869_s28 }
 0x1fd   : > { %v899_v24 = vpop.permute.xlu2 %898 }
 0x20e   : > { %v907_v25 = vpop.permute.xlu2 %906 }
 0x216   : > { %v724_v28 = vpop.permute.xlu0 %723  ;;  %v3146_v29 = vpop.permute.xlu2 %731 }
 0x217   : > { %v875_v30 = vpop.permute.xlu1 %874 }
 0x218   : > { %v921_v31 = vsel %vm745_vm4, %v875_v30, %v899_v24 }
 0x219   : > { %v937_v33 = vmul.f32 %v2699_v27, %v921_v31  ;;  %v3175_v31 = vld [vmem:[%s2992_s22 + $0x4] ss:$0 sm:$0xff] }
 0x21b   : > { %v945_v34 = vadd.f32 %v937_v33, %v929_v32  ;;  %v3178_v33 = vld [vmem:[%s2999_s25 + $0x4] ss:$0 sm:$0xff] }
 0x21d   : > { %v953_v36 = vpack.c.bf16 %v945_v34, %v945_v34 }
 0x21e   : > { %v901_v37 = vpop.permute.xlu0 %900  ;;  %v700_v38 = vpop.permute.xlu2 %699 }
 0x21f   : > { %v747_v39 = vsel %vm745_vm4, %v700_v38, %v724_v28  ;;  %v726_v40 = vpop.permute.xlu1 %725  ;;  %v1014_v43 = vsel %vm990_vm5, %v953_v36, 0 }
 0x220   : > { %v811_v54 = vmul.f32 %v2699_v27, %v747_v39  ;;  %1023 = vmatpush.bf16.xpose.msra.mxu3 %v1014_v43  ;;  %v932_v43 = vmul.f32 %v3175_v31, %v3093_v53 }
 0x222   : > { %v819_v56 = vadd.f32 %v811_v54, %v779_v52 }
 0x224   : > { %v827_v58 = vpack.c.bf16 %v819_v56, %v819_v56 }
 0x226   : > { %v903_v61 = vpop.permute.xlu0 %902  ;;  %v877_v62 = vpop.permute.xlu2 %876 }
 0x227   : > { %v922_v63 = vsel %vm745_vm4, %v877_v62, %v901_v37  ;;  %2311 = vmatmul.msk.bf16.vlgmr.msra.gmra.mxu3 %vm990_vm5, %v827_v58  ;;  %v3157_v0 = vpop.permute.xlu1 %908  ;;  %v982_v62 = vpack.c.bf16 %v3018_v35, %v3018_v35 }
 0x228   : > { %v938_v2 = vmul.f32 %v2700_v57, %v922_v63  ;;  %v2692_v63 = vld [vmem:[%s2992_s22 + $0x6] ss:$0 sm:$0xff] }
 0x22a   : > { %v946_v44 = vadd.f32 %v938_v2, %v930_v1  ;;  %v2704_v1 = vld [vmem:[%s2999_s25 + $0x6] ss:$0 sm:$0xff] }
 0x22c   : > { %v954_v6 = vpack.c.bf16 %v946_v44, %v946_v44  ;;  %v2705_v44 = vld [vmem:[%s2999_s25 + $0x7] ss:$0 sm:$0xff] }
 0x22e   : > { %v879_v7 = vpop.permute.xlu2 %878  ;;  %v728_v8 = vpop.permute.xlu0 %727  ;;  %v1033_v9 = vsel %vm990_vm5, %v954_v6, 0 }
 0x22f   : > { %v923_v10 = vsel %vm745_vm4, %v879_v7, %v903_v61  ;;  %1042 = vmatpush.bf16.xpose.msrb.mxu3 %v1033_v9  ;;  %v3164_v11 = vpop.permute.xlu1 %733  ;;  %v1356_v7 = vsel %vm1354_vm6, %v982_v62, 0  ;;  %v934_v9 = vmul.f32 %v2692_v63, %v3070_v47 }
 0x230   : > { %v939_v13 = vmul.f32 %v2701_v5, %v923_v10 }
 0x232   : > { %v947_v46 = vadd.f32 %v939_v13, %v931_v12 }
 0x234   : > { %v955_v14 = vpack.c.bf16 %v947_v46, %v947_v46 }
 0x236   : > { %v704_v16 = vpop.permute.xlu2 %703  ;;  %v905_v17 = vpop.permute.xlu0 %904  ;;  %v1052_v19 = vsel %vm990_vm5, %v955_v14, 0 }
 0x237   : > { %v749_v21 = vsel %vm745_vm4, %v704_v16, %v728_v8  ;;  %1061 = vmatpush.bf16.xpose.msra.mxu0 %v1052_v19  ;;  %v883_v22 = vpop.permute.xlu1 %882 }
 0x238   : > { %v813_v24 = vmul.f32 %v2701_v5, %v749_v21  ;;  %v925_v45 = vsel %vm745_vm4, %v883_v22, %v907_v25  ;;  %v2695_v5 = vld [vmem:[%s2992_s22 + $0x7] ss:$0 sm:$0xff]  ;;  %v784_v22 = vmul.f32 %v2692_v63, %v3080_v49 }
 0x239   : > { %v941_v27 = vmul.f32 %v2702_v15, %v925_v45  ;;  %v935_v13 = vmul.f32 %v2695_v5, %v3096_v55 }
 0x23a   : > { %v821_v28 = vadd.f32 %v813_v24, %v781_v23 }
 0x23b   : > { %v949_v30 = vadd.f32 %v941_v27, %v933_v26 }
 0x23c   : > { %v829_v32 = vpack.c.bf16 %v821_v28, %v821_v28 }
 0x23d   : > { %v957_v34 = vpack.c.bf16 %v949_v30, %v949_v30 }
 0x23e   : > { %v881_v36 = vpop.permute.xlu2 %880  ;;  %v702_v37 = vpop.permute.xlu0 %701  ;;  %2313 = vmatmul.msk.bf16.vlgmr.msra.gmra.mxu0 %vm990_vm5, %v829_v32 }
 0x23f   : > { %v924_v25 = vsel %vm745_vm4, %v881_v36, %v905_v17  ;;  %v748_v48 = vsel %vm745_vm4, %v702_v37, %v726_v40  ;;  %v708_v38 = vpop.permute.xlu1 %707  ;;  %v1090_v39 = vsel %vm990_vm5, %v957_v34, 0 }
 0x240   : > { %v940_v52 = vmul.f32 %v3178_v33, %v924_v25  ;;  %v812_v54 = vmul.f32 %v2700_v57, %v748_v48  ;;  %v751_v56 = vsel %vm745_vm4, %v708_v38, %v3146_v29  ;;  %1099 = vmatpush.bf16.xpose.msrb.mxu2 %v1090_v39  ;;  %v785_v25 = vmul.f32 %v2695_v5, %v3110_v60 }
 0x241   : > { %v815_v58 = vmul.f32 %v2702_v15, %v751_v56 }
 0x242   : > { %v820_v40 = vadd.f32 %v812_v54, %v780_v51  ;;  %v948_v42 = vadd.f32 %v940_v52, %v932_v43 }
 0x243   : > { %v823_v61 = vadd.f32 %v815_v58, %v783_v41 }
 0x244   : > { %v828_v53 = vpack.c.bf16 %v820_v40, %v820_v40  ;;  %v956_v2 = vpack.c.bf16 %v948_v42, %v948_v42 }
 0x245   : > { %v831_v57 = vpack.c.bf16 %v823_v61, %v823_v61 }
 0x246   : > { %v885_v4 = vpop.permute.xlu0 %884  ;;  %v911_v29 = vpop.permute.xlu2 %910  ;;  %2312 = vmatmul.msk.bf16.vlgmr.msrb.gmra.mxu3 %vm990_vm5, %v828_v53  ;;  %v1071_v50 = vsel %vm990_vm5, %v956_v2, 0 }
 0x247   : > { %v926_v6 = vsel %vm745_vm4, %v885_v4, %v3157_v0  ;;  %1080 = vmatpush.bf16.xpose.msrb.mxu1 %v1071_v50  ;;  %2315 = vmatmul.msk.bf16.vlgmr.msrb.gmra.mxu2 %vm990_vm5, %v831_v57  ;;  %v887_v8 = vpop.permute.xlu1 %886 }
 0x248   : > { %v942_v10 = vmul.f32 %v2704_v1, %v926_v6  ;;  %v927_v12 = vsel %vm745_vm4, %v887_v8, %v911_v29 }
 0x249   : > { %v943_v46 = vmul.f32 %v2705_v44, %v927_v12 }
 0x24a   : > { %v950_v14 = vadd.f32 %v942_v10, %v934_v9 }
 0x24b   : > { %v951_v15 = vadd.f32 %v943_v46, %v935_v13 }
 0x24c   : > { %v958_v16 = vpack.c.bf16 %v950_v14, %v950_v14 }
 0x24d   : > { %v959_v17 = vpack.c.bf16 %v951_v15, %v951_v15 }
 0x24e   : > { %v710_v0 = vpop.permute.xlu0 %709  ;;  %v712_v19 = vpop.permute.xlu2 %711  ;;  %v1109_v20 = vsel %vm990_vm5, %v958_v16, 0 }
 0x24f   : > { %1365 = vmatpush.bf16.msra.mxu1 %v1356_v7  ;;  %v752_v21 = vsel %vm745_vm4, %v710_v0, %v3164_v11  ;;  %1118 = vmatpush.bf16.xpose.msra.mxu3 %v1109_v20  ;;  %v1128_v47 = vsel %vm990_vm5, %v959_v17, 0  ;;  %v730_v26 = vpop.permute.xlu1 %729  ;;  %v782_v11 = vmul.f32 %v3175_v31, %v3105_v59 }
 0x250   : > { %v816_v23 = vmul.f32 %v2704_v1, %v752_v21  ;;  %1137 = vmatpush.bf16.xpose.msrb.mxu0 %v1128_v47 }
 0x252   : > { %v824_v55 = vadd.f32 %v816_v23, %v784_v22 }
 0x254   : > { %v832_v24 = vpack.c.bf16 %v824_v55, %v824_v55 }
 0x256   : > { %v962_v45 = vpop.permute.xlu2 %961  ;;  %2316 = vmatmul.msk.bf16.vlgmr.msra.gmra.mxu3 %vm990_vm5, %v832_v24 }
 0x257   : > { %v983_v27 = vpack.c.bf16 %v962_v45, %v962_v45  ;;  %v706_v28 = vpop.permute.xlu0 %705 }
 0x258   : > { %v750_v30 = vsel %vm745_vm4, %v706_v28, %v730_v26 }
 0x259   : > { %v1375_v32 = vsel %vm1354_vm6, %v983_v27, 0  ;;  %v814_v34 = vmul.f32 %v3178_v33, %v750_v30 }
 0x25a   : > { %1384 = vmatpush.bf16.msra.mxu2 %v1375_v32 }
 0x25b   : > { %v822_v49 = vadd.f32 %v814_v34, %v782_v11 }
 0x25d   : > { %v830_v36 = vpack.c.bf16 %v822_v49, %v822_v49 }
 0x25f   : > { %v736_v37 = vpop.permute.xlu0 %735  ;;  %2314 = vmatmul.msk.bf16.vlgmr.msrb.gmra.mxu1 %vm990_vm5, %v830_v36 }
 0x260   : > { %v753_v51 = vsel %vm745_vm4, %v712_v19, %v736_v37 }
 0x261   : > { %v817_v48 = vmul.f32 %v2705_v44, %v753_v51  ;;  %v1006_v38 = vpop.f32.mrf.mxu0 }
 0x262   : > { %v1143_v39 = vmul.f32 0.25, %v1006_v38 }
 0x263   : > { %v825_v43 = vadd.f32 %v817_v48, %v785_v25 }
 0x264   : > { %v1151_v59 = vsel %vm745_vm4, %v1143_v39, -inf }
 0x265   : > { %v833_v31 = vpack.c.bf16 %v825_v43, %v825_v43  ;;  %1152 = vmax.xlane.f32.xlu0 %v1151_v59 }
 0x267   : > { %2317 = vmatmul.msk.bf16.vlgmr.msrb.gmra.mxu0 %vm990_vm5, %v833_v31 }
 0x269   : > { %v1008_v33 = vpop.f32.mrf.mxu0 }
 0x2aa   : > { %v1025_v52 = vpop.f32.mrf.mxu3 }
 0x2ab   : > { %v1144_v54 = vmul.f32 0.25, %v1025_v52 }
 0x2ad   : > { %v1154_v56 = vsel %vm745_vm4, %v1144_v54, -inf }
 0x2ae   : > { %1155 = vmax.xlane.f32.xlu1 %v1154_v56 }
 0x2b2   : > { %v1027_v41 = vpop.f32.mrf.mxu3 }
 0x2bb   : > { %v1063_v58 = vpop.f32.mrf.mxu0 }
 0x2bc   : > { %v1146_v40 = vmul.f32 0.25, %v1063_v58 }
 0x2be   : > { %v1160_v60 = vsel %vm745_vm4, %v1146_v40, -inf }
 0x2bf   : > { %1161 = vmax.xlane.f32.xlu2 %v1160_v60 }
 0x2c3   : > { %v1065_v42 = vpop.f32.mrf.mxu0 }
 0x2c9   : > { %v1044_v61 = vpop.f32.mrf.mxu3 }
 0x2ca   : > { %v1101_v62 = vpop.f32.mrf.mxu2  ;;  %v1145_v12 = vmul.f32 0.25, %v1044_v61 }
 0x2cb   : > { %v1148_v63 = vmul.f32 0.25, %v1101_v62 }
 0x2cc   : > { %v1157_v15 = vsel %vm745_vm4, %v1145_v12, -inf }
 0x2cd   : > { %v1166_v53 = vsel %vm745_vm4, %v1148_v63, -inf }
 0x2ce   : > { %1167 = vmax.xlane.f32.xlu1 %v1166_v53 }
 0x2d1   : > { %v1046_v1 = vpop.f32.mrf.mxu3 }
 0x2d2   : > { %v1103_v2 = vpop.f32.mrf.mxu2 }
 0x2d8   : > { %v1153_v57 = vpop.xlane.xlu0 %1152 }
 0x2d9   : > { %v1175_v44 = vsub.f32 %v1143_v39, %v1153_v57  ;;  %v1120_v4 = vpop.f32.mrf.mxu3 }
 0x2da   : > { %v1149_v29 = vmul.f32 0.25, %v1120_v4 }
 0x2db   : > { %v1183_v50 = vmul.f32 1.442695, %v1175_v44 }
 0x2dc   : > { %v1082_v5 = vpop.f32.mrf.mxu1  ;;  %v1169_v6 = vsel %vm745_vm4, %v1149_v29, -inf }
 0x2dd   : > { %2711 = vpow2.f32 %v1183_v50  ;;  %v1147_v7 = vmul.f32 0.25, %v1082_v5  ;;  %1170 = vmax.xlane.f32.xlu0 %v1169_v6 }
 0x2df   : > { %v1163_v8 = vsel %vm745_vm4, %v1147_v7, -inf }
 0x2e0   : > { %1164 = vmax.xlane.f32.xlu2 %v1163_v8 }
 0x2e1   : > { %v1122_v9 = vpop.f32.mrf.mxu3 }
 0x2e3   : > { %v3227_v10 = vpop.eup %2711 }
 0x2e4   : > { %v1084_v13 = vpop.f32.mrf.mxu1  ;;  %v1139_v46 = vpop.f32.mrf.mxu0  ;;  %v1199_v14 = vsel %vm745_vm4, %v3227_v10, 0.0 }
 0x2e5   : > { %1200 = vadd.xlane.f32.xlu1 %v1199_v14  ;;  %v3232_v16 = vmul.f32 0.25, %v1139_v46 }
 0x2e7   : > { %v1172_v0 = vsel %vm745_vm4, %v3232_v16, -inf }
 0x2e8   : > { %1158 = vmax.xlane.f32.xlu2 %v1157_v15 }
 0x2ec   : > { %v1141_v17 = vpop.f32.mrf.mxu0 }
 0x2ed   : > { %1173 = vmax.xlane.f32.xlu1 %v1172_v0 }
 0x300   : > { %967 = vrot.lane.b32.xlu2 %v3018_v35, %s2872_s11 }
 0x321   : > { %v1156_v19 = vpop.xlane.xlu1 %1155 }
 0x322   : > { %v1176_v47 = vsub.f32 %v1144_v54, %v1156_v19 }
 0x324   : > { %v1185_v23 = vmul.f32 1.442695, %v1176_v47 }
 0x332   : > { %v1162_v20 = vpop.xlane.xlu2 %1161 }
 0x333   : > { %v1178_v21 = vsub.f32 %v1146_v40, %v1162_v20 }
 0x335   : > { %v1189_v22 = vmul.f32 1.442695, %v1178_v21 }
 0x337   : > { %2713 = vpow2.f32 %v1189_v22 }
 0x338   : > { %2715 = vpow2.f32 %v1185_v23 }
 0x33d   : > { %v3238_v55 = vpop.eup %2713 }
 0x33e   : > { %v1208_v24 = vsel %vm745_vm4, %v3238_v55, 0.0  ;;  %v3242_v45 = vpop.eup %2715 }
 0x33f   : > { %1209 = vadd.xlane.f32.xlu0 %v1208_v24  ;;  %v1202_v26 = vsel %vm745_vm4, %v3242_v45, 0.0 }
 0x341   : > { %v1168_v27 = vpop.xlane.xlu1 %1167 }
 0x342   : > { %v1180_v11 = vsub.f32 %v1148_v63, %v1168_v27 }
 0x344   : > { %v1193_v49 = vmul.f32 1.442695, %v1180_v11 }
 0x347   : > { %1203 = vadd.xlane.f32.xlu0 %v1202_v26 }
 0x350   : > { %v1171_v36 = vpop.xlane.xlu0 %1170 }
 0x351   : > { %v1181_v48 = vsub.f32 %v1149_v29, %v1171_v36 }
 0x353   : > { %v1165_v28 = vpop.xlane.xlu2 %1164  ;;  %v1195_v31 = vmul.f32 1.442695, %v1181_v48 }
 0x354   : > { %v1179_v30 = vsub.f32 %v1147_v7, %v1165_v28 }
 0x356   : > { %v1191_v32 = vmul.f32 1.442695, %v1179_v30 }
 0x358   : > { %2717 = vpow2.f32 %v1191_v32  ;;  %v1201_v34 = vpop.xlane.xlu1 %1200 }
 0x359   : > { %2719 = vrcp.f32 %v1201_v34  ;;  %v1234_v52 = vand.u32 2147483648, %v1201_v34  ;;  %v1232_v58 = vand.u32 2147483647, %v1201_v34  ;;  %vm1228_vm8 = vweird.f32 %v1201_v34 }
 0x35a   : > { %2721 = vpow2.f32 %v1193_v49 }
 0x35b   : > { %v1159_v37 = vpop.xlane.xlu2 %1158  ;;  %964 = vrot.lane.b32.xlu0 %v3018_v35, %s2870_s29  ;;  %v1235_v62 = vor.u32 1.1754944e-38, %v1234_v52  ;;  %vm1233_vm10 = vcmp.eq.f32.partialorder %v1232_v58, 8.507059e+37 }
 0x35c   : > { %v1177_v51 = vsub.f32 %v1145_v12, %v1159_v37 }
 0x35e   : > { %v3248_v25 = vpop.eup %2717  ;;  %v1187_v38 = vmul.f32 1.442695, %v1177_v51 }
 0x35f   : > { %v2720_v39 = vpop.eup %2719  ;;  %v1211_v43 = vsel %vm745_vm4, %v3248_v25, 0.0 }
 0x360   : > { %v1224_v59 = vmul.f32 %v2720_v39, %v1201_v34  ;;  %2723 = vpow2.f32 %v1187_v38  ;;  %1212 = vadd.xlane.f32.xlu1 %v1211_v43  ;;  %v3252_v56 = vpop.eup %2721  ;;  %vm1229_vm7 = vweird.f32 %v2720_v39  ;;  %v1174_v50 = vpop.xlane.xlu1 %1173 }
 0x361   : > { %2725 = vpow2.f32 %v1195_v31  ;;  %vm1230_vm9 = vmor %vm1228_vm8, %vm1229_vm7  ;;  %v1214_v53 = vsel %vm745_vm4, %v3252_v56, 0.0  ;;  %v1182_v5 = vsub.f32 %v3232_v16, %v1174_v50 }
 0x362   : > { %v1225_v33 = vsub.f32 1.0, %v1224_v59 }
 0x363   : > { %v968_v54 = vpop.permute.xlu2 %967  ;;  %v1197_v6 = vmul.f32 1.442695, %v1182_v5 }
 0x364   : > { %v1226_v41 = vmul.f32 %v2720_v39, %v1225_v33  ;;  %v985_v40 = vpack.c.bf16 %v968_v54, %v968_v54 }
 0x365   : > { %2727 = vpow2.f32 %v1197_v6 }
 0x366   : > { %v3254_v60 = vpop.eup %2723  ;;  %v1227_v42 = vadd.f32 %v2720_v39, %v1226_v41  ;;  %v1413_v61 = vsel %vm1354_vm6, %v985_v40, 0 }
 0x367   : > { %1422 = vmatpush.bf16.msra.mxu0 %v1413_v61  ;;  %v1205_v63 = vsel %vm745_vm4, %v3254_v60, 0.0  ;;  %v3262_v44 = vpop.eup %2725 }
 0x368   : > { %v1231_v1 = vsel %vm1230_vm9, %v2720_v39, %v1227_v42  ;;  %1206 = vadd.xlane.f32.xlu2 %v1205_v63  ;;  %1215 = vadd.xlane.f32.xlu1 %v1214_v53  ;;  %v1217_v29 = vsel %vm745_vm4, %v3262_v44, 0.0 }
 0x369   : > { %v1236_v2 = vsel %vm1233_vm10, %v1235_v62, %v1231_v1 }
 0x36a   : > { %v1237_v57 = vmul.f32 %v3227_v10, %v1236_v2 }
 0x36b   : > { %v3270_v7 = vpop.eup %2727 }
 0x36c   : > { %v1343_v4 = vpack.c.bf16 %v1237_v57, %v1237_v57  ;;  %v1220_v8 = vsel %vm745_vm4, %v3270_v7, 0.0 }
 0x36e   : > { %2318 = vmatmul.msk.bf16.vlgmr.msra.gmra.mxu1 %vm745_vm4, %v1343_v4 }
 0x370   : > { %1218 = vadd.xlane.f32.xlu1 %v1217_v29 }
 0x380   : > { %976 = vrot.lane.b32.xlu2 %v3018_v35, %s2871_s10 }
 0x385   : > { %1221 = vadd.xlane.f32.xlu0 %v1220_v8 }
 0x388   : > { %970 = vrot.lane.b32.xlu2 %v3018_v35, %s2873_s15 }
 0x389   : > { %973 = vrot.lane.b32.xlu1 %v3018_v35, %s2874_s17 }
 0x390   : > { %979 = vrot.lane.b32.xlu2 %v3018_v35, %s2876_s16 }
 0x3b2   : > { %v1210_v9 = vpop.xlane.xlu0 %1209 }
 0x3b3   : > { %2729 = vrcp.f32 %v1210_v9  ;;  %v1279_v14 = vand.u32 2147483648, %v1210_v9  ;;  %v1277_v16 = vand.u32 2147483647, %v1210_v9  ;;  %vm1273_vm12 = vweird.f32 %v1210_v9 }
 0x3b5   : > { %v1280_v19 = vor.u32 1.1754944e-38, %v1279_v14  ;;  %vm1278_vm14 = vcmp.eq.f32.partialorder %v1277_v16, 8.507059e+37 }
 0x3b9   : > { %v2730_v10 = vpop.eup %2729 }
 0x3ba   : > { %v1269_v12 = vmul.f32 %v2730_v10, %v1210_v9  ;;  %v1204_v13 = vpop.xlane.xlu0 %1203  ;;  %vm1274_vm11 = vweird.f32 %v2730_v10 }
 0x3bb   : > { %2731 = vrcp.f32 %v1204_v13  ;;  %vm1275_vm13 = vmor %vm1273_vm12, %vm1274_vm11  ;;  %v1249_v23 = vand.u32 2147483648, %v1204_v13  ;;  %v1247_v26 = vand.u32 2147483647, %v1204_v13  ;;  %vm1243_vm0 = vweird.f32 %v1204_v13 }
 0x3bc   : > { %v1270_v46 = vsub.f32 1.0, %v1269_v12 }
 0x3bd   : > { %v1250_v30 = vor.u32 1.1754944e-38, %v1249_v23  ;;  %vm1248_vm2 = vcmp.eq.f32.partialorder %v1247_v26, 8.507059e+37 }
 0x3be   : > { %v1271_v15 = vmul.f32 %v2730_v10, %v1270_v46 }
 0x3c0   : > { %v1272_v17 = vadd.f32 %v2730_v10, %v1271_v15 }
 0x3c1   : > { %v2732_v0 = vpop.eup %2731 }
 0x3c2   : > { %v1276_v20 = vsel %vm1275_vm13, %v2730_v10, %v1272_v17  ;;  %v1239_v21 = vmul.f32 %v2732_v0, %v1204_v13  ;;  %vm1244_vm15 = vweird.f32 %v2732_v0 }
 0x3c3   : > { %v1281_v35 = vsel %vm1278_vm14, %v1280_v19, %v1276_v20  ;;  %vm1245_vm1 = vmor %vm1243_vm0, %vm1244_vm15 }
 0x3c4   : > { %v1282_v47 = vmul.f32 %v3238_v55, %v1281_v35  ;;  %v1240_v22 = vsub.f32 1.0, %v1239_v21 }
 0x3c6   : > { %v1241_v24 = vmul.f32 %v2732_v0, %v1240_v22  ;;  %v1346_v27 = vpack.c.bf16 %v1282_v47, %v1282_v47 }
 0x3c8   : > { %v1242_v28 = vadd.f32 %v2732_v0, %v1241_v24  ;;  %2321 = vmatmul.msk.bf16.vlgmr.msra.gmra.mxu0 %vm745_vm4, %v1346_v27 }
 0x3ca   : > { %v1246_v11 = vsel %vm1245_vm1, %v2732_v0, %v1242_v28 }
 0x3cb   : > { %v1251_v32 = vsel %vm1248_vm2, %v1250_v30, %v1246_v11 }
 0x3cc   : > { %v1252_v34 = vmul.f32 %v3242_v45, %v1251_v32 }
 0x3cd   : > { %v965_v49 = vpop.permute.xlu0 %964 }
 0x3ce   : > { %v984_v36 = vpack.c.bf16 %v965_v49, %v965_v49  ;;  %v1344_v55 = vpack.c.bf16 %v1252_v34, %v1252_v34 }
 0x3d0   : > { %v1394_v37 = vsel %vm1354_vm6, %v984_v36, 0  ;;  %2319 = vmatmul.msk.bf16.vlgmr.msra.gmra.mxu2 %vm745_vm4, %v1344_v55 }
 0x3d1   : > { %1403 = vmatpush.bf16.msrb.mxu3 %v1394_v37 }
 0x3d3   : > { %v1213_v51 = vpop.xlane.xlu1 %1212 }
 0x3d4   : > { %2733 = vrcp.f32 %v1213_v51  ;;  %v1294_v40 = vand.u32 2147483648, %v1213_v51  ;;  %vm1288_vm7 = vweird.f32 %v1213_v51  ;;  %v1292_v61 = vand.u32 2147483647, %v1213_v51 }
 0x3d6   : > { %v1295_v29 = vor.u32 1.1754944e-38, %v1294_v40  ;;  %vm1293_vm10 = vcmp.eq.f32.partialorder %v1292_v61, 8.507059e+37 }
 0x3da   : > { %v2734_v48 = vpop.eup %2733 }
 0x3db   : > { %v1284_v38 = vmul.f32 %v2734_v48, %v1213_v51  ;;  %v1207_v39 = vpop.xlane.xlu2 %1206  ;;  %v3285_v43 = vpop.xlane.xlu1 %1215  ;;  %vm1289_vm3 = vweird.f32 %v2734_v48 }
 0x3dc   : > { %2735 = vrcp.f32 %v1207_v39  ;;  %vm1290_vm8 = vmor %vm1288_vm7, %vm1289_vm3  ;;  %v1264_v63 = vand.u32 2147483648, %v1207_v39  ;;  %v1262_v4 = vand.u32 2147483647, %v1207_v39  ;;  %vm1258_vm11 = vweird.f32 %v1207_v39 }
 0x3dd   : > { %v1285_v59 = vsub.f32 1.0, %v1284_v38  ;;  %2737 = vrcp.f32 %v3285_v43  ;;  %v1309_v23 = vand.u32 2147483648, %v3285_v43  ;;  %vm1303_vm1 = vweird.f32 %v3285_v43 }
 0x3de   : > { %v1265_v6 = vor.u32 1.1754944e-38, %v1264_v63  ;;  %vm1263_vm13 = vcmp.eq.f32.partialorder %v1262_v4, 8.507059e+37  ;;  %v1307_v28 = vand.u32 2147483647, %v3285_v43 }
 0x3df   : > { %v1286_v45 = vmul.f32 %v2734_v48, %v1285_v59  ;;  %v1310_v36 = vor.u32 1.1754944e-38, %v1309_v23 }
 0x3e1   : > { %v1287_v52 = vadd.f32 %v2734_v48, %v1286_v45 }
 0x3e2   : > { %v2736_v31 = vpop.eup %2735 }
 0x3e3   : > { %v3288_v33 = vpop.eup %2737  ;;  %v1254_v54 = vmul.f32 %v2736_v31, %v1207_v39  ;;  %v977_v41 = vpop.permute.xlu2 %976  ;;  %v1291_v2 = vsel %vm1290_vm8, %v2734_v48, %v1287_v52  ;;  %vm1259_vm9 = vweird.f32 %v2736_v31  ;;  %vm1308_vm8 = vcmp.eq.f32.partialorder %v1307_v28, 8.507059e+37 }
 0x3e4   : > { %v3290_v58 = vpop.xlane.xlu1 %1218  ;;  %v988_v42 = vpack.c.bf16 %v977_v41, %v977_v41  ;;  %v1299_v53 = vmul.f32 %v3288_v33, %v3285_v43  ;;  %v1296_v5 = vsel %vm1293_vm10, %v1295_v29, %v1291_v2  ;;  %vm1260_vm12 = vmor %vm1258_vm11, %vm1259_vm9  ;;  %vm1304_vm15 = vweird.f32 %v3288_v33 }
 0x3e5   : > { %v1255_v62 = vsub.f32 1.0, %v1254_v54  ;;  %2739 = vrcp.f32 %v3290_v58  ;;  %v1297_v15 = vmul.f32 %v3248_v25, %v1296_v5  ;;  %vm1318_vm0 = vweird.f32 %v3290_v58  ;;  %vm1305_vm3 = vmor %vm1303_vm1, %vm1304_vm15 }
 0x3e6   : > { %v1470_v1 = vsel %vm1354_vm6, %v988_v42, 0  ;;  %v1300_v8 = vsub.f32 1.0, %v1299_v53  ;;  %v1322_v24 = vand.u32 2147483647, %v3290_v58  ;;  %vm1541_vm15 = vcmask 785408  }
 0x3e7   : > { %v1256_v57 = vmul.f32 %v2736_v31, %v1255_v62  ;;  %1479 = vmatpush.bf16.msra.mxu3 %v1470_v1  ;;  %v1347_v47 = vpack.c.bf16 %v1297_v15, %v1297_v15  ;;  %v2583_v15 = vld [vmem:[#allocation4 + $0x28] sm:$0xff] }
 0x3e8   : > { %v1301_v0 = vmul.f32 %v3288_v33, %v1300_v8  ;;  %vm1323_vm7 = vcmp.eq.f32.partialorder %v1322_v24, 8.507059e+37 }
 0x3e9   : > { %v1257_v50 = vadd.f32 %v2736_v31, %v1256_v57 }
 0x3ea   : > { %v1302_v22 = vadd.f32 %v3288_v33, %v1301_v0  ;;  %v2580_v0 = vld [vmem:[#allocation4 + $0x10] sm:$0xff] }
 0x3eb   : > { %v2740_v9 = vpop.eup %2739  ;;  %v1261_v10 = vsel %vm1260_vm12, %v2736_v31, %v1257_v50  ;;  %v3296_v12 = vpop.f32.mrf.mxu1  ;;  %vm1535_vm12 = vcmask 392192  }
 0x3ec   : > { %v971_v13 = vpop.permute.xlu2 %970  ;;  %v1266_v46 = vsel %vm1263_vm13, %v1265_v6, %v1261_v10  ;;  %v1314_v14 = vmul.f32 %v2740_v9, %v3290_v58  ;;  %vm1319_vm14 = vweird.f32 %v2740_v9  ;;  %v1306_v32 = vsel %vm1305_vm3, %v3288_v33, %v1302_v22 }
 0x3ed   : > { %v1267_v16 = vmul.f32 %v3254_v60, %v1266_v46  ;;  %v986_v17 = vpack.c.bf16 %v971_v13, %v971_v13  ;;  %v1324_v60 = vand.u32 2147483648, %v3290_v58  ;;  %vm1320_vm2 = vmor %vm1318_vm0, %vm1319_vm14  ;;  %v1311_v51 = vsel %vm1308_vm8, %v1310_v36, %v1306_v32  ;;  %v2585_v46 = vld [vmem:[#allocation4 + $0x38] sm:$0xff]  ;;  %v2616_v36 = vld [vmem:[#allocation6 + $0xec] sm:$0xf0] }
 0x3ee   : > { %v1315_v19 = vsub.f32 1.0, %v1314_v14  ;;  %v1312_v39 = vmul.f32 %v3252_v56, %v1311_v51  ;;  %v2584_v14 = vld [vmem:[#allocation4 + $0x30] sm:$0xff]  ;;  %vm1537_vm13 = vcmask 523264   ;;  %vm1539_vm14 = vcmask 654336   ;;  %v2480_v51 = vld [vmem:[#allocation6 + $0xe8] sm:$0xf] }
 0x3ef   : > { %v1432_v20 = vsel %vm1354_vm6, %v986_v17, 0  ;;  %v1345_v21 = vpack.c.bf16 %v1267_v16, %v1267_v16  ;;  %v1325_v34 = vor.u32 1.1754944e-38, %v1324_v60  ;;  %v2582_v16 = vld [vmem:[#allocation4 + $0x20] sm:$0xff]  ;;  %v2581_v17 = vld [vmem:[#allocation4 + $0x18] sm:$0xff]  ;;  %vm1543_vm0 = vcmask 916480  }
 0x3f0   : > { %v1316_v35 = vmul.f32 %v2740_v9, %v1315_v19  ;;  %1441 = vmatpush.bf16.msrb.mxu1 %v1432_v20  ;;  %v1348_v52 = vpack.c.bf16 %v1312_v39, %v1312_v39  ;;  %v2579_v19 = vld [vmem:[#allocation4 + $0x8] sm:$0xff]  ;;  %v2578_v20 = vld [vmem:[#allocation4] sm:$0xff] }
 0x3f1   : > { %2320 = vmatmul.msk.bf16.vlgmr.msrb.gmra.mxu3 %vm745_vm4, %v1345_v21 }
 0x3f2   : > { %v1317_v25 = vadd.f32 %v2740_v9, %v1316_v35 }
 0x3f3   : > { %2322 = vmatmul.msk.bf16.vlgmr.msrb.gmra.mxu1 %vm745_vm4, %v1347_v47  ;;  %v1369_v26 = vpop.f32.mrf.mxu1 }
 0x3f4   : > { %v980_v27 = vpop.permute.xlu2 %979  ;;  %v1321_v11 = vsel %vm1320_vm2, %v2740_v9, %v1317_v25  ;;  %1610 = vmatpush.bf16.msra.mxu1 %v2585_v46  ;;  %v2424_v46 = vld [vmem:[#allocation6 + $0x80] sm:$0xf] }
 0x3f5   : > { %v989_v30 = vpack.c.bf16 %v980_v27, %v980_v27  ;;  %v1326_v55 = vsel %vm1323_vm7, %v1325_v34, %v1321_v11 }
 0x3f6   : > { %v1327_v48 = vmul.f32 %v3262_v44, %v1326_v55  ;;  %v2614_v55 = vld [vmem:[#allocation6 + $0xe4] sm:$0xf] }
 0x3f7   : > { %v1489_v49 = vsel %vm1354_vm6, %v989_v30, 0 }
 0x3f8   : > { %1498 = vmatpush.bf16.msrb.mxu0 %v1489_v49  ;;  %v1222_v37 = vpop.xlane.xlu0 %1221  ;;  %v1349_v31 = vpack.c.bf16 %v1327_v48, %v1327_v48  ;;  %1611 = vmatpush.bf16.msra.mxu1 %v2584_v14  ;;  %v2472_v49 = vld [vmem:[#allocation6 + $0xe0] sm:$0xf]  ;;  %v2617_v48 = vld [vmem:[#allocation6 + $0xf4] sm:$0xf0]  ;;  %v2604_v14 = vld [vmem:[#allocation6 + $0x8c] sm:$0xf0] }
 0x3f9   : > { %2741 = vrcp.f32 %v1222_v37  ;;  %v1339_v41 = vand.u32 2147483648, %v1222_v37  ;;  %v1337_v44 = vand.u32 2147483647, %v1222_v37  ;;  %vm1333_vm10 = vweird.f32 %v1222_v37 }
 0x3fa   : > { %v2481_v39 = vor.u32 %v2617_v48, %v2480_v51  ;;  %v2394_v51 = vld [vmem:[#allocation6 + $0x50] sm:$0xf0]  ;;  %v2400_v48 = vld [vmem:[#allocation6 + $0x48] sm:$0xf] }
 0x3fb   : > { %v974_v38 = vpop.permute.xlu1 %973  ;;  %v1340_v56 = vor.u32 1.1754944e-38, %v1339_v41  ;;  %v2456_v41 = vld [vmem:[#allocation6 + $0xc0] sm:$0xf] }
 0x3fc   : > { %v987_v43 = vpack.c.bf16 %v974_v38, %v974_v38  ;;  %1612 = vmatpush.bf16.msra.mxu1 %v2583_v15  ;;  %1864 = vmatpush.bf16.msra.mxu0 %v2481_v39  ;;  %v2602_v15 = vld [vmem:[#allocation6 + $0x84] sm:$0xf] }
 0x3fe   : > { %v1451_v59 = vsel %vm1354_vm6, %v987_v43, 0  ;;  %vm1338_vm6 = vcmp.eq.f32.partialorder %v1337_v44, 8.507059e+37  ;;  %v2615_v43 = vld [vmem:[#allocation6 + $0xec] sm:$0xf]  ;;  %v2610_v44 = vld [vmem:[#allocation6 + $0xc4] sm:$0xf] }
 0x3ff   : > { %v2742_v45 = vpop.eup %2741  ;;  %1460 = vmatpush.bf16.msrb.mxu2 %v1451_v59  ;;  %v2482_v59 = vld [vmem:[#allocation6 + $0xf8] sm:$0xf0] }
 0x400   : > { %v1329_v33 = vmul.f32 %v2742_v45, %v1222_v37  ;;  %vm1334_vm9 = vweird.f32 %v2742_v45  ;;  %1613 = vmatpush.bf16.msra.mxu1 %v2582_v16  ;;  %v2474_v37 = vld [vmem:[#allocation6 + $0xf0] sm:$0xf0]  ;;  %v2425_v16 = vor.u32 %v2604_v14, %v2424_v46 }
 0x401   : > { %2324 = vmatmul.msk.bf16.vlgmr.msra.gmra.mxu3 %vm745_vm4, %v1349_v31  ;;  %vm1335_vm11 = vmor %vm1333_vm10, %vm1334_vm9  ;;  %v2477_v38 = vor.u32 %v2614_v55, %v2474_v37  ;;  %v2596_v55 = vld [vmem:[#allocation6 + $0x4c] sm:$0xf0] }
 0x402   : > { %v1330_v54 = vsub.f32 1.0, %v1329_v33  ;;  %2323 = vmatmul.msk.bf16.vlgmr.msrb.gmra.mxu2 %vm745_vm4, %v1348_v52 }
 0x403   : > { %1851 = vmatpush.bf16.msrb.mxu3 %v2477_v38  ;;  %v2597_v38 = vld [vmem:[#allocation6 + $0x54] sm:$0xf0] }
 0x404   : > { %v1331_v58 = vmul.f32 %v2742_v45, %v1330_v54  ;;  %1614 = vmatpush.bf16.msra.mxu1 %v2581_v17  ;;  %v2426_v17 = vld [vmem:[#allocation6 + $0x90] sm:$0xf0] }
 0x406   : > { %v1332_v40 = vadd.f32 %v2742_v45, %v1331_v58  ;;  %v2612_v58 = vld [vmem:[#allocation6 + $0xcc] sm:$0xf0] }
 0x408   : > { %v1336_v42 = vsel %vm1335_vm11, %v2742_v45, %v1332_v40  ;;  %1615 = vmatpush.bf16.msra.mxu1 %v2580_v0  ;;  %v2485_v45 = vor.u32 %v2615_v43, %v2482_v59  ;;  %v2457_v40 = vor.u32 %v2612_v58, %v2456_v41  ;;  %v2432_v0 = vld [vmem:[#allocation6 + $0x88] sm:$0xf]  ;;  %v2401_v43 = vor.u32 %v2597_v38, %v2400_v48  ;;  %v2595_v59 = vld [vmem:[#allocation6 + $0x4c] sm:$0xf]  ;;  %v2590_v41 = vld [vmem:[#allocation6 + $0x24] sm:$0xf] }
 0x409   : > { %v1341_v61 = vsel %vm1338_vm6, %v1340_v56, %v1336_v42  ;;  %v2458_v56 = vld [vmem:[#allocation6 + $0xd0] sm:$0xf0]  ;;  %v2464_v42 = vld [vmem:[#allocation6 + $0xc8] sm:$0xf]  ;;  %v2618_v48 = vld [vmem:[%s3407_s8] sm:$0xff] }
 0x40a   : > { %v1342_v62 = vmul.f32 %v3270_v7, %v1341_v61  ;;  %v2613_v61 = vld [vmem:[#allocation6 + $0xd4] sm:$0xf0]  ;;  %v2626_v38 = vld [vmem:[%s3407_s8 + $0x40] sm:$0xff] }
 0x40c   : > { %v1350_v63 = vpack.c.bf16 %v1342_v62, %v1342_v62  ;;  %1616 = vmatpush.bf16.msra.mxu1 %v2579_v19  ;;  %v2461_v62 = vor.u32 %v2610_v44, %v2458_v56  ;;  %v2605_v19 = vld [vmem:[#allocation6 + $0x94] sm:$0xf0]  ;;  %v2378_v44 = vld [vmem:[#allocation6 + $0x30] sm:$0xf0] }
 0x40d   : > { %v2593_v56 = vld [vmem:[#allocation6 + $0x34] sm:$0xf0] }
 0x40e   : > { %2325 = vmatmul.msk.bf16.vlgmr.msrb.gmra.mxu0 %vm745_vm4, %v1350_v63  ;;  %vm1533_vm4 = vcmask 261120   ;;  %v2465_v63 = vor.u32 %v2613_v61, %v2464_v42  ;;  %1852 = vmatpush.bf16.msrb.mxu3 %v2461_v62  ;;  %v2381_v42 = vor.u32 %v2590_v41, %v2378_v44  ;;  %v2591_v62 = vld [vmem:[#allocation6 + $0x2c] sm:$0xf] }
 0x410   : > { %1617 = vmatpush.bf16.msra.mxu1 %v2578_v20  ;;  %1865 = vmatpush.bf16.msra.mxu0 %v2465_v63  ;;  %v2429_v20 = vor.u32 %v2602_v15, %v2426_v17  ;;  %v2386_v63 = vld [vmem:[#allocation6 + $0x38] sm:$0xf0] }
 0x414   : > { %1877 = vmatpush.bf16.msrb.mxu1 %v2485_v45  ;;  %v2402_v45 = vld [vmem:[#allocation6 + $0x58] sm:$0xf0] }
 0x445   : > { %v1424_v53 = vpop.f32.mrf.mxu0 }
 0x446   : > { %1513 = vrot.lane.b32.xlu1 %v1424_v53, %s2874_s17  ;;  %v2611_v53 = vld [vmem:[#allocation6 + $0xcc] sm:$0xf] }
 0x44d   : > { %v1426_v1 = vpop.f32.mrf.mxu0 }
 0x44e   : > { %v2466_v1 = vld [vmem:[#allocation6 + $0xd8] sm:$0xf0] }
 0x453   : > { %v1386_v2 = vpop.f32.mrf.mxu2 }
 0x454   : > { %1505 = vrot.lane.b32.xlu1 %v1386_v2, %s2876_s16  ;;  %v2469_v2 = vor.u32 %v2611_v53, %v2466_v1  ;;  %v2360_v53 = vld [vmem:[#allocation6] sm:$0xf]  ;;  %v2389_v1 = vor.u32 %v2591_v62, %v2386_v63 }
 0x456   : > { %1878 = vmatpush.bf16.msrb.mxu1 %v2469_v2  ;;  %v2588_v2 = vld [vmem:[#allocation6 + $0xc] sm:$0xf0] }
 0x45b   : > { %v1388_v57 = vpop.f32.mrf.mxu2 }
 0x45c   : > { %v2608_v57 = vld [vmem:[#allocation6 + $0xac] sm:$0xf0] }
 0x470   : > { %v1443_v4 = vpop.f32.mrf.mxu1 }
 0x471   : > { %1517 = vrot.lane.b32.xlu2 %v1443_v4, %s2873_s15  ;;  %v2606_v4 = vld [vmem:[#allocation6 + $0xa4] sm:$0xf] }
 0x474   : > { %v1405_v29 = vpop.f32.mrf.mxu3 }
 0x478   : > { %v1445_v50 = vpop.f32.mrf.mxu1 }
 0x479   : > { %1509 = vrot.lane.b32.xlu2 %v1405_v29, %s2871_s10  ;;  %v2442_v50 = vld [vmem:[#allocation6 + $0xb0] sm:$0xf0] }
 0x47c   : > { %v1407_v5 = vpop.f32.mrf.mxu3 }
 0x47d   : > { %v2448_v5 = vld [vmem:[#allocation6 + $0xa8] sm:$0xf] }
 0x484   : > { %v1481_v7 = vpop.f32.mrf.mxu3 }
 0x485   : > { %1525 = vrot.lane.b32.xlu0 %v1481_v7, %s2870_s29  ;;  %v1462_v6 = vpop.f32.mrf.mxu2  ;;  %v2609_v7 = vld [vmem:[#allocation6 + $0xb4] sm:$0xf0] }
 0x486   : > { %1521 = vrot.lane.b32.xlu1 %v1462_v6, %s2872_s11  ;;  %v2445_v6 = vor.u32 %v2606_v4, %v2442_v50  ;;  %v2361_v4 = vor.u32 %v2588_v2, %v2360_v53  ;;  %v2368_v50 = vld [vmem:[#allocation6 + $0x8] sm:$0xf] }
 0x488   : > { %1853 = vmatpush.bf16.msrb.mxu3 %v2445_v6 }
 0x48b   : > { %v1500_v8 = vpop.f32.mrf.mxu0 }
 0x48c   : > { %v1483_v9 = vpop.f32.mrf.mxu3  ;;  %1529 = vrot.lane.b32.xlu2 %v1500_v8, %s2869_s28  ;;  %v2449_v8 = vor.u32 %v2609_v7, %v2448_v5  ;;  %1854 = vmatpush.bf16.msrb.mxu3 %v2429_v20  ;;  %v2589_v5 = vld [vmem:[#allocation6 + $0x14] sm:$0xf0]  ;;  %v2587_v7 = vld [vmem:[#allocation6 + $0xc] sm:$0xf]  ;;  %v2706_v20 = vld [vmem:[%s3405_s6] ss:$0 sm:$0xff] }
 0x48d   : > { %v1464_v10 = vpop.f32.mrf.mxu2  ;;  %v2607_v9 = vld [vmem:[#allocation6 + $0xac] sm:$0xf]  ;;  %v2369_v6 = vor.u32 %v2589_v5, %v2368_v50 }
 0x48e   : > { %v2450_v10 = vld [vmem:[#allocation6 + $0xb8] sm:$0xf0]  ;;  %1866 = vmatpush.bf16.msra.mxu0 %v2449_v8 }
 0x48f   : > { %v2370_v8 = vld [vmem:[#allocation6 + $0x18] sm:$0xf0] }
 0x493   : > { %v1502_v13 = vpop.f32.mrf.mxu0 }
 0x494   : > { %v2453_v13 = vor.u32 %v2607_v9, %v2450_v10  ;;  %v2373_v9 = vor.u32 %v2587_v7, %v2370_v8 }
 0x496   : > { %1879 = vmatpush.bf16.msrb.mxu1 %v2453_v13 }
 0x4b8   : > { %v1514_v35 = vpop.permute.xlu1 %1513 }
 0x4c6   : > { %v1506_v47 = vpop.permute.xlu1 %1505 }
 0x4c7   : > { %v1532_v25 = vsel %vm990_vm5, %v3296_v12, %v1506_v47  ;;  %v2473_v12 = vor.u32 %v2616_v36, %v2472_v49  ;;  %v2434_v47 = vld [vmem:[#allocation6 + $0x98] sm:$0xf0]  ;;  %v2392_v36 = vld [vmem:[#allocation6 + $0x40] sm:$0xf] }
 0x4c8   : > { %v2393_v37 = vor.u32 %v2596_v55, %v2392_v36  ;;  %v2619_v55 = vld [vmem:[%s3407_s8 + $0x8] sm:$0xff] }
 0x4c9   : > { %1838 = vmatpush.bf16.msra.mxu2 %v2473_v12  ;;  %v2594_v12 = vld [vmem:[#allocation6 + $0x44] sm:$0xf] }
 0x4ca   : > { %v2397_v39 = vor.u32 %v2594_v12, %v2394_v51  ;;  %v2627_v12 = vld [vmem:[%s3407_s8 + $0x48] sm:$0xff] }
 0x4cb   : > { %v1518_v21 = vpop.permute.xlu2 %1517 }
 0x4cd   : > { %1839 = vmatpush.bf16.msra.mxu2 %v2457_v40  ;;  %v2384_v40 = vld [vmem:[#allocation6 + $0x28] sm:$0xf] }
 0x4ce   : > { %v2385_v61 = vor.u32 %v2593_v56, %v2384_v40 }
 0x4d3   : > { %v1510_v22 = vpop.permute.xlu2 %1509 }
 0x4d4   : > { %v1534_v60 = vsel %vm1533_vm4, %v1532_v25, %v1510_v22  ;;  %v2408_v25 = vld [vmem:[#allocation6 + $0x60] sm:$0xf] }
 0x4d5   : > { %v1536_v23 = vsel %vm1535_vm12, %v1534_v60, %v1514_v35  ;;  %v2603_v35 = vld [vmem:[#allocation6 + $0x8c] sm:$0xf]  ;;  %v2600_v60 = vld [vmem:[#allocation6 + $0x6c] sm:$0xf0] }
 0x4d6   : > { %v1538_v24 = vsel %vm1537_vm13, %v1536_v23, %v1518_v21  ;;  %v2433_v21 = vor.u32 %v2605_v19, %v2432_v0  ;;  %v2437_v22 = vor.u32 %v2603_v35, %v2434_v47  ;;  %v2598_v23 = vld [vmem:[#allocation6 + $0x64] sm:$0xf] }
 0x4d8   : > { %1867 = vmatpush.bf16.msra.mxu0 %v2433_v21  ;;  %1880 = vmatpush.bf16.msrb.mxu1 %v2437_v22  ;;  %v2625_v22 = vld [vmem:[%s3407_s8 + $0x38] sm:$0xff] }
 0x4e6   : > { %v1530_v30 = vpop.permute.xlu2 %1529 }
 0x4f7   : > { %v1526_v27 = vpop.permute.xlu0 %1525 }
 0x4f8   : > { %v1522_v26 = vpop.permute.xlu1 %1521 }
 0x4f9   : > { %v1540_v28 = vsel %vm1539_vm14, %v1538_v24, %v1522_v26  ;;  %v2409_v24 = vor.u32 %v2600_v60, %v2408_v25  ;;  %v2410_v26 = vld [vmem:[#allocation6 + $0x70] sm:$0xf0]  ;;  %v2633_v25 = vld [vmem:[%s3407_s8 + $0x78] sm:$0xff] }
 0x4fa   : > { %v1542_v11 = vsel %vm1541_vm15, %v1540_v28, %v1526_v27  ;;  %v2416_v27 = vld [vmem:[#allocation6 + $0x68] sm:$0xf]  ;;  %v2601_v28 = vld [vmem:[#allocation6 + $0x74] sm:$0xf0]  ;;  %v2624_v60 = vld [vmem:[%s3407_s8 + $0x30] sm:$0xff] }
 0x4fb   : > { %v1544_v32 = vsel %vm1543_vm0, %v1542_v11, %v1530_v30  ;;  %v2413_v30 = vor.u32 %v2598_v23, %v2410_v26  ;;  %v2417_v11 = vor.u32 %v2601_v28, %v2416_v27  ;;  %v2632_v23 = vld [vmem:[%s3407_s8 + $0x70] sm:$0xff]  ;;  %v2631_v26 = vld [vmem:[%s3407_s8 + $0x68] sm:$0xff]  ;;  %v2622_v27 = vld [vmem:[%s3407_s8 + $0x20] sm:$0xff] }
 0x4fc   : > { %v1545_v34 = vpack.c.bf16 %v1544_v32, %v1544_v32  ;;  %v2599_v32 = vld [vmem:[#allocation6 + $0x6c] sm:$0xf]  ;;  %v2630_v28 = vld [vmem:[%s3407_s8 + $0x60] sm:$0xff] }
 0x4fd   : > { %1855 = vmatpush.bf16.msrb.mxu3 %v2413_v30  ;;  %1868 = vmatpush.bf16.msra.mxu0 %v2417_v11  ;;  %v2621_v30 = vld [vmem:[%s3407_s8 + $0x18] sm:$0xff] }
 0x4fe   : > { %1618 = vmatmul.bf16.vlgmr.msra.gmra.mxu1 %v1545_v34  ;;  %v2418_v34 = vld [vmem:[#allocation6 + $0x78] sm:$0xf0] }
 0x4ff   : > { %v2421_v49 = vor.u32 %v2599_v32, %v2418_v34  ;;  %v2629_v11 = vld [vmem:[%s3407_s8 + $0x58] sm:$0xff]  ;;  %v2620_v32 = vld [vmem:[%s3407_s8 + $0x10] sm:$0xff] }
 0x500   : > { %v2628_v34 = vld [vmem:[%s3407_s8 + $0x50] sm:$0xff] }
 0x501   : > { %1881 = vmatpush.bf16.msrb.mxu1 %v2421_v49  ;;  %1856 = vmatpush.bf16.msrb.mxu3 %v2397_v39 }
 0x502   : > { %1869 = vmatpush.bf16.msra.mxu0 %v2401_v43 }
 0x505   : > { %1857 = vmatpush.bf16.msrb.mxu3 %v2381_v42 }
 0x506   : > { %1870 = vmatpush.bf16.msra.mxu0 %v2385_v61 }
 0x50a   : > { %1871 = vmatpush.bf16.msra.mxu0 %v2369_v6 }
 0x57b   : > { %v1619_v31 = vpop.f32.mrf.mxu1 }
 0x57c   : > { %v3333_v33 = vadd.f32 %v1619_v31, %v2987_v3  ;;  %v2440_v3 = vld [vmem:[#allocation6 + $0xa0] sm:$0xf]  ;;  %v2405_v31 = vor.u32 %v2595_v59, %v2402_v45 }
 0x57d   : > { %v2441_v29 = vor.u32 %v2608_v57, %v2440_v3  ;;  %v2586_v3 = vld [vmem:[#allocation6 + $0x4] sm:$0xf]  ;;  %v2362_v57 = vld [vmem:[#allocation6 + $0x10] sm:$0xf0] }
 0x57e   : > { %v1624_v52 = vmul.f32 %v3333_v33, %v3333_v33  ;;  %1882 = vmatpush.bf16.msrb.mxu1 %v2405_v31 }
 0x57f   : > { %1840 = vmatpush.bf16.msra.mxu2 %v2441_v29  ;;  %v2365_v29 = vor.u32 %v2586_v3, %v2362_v57 }
 0x580   : > { %1625 = vadd.xlane.f32.xlu1 %v1624_v52  ;;  %v2376_v52 = vld [vmem:[#allocation6 + $0x20] sm:$0xf] }
 0x581   : > { %1858 = vmatpush.bf16.msrb.mxu3 %v2365_v29 }
 0x582   : > { %1883 = vmatpush.bf16.msrb.mxu1 %v2389_v1 }
 0x583   : > { %v1621_v54 = vpop.f32.mrf.mxu1  ;;  %1841 = vmatpush.bf16.msra.mxu2 %v2425_v16 }
 0x584   : > { %v2592_v54 = vld [vmem:[#allocation6 + $0x2c] sm:$0xf0] }
 0x585   : > { %v2377_v58 = vor.u32 %v2592_v54, %v2376_v52  ;;  %2075 = vmatpush.bf16.msra.mxu3 %v2633_v25 }
 0x586   : > { %1884 = vmatpush.bf16.msrb.mxu1 %v2373_v9 }
 0x587   : > { %1842 = vmatpush.bf16.msra.mxu2 %v2409_v24  ;;  %v2623_v24 = vld [vmem:[%s3407_s8 + $0x28] sm:$0xff] }
 0x589   : > { %2076 = vmatpush.bf16.msra.mxu3 %v2632_v23 }
 0x58b   : > { %1843 = vmatpush.bf16.msra.mxu2 %v2393_v37 }
 0x58d   : > { %2077 = vmatpush.bf16.msra.mxu3 %v2631_v26 }
 0x58f   : > { %1844 = vmatpush.bf16.msra.mxu2 %v2377_v58 }
 0x591   : > { %2078 = vmatpush.bf16.msra.mxu3 %v2630_v28 }
 0x593   : > { %1845 = vmatpush.bf16.msra.mxu2 %v2361_v4 }
 0x595   : > { %2079 = vmatpush.bf16.msra.mxu3 %v2629_v11 }
 0x597   : > { %2062 = vmatpush.bf16.msrb.mxu2 %v2625_v22 }
 0x599   : > { %2080 = vmatpush.bf16.msra.mxu3 %v2628_v34 }
 0x59b   : > { %2063 = vmatpush.bf16.msrb.mxu2 %v2624_v60 }
 0x59d   : > { %2081 = vmatpush.bf16.msra.mxu3 %v2627_v12 }
 0x59f   : > { %2064 = vmatpush.bf16.msrb.mxu2 %v2623_v24 }
 0x5a1   : > { %2082 = vmatpush.bf16.msra.mxu3 %v2626_v38 }
 0x5a3   : > { %2065 = vmatpush.bf16.msrb.mxu2 %v2622_v27 }
 0x5a7   : > { %2066 = vmatpush.bf16.msrb.mxu2 %v2621_v30 }
 0x5ab   : > { %2067 = vmatpush.bf16.msrb.mxu2 %v2620_v32 }
 0x5af   : > { %2068 = vmatpush.bf16.msrb.mxu2 %v2619_v55 }
 0x5b3   : > { %2069 = vmatpush.bf16.msrb.mxu2 %v2618_v48 }
 0x5f3   : > { %v1626_v10 = vpop.xlane.xlu1 %1625 }
 0x5f4   : > { %v1627_v13 = vmul.f32 %v1626_v10, %v3001_v18 }
 0x5f6   : > { %v1628_v46 = vadd.f32 1e-06, %v1627_v13 }
 0x5f8   : > { %2743 = vrsqrt.f32 %v1628_v46  ;;  %vm1635_vm1 = vweird.f32 %v1628_v46 }
 0x5fe   : > { %v2744_v14 = vpop.eup %2743 }
 0x5ff   : > { %v1630_v15 = vmul.f32 %v2744_v14, %v1628_v46  ;;  %vm1636_vm5 = vweird.f32 %v2744_v14 }
 0x600   : > { %vm1637_vm2 = vmor %vm1635_vm1, %vm1636_vm5 }
 0x601   : > { %v1631_v16 = vmul.f32 %v2744_v14, %v1630_v15 }
 0x603   : > { %v1632_v17 = vmul.f32 0.5, %v1631_v16 }
 0x605   : > { %v1633_v0 = vsub.f32 1.5, %v1632_v17 }
 0x607   : > { %v1634_v19 = vmul.f32 %v2744_v14, %v1633_v0 }
 0x609   : > { %v1638_v21 = vsel %vm1637_vm2, %v2744_v14, %v1634_v19 }
 0x60a   : > { %v1639_v35 = vmul.f32 %v1638_v21, %v3333_v33 }
 0x60c   : > { %v1644_v47 = vmul.f32 %v2706_v20, %v1639_v35 }
 0x60e   : > { %v1645_v18 = vpack.c.bf16 %v1644_v47, %v1644_v47 }
 0x610   : > { %1846 = vmatmul.bf16.vlgmr.msra.gmra.mxu2 %v1645_v18  ;;  %1859 = vmatmul.bf16.vlgmr.msrb.gmra.mxu3 %v1645_v18 }
 0x611   : > { %1872 = vmatmul.bf16.vlgmr.msra.gmra.mxu0 %v1645_v18  ;;  %1885 = vmatmul.bf16.vlgmr.msrb.gmra.mxu1 %v1645_v18 }
 0x68e   : > { %v1873_v49 = vpop.f32.mrf.mxu0  ;;  %v1886_v36 = vpop.f32.mrf.mxu1 }
 0x693   : > { %v1847_v37 = vpop.f32.mrf.mxu2  ;;  %v1860_v51 = vpop.f32.mrf.mxu3 }
 0x694   : > { %v2486_v39 = vmul.f32 -1.442695, %v1847_v37  ;;  %v2487_v43 = vmul.f32 -1.442695, %v1860_v51 }
 0x696   : > { %2745 = vpow2.f32 %v2486_v39  ;;  %v1875_v59 = vpop.f32.mrf.mxu0  ;;  %v1888_v45 = vpop.f32.mrf.mxu1 }
 0x697   : > { %2747 = vpow2.f32 %v2487_v43 }
 0x69b   : > { %v1849_v31 = vpop.f32.mrf.mxu2  ;;  %v1862_v52 = vpop.f32.mrf.mxu3 }
 0x69c   : > { %v2746_v54 = vpop.eup %2745 }
 0x69d   : > { %v2748_v41 = vpop.eup %2747  ;;  %v1896_v58 = vadd.f32 1.0, %v2746_v54 }
 0x69e   : > { %v1897_v44 = vadd.f32 1.0, %v2748_v41 }
 0x69f   : > { %2749 = vrcp.f32 %v1896_v58  ;;  %v1909_v63 = vand.u32 2147483648, %v1896_v58  ;;  %v1907_v2 = vand.u32 2147483647, %v1896_v58  ;;  %vm1903_vm8 = vweird.f32 %v1896_v58 }
 0x6a0   : > { %2751 = vrcp.f32 %v1897_v44  ;;  %v1924_v3 = vand.u32 2147483648, %v1897_v44  ;;  %v1922_v4 = vand.u32 2147483647, %v1897_v44  ;;  %vm1918_vm10 = vweird.f32 %v1897_v44 }
 0x6a1   : > { %v1910_v50 = vor.u32 1.1754944e-38, %v1909_v63  ;;  %vm1908_vm11 = vcmp.eq.f32.partialorder %v1907_v2, 8.507059e+37 }
 0x6a2   : > { %v1925_v6 = vor.u32 1.1754944e-38, %v1924_v3  ;;  %vm1923_vm4 = vcmp.eq.f32.partialorder %v1922_v4, 8.507059e+37 }
 0x6a5   : > { %v2750_v40 = vpop.eup %2749 }
 0x6a6   : > { %v2752_v56 = vpop.eup %2751  ;;  %v1899_v42 = vmul.f32 %v2750_v40, %v1896_v58  ;;  %vm1904_vm3 = vweird.f32 %v2750_v40 }
 0x6a7   : > { %v1914_v61 = vmul.f32 %v2752_v56, %v1897_v44  ;;  %vm1919_vm7 = vweird.f32 %v2752_v56  ;;  %vm1905_vm9 = vmor %vm1903_vm8, %vm1904_vm3 }
 0x6a8   : > { %v1900_v62 = vsub.f32 1.0, %v1899_v42  ;;  %vm1920_vm6 = vmor %vm1918_vm10, %vm1919_vm7 }
 0x6a9   : > { %v1915_v53 = vsub.f32 1.0, %v1914_v61 }
 0x6aa   : > { %v1901_v1 = vmul.f32 %v2750_v40, %v1900_v62 }
 0x6ab   : > { %v1916_v57 = vmul.f32 %v2752_v56, %v1915_v53 }
 0x6ac   : > { %v1902_v29 = vadd.f32 %v2750_v40, %v1901_v1 }
 0x6ad   : > { %v1917_v5 = vadd.f32 %v2752_v56, %v1916_v57 }
 0x6ae   : > { %v1906_v7 = vsel %vm1905_vm9, %v2750_v40, %v1902_v29 }
 0x6af   : > { %v1911_v8 = vsel %vm1908_vm11, %v1910_v50, %v1906_v7  ;;  %v1921_v9 = vsel %vm1920_vm6, %v2752_v56, %v1917_v5 }
 0x6b0   : > { %v1928_v10 = vmul.f32 %v1911_v8, %v1847_v37  ;;  %v1926_v13 = vsel %vm1923_vm4, %v1925_v6, %v1921_v9 }
 0x6b1   : > { %v1929_v46 = vmul.f32 %v1926_v13, %v1860_v51 }
 0x6b2   : > { %v1930_v14 = vmul.f32 %v1928_v10, %v1873_v49 }
 0x6b3   : > { %v1931_v15 = vmul.f32 %v1929_v46, %v1886_v36 }
 0x6b4   : > { %v1932_v16 = vpack.c.bf16 %v1930_v14, %v1930_v14 }
 0x6b5   : > { %v1933_v17 = vpack.c.bf16 %v1931_v15, %v1931_v15 }
 0x6b6   : > { %2070 = vmatmul.bf16.vlgmr.msrb.gmra.mxu2 %v1932_v16 }
 0x6b7   : > { %2083 = vmatmul.bf16.vlgmr.msra.gmra.mxu3 %v1933_v17 }
 0x739   : > { %v2071_v0 = vpop.f32.mrf.mxu2 }
 0x73a   : > { %v2084_v19 = vpop.f32.mrf.mxu3 }
 0x73b   : > { %v2085_v20 = vadd.f32 %v2084_v19, %v2071_v0 }
 0x73d   : > { %v2088_v21 = vadd.f32 %v2085_v20, %v3333_v33 }
 0x73f   : > { %v2089_v35 = vpack.c.bf16 %v2088_v21, %v2088_v21 }
 0x741   : > { %2090 = vst [vmem:[%s411_s19] sm:$0xf] %v2089_v35  ;;  %v2073_v47 = vpop.f32.mrf.mxu2 }
 0x742   : > { %v2086_v18 = vpop.f32.mrf.mxu3 }
 0x743 PF: > { %s21_s30 = sadd.s32 1, %s2857_s30  }
 0x744   : > { %p18_p7 = scmp.ge.s32.totalorder %s21_s30, 4  }
 0x746   :  { %20 = sbr.rel (!%p18_p7) target bundleno = 2 (0x2), region = 105 }
 0x74b   :  { %2110 = vsyncpa [#allocation3], 1 }
 0x74c   :  { %2112 = vsyncpa [#allocation3 + $0x1], 1 }
 0x74d   :  { %2113 = vsyncpa [#allocation5], 1 }

</bundles_post_ra>
